<compile_context>
chip_gen: v7x
topology: tpu7x:2x2x1
jax: 0.10.0
libtpu: 0.0.40
codegen_flags: <defaults>
</compile_context>

<pallas_src>
import numpy as np
import jax
import jax.numpy as jnp
from jax import lax
from jax.experimental import pallas as pl
from jax.experimental.pallas import tpu as pltpu


def _round_up(x, m):
    return ((x + m - 1) // m) * m


# ----------------------------------------------------------------- fused kernel
def _make_fused_kernel(steps, B_pad, HP, n_mlp, layer_meta, total_pad,
                       off_wih, off_whh, off_mlp, off_gen):
    """layer_meta: tuple of (K, O, off_w, off_b, act_name); off_* are 128-aligned
    column offsets inside the generated `gen` slab."""
    f32 = jnp.float32

    def kernel(z_ref, x0_ref, w_ref, b_ref, out_ref):
        # ---- GRU input projections hoisted out of the recurrence: ONE matmul for all
        #      timesteps and all three gates (gate g lives in lanes [g*HP, g*HP + H)).
        gi = jnp.dot(z_ref[...], w_ref[:, off_wih:off_wih + 3 * HP],
                     preferred_element_type=f32) + b_ref[:, off_wih:off_wih + 3 * HP]

        whh = w_ref[:, off_whh:off_whh + 3 * HP]               # (HP, 3*HP) fused gate weights
        bhn = jnp.broadcast_to(                                 # hoisted n-gate hidden bias
            b_ref[:, off_whh + 2 * HP:off_whh + 3 * HP], (B_pad, HP))

        h = jnp.zeros((B_pad, HP), f32)
        for t in range(steps):                                  # static unroll: serial chain
            gi_t = gi[t * B_pad:(t + 1) * B_pad, :]             # 8-sublane-aligned slice
            gh = jnp.dot(h, whh, preferred_element_type=f32)    # ONE MXU push per step
            # sigmoid(r|u) as a single tanh over a 2*HP-lane tile (1 EUP pass, not 4).
            ru = 0.5 * jnp.tanh(0.5 * (gi_t[:, :2 * HP] + gh[:, :2 * HP])) + 0.5
            r = ru[:, :HP]
            u = ru[:, HP:2 * HP]
            n = jnp.tanh(gi_t[:, 2 * HP:] + r * (gh[:, 2 * HP:] + bhn))
            h = n + u * (h - n)                                 # == (1-u)*n + u*h, one fewer vmul

        # ---- StackedDense (_mlp_trans): Tanh between layers, None on the last.
        zz = h                                                  # (B_pad, HP), lanes H.. are 0
        for l in range(n_mlp):
            o = off_mlp + l * HP
            zz = jnp.dot(zz, w_ref[:, o:o + HP],
                         preferred_element_type=f32) + b_ref[:, o:o + HP]
            if l < n_mlp - 1:
                zz = jnp.tanh(zz)

        # ---- Generate ALL layers' weights & biases with one lane-dense matmul.
        gen = jnp.dot(zz, w_ref[:, off_gen:off_gen + total_pad],
                      preferred_element_type=f32) + b_ref[:, off_gen:off_gen + total_pad]
        out_ref[:, 0:total_pad] = gen                           # 128-aligned unmasked store

        # ---- Hyper layer chain: bmm(x[:,None,:], W).squeeze(1) + bias done as MXU
        #      matmuls against 0/1 selector matrices built in-kernel from iota.
        x = x0_ref[...]                                         # (B_pad, K_pad0), padded lanes 0
        for (K, O, off_w, off_b, act) in layer_meta:
            KO_pad = _round_up(K * O, 128)
            O_pad = _round_up(O, 128)
            in_pad = x.shape[1]
            # R[i, j] = 1  iff  i*O <= j < (i+1)*O  (rows >= K are automatically 0)
            ri = lax.broadcasted_iota(jnp.int32, (in_pad, KO_pad), 0)
            rj = lax.broadcasted_iota(jnp.int32, (in_pad, KO_pad), 1)
            R = jnp.where(jnp.logical_and(rj >= ri * O, rj < (ri + 1) * O), 1.0, 0.0)
            # S[i, j] = 1  iff  (i mod O) == j
            si = lax.broadcasted_iota(jnp.int32, (KO_pad, O_pad), 0)
            sj = lax.broadcasted_iota(jnp.int32, (KO_pad, O_pad), 1)
            so = (si & (O - 1)) if (O & (O - 1)) == 0 else (si % O)
            S = jnp.where(so == sj, 1.0, 0.0)

            wflat = gen[:, off_w:off_w + KO_pad]                # 128-aligned static slices
            bias = gen[:, off_b:off_b + O_pad]
            x_rep = jnp.dot(x, R, preferred_element_type=f32)   # (B_pad, KO_pad)
            y = jnp.dot(x_rep * wflat, S, preferred_element_type=f32) + bias
            if act == "tanh":
                y = jnp.tanh(y)
            elif act == "relu":
                y = jnp.maximum(y, 0.0)
            # NOTE: tanh / relu / None keep padded lanes at exactly 0, which the next
            #       layer's selector matmul relies on.
            x = y
        out_ref[:, total_pad:total_pad + x.shape[1]] = x        # final y folded into the slab

    return kernel


# ------------------------------------------------------------------ parameters
def init_params(key, in_dimension, units, id_dimension, mlp_layers, expand=False):
    # TODO(synk): initializer.default_weight_init / default_bias_init are
    #             project-specific; deterministic scaled normal init is used instead.
    units_full = [in_dimension] + list(units)
    keys = iter(jax.random.split(key, 128))

    def rnd(shape, scale=1.0):
        return scale * jax.random.normal(next(keys), shape, dtype=jnp.float32)

    fmod2 = lambda a: a - 2.0 * jnp.trunc(a / 2.0)   # torch.fmod(x, 2)

    H = id_dimension
    params = {
        "gru_w_ih": rnd((3 * H, id_dimension), 0.2),  # torch layout (3H, D), gates r|z|n
        "gru_w_hh": rnd((3 * H, H), 0.2),
        "gru_b_ih": rnd((3 * H,), 0.1),
        "gru_b_hh": rnd((3 * H,), 0.1),
        "mlp_w": [rnd((id_dimension, id_dimension), 0.2) for _ in range(mlp_layers)],
        "mlp_b": [rnd((id_dimension,), 0.1) for _ in range(mlp_layers)],
        "w1": [], "b1": [], "w2": [], "b2": [],
    }
    for i in range(1, len(units_full)):
        input_size = units_full[i - 1] * (2 if (i == 1 and expand) else 1)
        output_size = units_full[i]
        params["w1"].append(fmod2(rnd((in_dimension, input_size * output_size))))
        params["b1"].append(fmod2(rnd((input_size * output_size,))))
        params["w2"].append(fmod2(rnd((in_dimension, output_size))))
        params["b2"].append(fmod2(rnd((output_size,))))
    return params


def prepare_params(params, units, activation_fns, in_dimension, mlp_layers, expand=False):
    """One-time packing into two 128-aligned slabs:
         w_slab (HP, W): [ wih r|u|n | whh r|u|n | mlp_0..n-1 | w1/w2 of every hyper layer ]
         b_slab (1,  W): matching bias columns
       plus the static per-layer metadata the kernel needs."""
    H = params["gru_w_hh"].shape[1]
    D = in_dimension
    HP = _round_up(max(H, D), 128)       # lane-padded width of the GRU/MLP state

    w_ih = np.asarray(params["gru_w_ih"], np.float32)
    w_hh = np.asarray(params["gru_w_hh"], np.float32)
    b_ih = np.asarray(params["gru_b_ih"], np.float32)
    b_hh = np.asarray(params["gru_b_hh"], np.float32)

    # GRU: all three gates fused, gate g in its own HP-lane block.
    wih_all = np.zeros((HP, 3 * HP), np.float32)
    whh_all = np.zeros((HP, 3 * HP), np.float32)
    bih_all = np.zeros((1, 3 * HP), np.float32)
    bhh_all = np.zeros((1, 3 * HP), np.float32)
    for g in range(3):                                   # gate order r, z(u), n
        wih_all[:D, g * HP:g * HP + H] = w_ih[g * H:(g + 1) * H, :].T
        whh_all[:H, g * HP:g * HP + H] = w_hh[g * H:(g + 1) * H, :].T
    bih_all[0, 0 * HP:0 * HP + H] = b_ih[0:H] + b_hh[0:H]          # r: both biases fold
    bih_all[0, 1 * HP:1 * HP + H] = b_ih[H:2 * H] + b_hh[H:2 * H]  # u: both biases fold
    bih_all[0, 2 * HP:2 * HP + H] = b_ih[2 * H:3 * H]              # n: only b_ih folds
    bhh_all[0, 2 * HP:2 * HP + H] = b_hh[2 * H:3 * H]              # n: b_hh stays inside r*(.)

    w_cols = [wih_all, whh_all]
    b_cols = [bih_all, bhh_all]

    for l in range(mlp_layers):
        wb = np.zeros((HP, HP), np.float32)
        bb = np.zeros((1, HP), np.float32)
        wb[:H, :H] = np.asarray(params["mlp_w"][l], np.float32).T
        bb[0, :H] = np.asarray(params["mlp_b"][l], np.float32)
        w_cols.append(wb)
        b_cols.append(bb)

    units_full = [in_dimension] + list(units)
    # Activation routing mirrors the PyTorch module exactly (self.modules is built from
    # the non-None activation_fns and indexed positionally). Guard the fragile case
    # where a None precedes a non-None entry (torch would silently shift activations).
    seen_none = False
    for a in activation_fns:
        if a is None:
            seen_none = True
        else:
            assert not seen_none, "non-None activation after a None shifts torch's routing"
    modules = [a for a in activation_fns if a is not None]

    layer_meta, off = [], 0
    for i in range(1, len(units_full)):
        index = i - 1
        K = units_full[i - 1] * (2 if (i == 1 and expand) else 1)
        O = units_full[i]
        act = modules[index] if index < len(modules) else None
        KO = K * O
        KO_pad = _round_up(KO, 128)
        O_pad = _round_up(O, 128)
        wblk = np.zeros((HP, KO_pad + O_pad), np.float32)
        bblk = np.zeros((1, KO_pad + O_pad), np.float32)
        wblk[:D, :KO] = np.asarray(params["w1"][index], np.float32)
        bblk[0, :KO] = np.asarray(params["b1"][index], np.float32)
        wblk[:D, KO_pad:KO_pad + O] = np.asarray(params["w2"][index], np.float32)
        bblk[0, KO_pad:KO_pad + O] = np.asarray(params["b2"][index], np.float32)
        layer_meta.append((K, O, off, off + KO_pad, act))
        off += KO_pad + O_pad
        w_cols.append(wblk)
        b_cols.append(bblk)

    return {
        "w_slab": jnp.asarray(np.concatenate(w_cols, axis=1)),
        "b_slab": jnp.asarray(np.concatenate(b_cols, axis=1)),
        "HP": HP, "H": H, "D": D, "mlp_layers": mlp_layers,
        "off_wih": 0, "off_whh": 3 * HP, "off_mlp": 6 * HP,
        "off_gen": 6 * HP + mlp_layers * HP,
        "layer_meta": tuple(layer_meta), "total_pad": off,
        "K0": units_full[0] * (2 if expand else 1),
    }


# ------------------------------------------------------------------- forward
def hypernetwork_fc_forward(packed, x, z, sample_num, trigger_seq_length, batch=True):
    B, T, D = z.shape
    assert 0 <= trigger_seq_length < T, "trigger_seq_length must be < sequence length"
    steps = trigger_seq_length + 1
    HP = packed["HP"]
    n_mlp = packed["mlp_layers"]
    layer_meta = packed["layer_meta"]
    total_pad = packed["total_pad"]
    O_last = layer_meta[-1][1]
    O_pad_last = _round_up(O_last, 128)
    B_pad = _round_up(B, 8)                     # sublane-aligned batch (zero-filled rows)
    K_pad0 = _round_up(packed["K0"], 128)

    # time-major, batch- and lane-padded flatten of the first `steps` timesteps
    z_tm = jnp.transpose(z[:, :steps, :], (1, 0, 2))               # (steps, B, D)
    z_tm = jnp.pad(z_tm, ((0, 0), (0, B_pad - B), (0, HP - D)))
    z2d = z_tm.reshape(steps * B_pad, HP)
    x_pad = jnp.pad(x, ((0, B_pad - B), (0, K_pad0 - x.shape[1])))

    kernel = _make_fused_kernel(steps, B_pad, HP, n_mlp, layer_meta, total_pad,
                                packed["off_wih"], packed["off_whh"],
                                packed["off_mlp"], packed["off_gen"])
    vmem = pl.BlockSpec(memory_space=pltpu.MemorySpace.VMEM)
    out = pl.pallas_call(
        kernel,
        out_shape=jax.ShapeDtypeStruct((B_pad, total_pad + O_pad_last), jnp.float32),
        in_specs=[vmem, vmem, vmem, vmem],
        out_specs=vmem,
        compiler_params=pltpu.CompilerParams(
            # re-derived against v7x's 64 MiB VMEM: resident footprint < 2 MiB
            vmem_limit_bytes=8 * 1024 * 1024),
    )(z2d, x_pad, packed["w_slab"], packed["b_slab"])

    gen = out[:B, :total_pad]
    y = out[:B, total_pad:total_pad + O_last]
    duet_param = {}
    for i, (K, O, off_w, off_b, _act) in enumerate(layer_meta, start=1):
        wflat = gen[:, off_w:off_w + K * O]
        bias = gen[:, off_b:off_b + O]
        weight = wflat.reshape(sample_num, K, O) if batch else wflat.reshape(K, O)
        duet_param["weight" + str(i)] = weight
        duet_param["bias" + str(i)] = bias
    return y, duet_param


# ------------------------------------------------------- pure-JAX reference
def reference_forward(params, x, z, units, activation_fns, in_dimension,
                      sample_num, trigger_seq_length, expand=False):
    H = params["gru_w_hh"].shape[1]
    h = jnp.zeros((z.shape[0], H), jnp.float32)
    for t in range(trigger_seq_length + 1):
        x_t = z[:, t, :]
        gi = x_t @ params["gru_w_ih"].T + params["gru_b_ih"]
        gh = h @ params["gru_w_hh"].T + params["gru_b_hh"]
        r = jax.nn.sigmoid(gi[:, :H] + gh[:, :H])
        u = jax.nn.sigmoid(gi[:, H:2 * H] + gh[:, H:2 * H])
        n = jnp.tanh(gi[:, 2 * H:] + r * gh[:, 2 * H:])
        h = (1.0 - u) * n + u * h
    zz = h
    for l, (w, b) in enumerate(zip(params["mlp_w"], params["mlp_b"])):
        zz = zz @ w.T + b
        if l < len(params["mlp_w"]) - 1:
            zz = jnp.tanh(zz)
    units_full = [in_dimension] + list(units)
    modules = [a for a in activation_fns if a is not None]
    duet = {}
    for i in range(1, len(units_full)):
        index = i - 1
        input_size = units_full[i - 1] * (2 if (i == 1 and expand) else 1)
        output_size = units_full[i]
        weight = (zz @ params["w1"][index] + params["b1"][index]).reshape(
            sample_num, input_size, output_size)
        bias = zz @ params["w2"][index] + params["b2"][index]
        duet["weight" + str(i)] = weight
        duet["bias" + str(i)] = bias
        x = jnp.einsum("bk,bko->bo", x, weight) + bias
        act = modules[index] if index < len(modules) else None
        if act == "tanh":
            x = jnp.tanh(x)
        elif act == "relu":
            x = jnp.maximum(x, 0.0)
    return x, duet


if __name__ == "__main__":
    B = 4            # batch == sample_num (required by the torch .view(sample_num, ...))
    D = 16           # in_dimension == model_conf.id_dimension
    T = 8            # trigger-sequence length of z
    TRIGGER = 5      # trigger_seq_length (< T)
    MLP_LAYERS = 2   # model_conf.mlp_layers
    UNITS = (32, 16)
    ACTS = ("tanh", None)   # [torch.nn.Tanh, None]

    key = jax.random.PRNGKey(0)
    k_param, k_x, k_z = jax.random.split(key, 3)
    params = init_params(k_param, D, UNITS, D, MLP_LAYERS)
    packed = prepare_params(params, UNITS, ACTS, D, MLP_LAYERS)
    x = jax.random.normal(k_x, (B, D), dtype=jnp.float32)
    z = jax.random.normal(k_z, (B, T, D), dtype=jnp.float32)

    out, duet = hypernetwork_fc_forward(packed, x, z, sample_num=B,
                                        trigger_seq_length=TRIGGER)
    out = jax.block_until_ready(out)

    ref_out, ref_duet = reference_forward(params, x, z, UNITS, ACTS, D, B, TRIGGER)
    np.testing.assert_allclose(np.asarray(out), np.asarray(ref_out), rtol=2e-3, atol=2e-3)
    for name in ("weight1", "bias1", "weight2", "bias2"):
        np.testing.assert_allclose(np.asarray(duet[name]), np.asarray(ref_duet[name]),
                                   rtol=2e-3, atol=2e-3)
    assert out.shape == (B, UNITS[-1])
    assert duet["weight1"].shape == (B, D, UNITS[0])
    assert duet["weight2"].shape == (B, UNITS[0], UNITS[1])
    assert duet["bias2"].shape == (B, UNITS[1])
    print("KERNEL_OK")
</pallas_src>

<mosaic_0001>
module attributes {stable_mosaic.version = 11 : i64} {
  func.func @kernel(%arg0: memref<48x128xf32, #tpu.memory_space<vmem>>, %arg1: memref<8x128xf32, #tpu.memory_space<vmem>>, %arg2: memref<128x2304xf32, #tpu.memory_space<vmem>>, %arg3: memref<1x2304xf32, #tpu.memory_space<vmem>>, %arg4: memref<8x1408xf32, #tpu.memory_space<vmem>>) attributes {dimension_semantics = [], scalar_prefetch = 0 : i64, scratch_operands = 0 : i64, tpu.core_type = #tpu.core_type<tc>} {
    %c0 = arith.constant 0 : index
    %c0_0 = arith.constant 0 : index
    %0 = vector.load %arg0[%c0, %c0_0] : memref<48x128xf32, #tpu.memory_space<vmem>>, vector<48x128xf32>
    %c0_1 = arith.constant 0 : index
    %c0_2 = arith.constant 0 : index
    %1 = vector.load %arg2[%c0_1, %c0_2] : memref<128x2304xf32, #tpu.memory_space<vmem>>, vector<128x384xf32>
    %cst = arith.constant dense<0.000000e+00> : vector<48x384xf32>
    %2 = tpu.matmul %0, %1, %cst {dimension_numbers = #tpu.dot_dimension_numbers<[1], [0], [0], [1], [0, 0, 1, 1], [], []>} : vector<48x128xf32>, vector<128x384xf32>, vector<48x384xf32> -> vector<48x384xf32>
    %c0_3 = arith.constant 0 : index
    %c0_4 = arith.constant 0 : index
    %3 = vector.load %arg3[%c0_3, %c0_4] : memref<1x2304xf32, #tpu.memory_space<vmem>>, vector<1x384xf32>
    %4 = vector.broadcast %3 : vector<1x384xf32> to vector<48x384xf32>
    %5 = arith.addf %2, %4 : vector<48x384xf32>
    %c0_5 = arith.constant 0 : index
    %c384 = arith.constant 384 : index
    %6 = vector.load %arg2[%c0_5, %c384] : memref<128x2304xf32, #tpu.memory_space<vmem>>, vector<128x384xf32>
    %c0_6 = arith.constant 0 : index
    %c640 = arith.constant 640 : index
    %7 = vector.load %arg3[%c0_6, %c640] : memref<1x2304xf32, #tpu.memory_space<vmem>>, vector<1x128xf32>
    %8 = vector.shape_cast %7 : vector<1x128xf32> to vector<1x128xf32>
    %9 = vector.broadcast %8 : vector<1x128xf32> to vector<8x128xf32>
    %cst_7 = arith.constant 0.000000e+00 : f32
    %10 = vector.broadcast %cst_7 : f32 to vector<8x128xf32>
    %11 = vector.extract_strided_slice %5 {offsets = [0, 0], sizes = [8, 384], strides = [1, 1]} : vector<48x384xf32> to vector<8x384xf32>
    %cst_8 = arith.constant dense<0.000000e+00> : vector<8x384xf32>
    %12 = tpu.matmul %10, %6, %cst_8 {dimension_numbers = #tpu.dot_dimension_numbers<[1], [0], [0], [1], [0, 0, 1, 1], [], []>} : vector<8x128xf32>, vector<128x384xf32>, vector<8x384xf32> -> vector<8x384xf32>
    %13 = vector.extract_strided_slice %11 {offsets = [0, 0], sizes = [8, 256], strides = [1, 1]} : vector<8x384xf32> to vector<8x256xf32>
    %14 = vector.extract_strided_slice %12 {offsets = [0, 0], sizes = [8, 256], strides = [1, 1]} : vector<8x384xf32> to vector<8x256xf32>
    %15 = arith.addf %13, %14 : vector<8x256xf32>
    %cst_9 = arith.constant 5.000000e-01 : f32
    %16 = vector.broadcast %cst_9 : f32 to vector<8x256xf32>
    %17 = arith.mulf %16, %15 : vector<8x256xf32>
    %18 = math.tanh %17 : vector<8x256xf32>
    %cst_10 = arith.constant 5.000000e-01 : f32
    %19 = vector.broadcast %cst_10 : f32 to vector<8x256xf32>
    %20 = arith.mulf %19, %18 : vector<8x256xf32>
    %cst_11 = arith.constant 5.000000e-01 : f32
    %21 = vector.broadcast %cst_11 : f32 to vector<8x256xf32>
    %22 = arith.addf %20, %21 : vector<8x256xf32>
    %23 = vector.extract_strided_slice %22 {offsets = [0, 0], sizes = [8, 128], strides = [1, 1]} : vector<8x256xf32> to vector<8x128xf32>
    %24 = vector.extract_strided_slice %22 {offsets = [0, 128], sizes = [8, 128], strides = [1, 1]} : vector<8x256xf32> to vector<8x128xf32>
    %25 = vector.extract_strided_slice %11 {offsets = [0, 256], sizes = [8, 128], strides = [1, 1]} : vector<8x384xf32> to vector<8x128xf32>
    %26 = vector.extract_strided_slice %12 {offsets = [0, 256], sizes = [8, 128], strides = [1, 1]} : vector<8x384xf32> to vector<8x128xf32>
    %27 = arith.addf %26, %9 : vector<8x128xf32>
    %28 = arith.mulf %23, %27 : vector<8x128xf32>
    %29 = arith.addf %25, %28 : vector<8x128xf32>
    %30 = math.tanh %29 : vector<8x128xf32>
    %31 = arith.subf %10, %30 : vector<8x128xf32>
    %32 = arith.mulf %24, %31 : vector<8x128xf32>
    %33 = arith.addf %30, %32 : vector<8x128xf32>
    %34 = vector.extract_strided_slice %5 {offsets = [8, 0], sizes = [8, 384], strides = [1, 1]} : vector<48x384xf32> to vector<8x384xf32>
    %cst_12 = arith.constant dense<0.000000e+00> : vector<8x384xf32>
    %35 = tpu.matmul %33, %6, %cst_12 {dimension_numbers = #tpu.dot_dimension_numbers<[1], [0], [0], [1], [0, 0, 1, 1], [], []>} : vector<8x128xf32>, vector<128x384xf32>, vector<8x384xf32> -> vector<8x384xf32>
    %36 = vector.extract_strided_slice %34 {offsets = [0, 0], sizes = [8, 256], strides = [1, 1]} : vector<8x384xf32> to vector<8x256xf32>
    %37 = vector.extract_strided_slice %35 {offsets = [0, 0], sizes = [8, 256], strides = [1, 1]} : vector<8x384xf32> to vector<8x256xf32>
    %38 = arith.addf %36, %37 : vector<8x256xf32>
    %cst_13 = arith.constant 5.000000e-01 : f32
    %39 = vector.broadcast %cst_13 : f32 to vector<8x256xf32>
    %40 = arith.mulf %39, %38 : vector<8x256xf32>
    %41 = math.tanh %40 : vector<8x256xf32>
    %cst_14 = arith.constant 5.000000e-01 : f32
    %42 = vector.broadcast %cst_14 : f32 to vector<8x256xf32>
    %43 = arith.mulf %42, %41 : vector<8x256xf32>
    %cst_15 = arith.constant 5.000000e-01 : f32
    %44 = vector.broadcast %cst_15 : f32 to vector<8x256xf32>
    %45 = arith.addf %43, %44 : vector<8x256xf32>
    %46 = vector.extract_strided_slice %45 {offsets = [0, 0], sizes = [8, 128], strides = [1, 1]} : vector<8x256xf32> to vector<8x128xf32>
    %47 = vector.extract_strided_slice %45 {offsets = [0, 128], sizes = [8, 128], strides = [1, 1]} : vector<8x256xf32> to vector<8x128xf32>
    %48 = vector.extract_strided_slice %34 {offsets = [0, 256], sizes = [8, 128], strides = [1, 1]} : vector<8x384xf32> to vector<8x128xf32>
    %49 = vector.extract_strided_slice %35 {offsets = [0, 256], sizes = [8, 128], strides = [1, 1]} : vector<8x384xf32> to vector<8x128xf32>
    %50 = arith.addf %49, %9 : vector<8x128xf32>
    %51 = arith.mulf %46, %50 : vector<8x128xf32>
    %52 = arith.addf %48, %51 : vector<8x128xf32>
    %53 = math.tanh %52 : vector<8x128xf32>
    %54 = arith.subf %33, %53 : vector<8x128xf32>
    %55 = arith.mulf %47, %54 : vector<8x128xf32>
    %56 = arith.addf %53, %55 : vector<8x128xf32>
    %57 = vector.extract_strided_slice %5 {offsets = [16, 0], sizes = [8, 384], strides = [1, 1]} : vector<48x384xf32> to vector<8x384xf32>
    %cst_16 = arith.constant dense<0.000000e+00> : vector<8x384xf32>
    %58 = tpu.matmul %56, %6, %cst_16 {dimension_numbers = #tpu.dot_dimension_numbers<[1], [0], [0], [1], [0, 0, 1, 1], [], []>} : vector<8x128xf32>, vector<128x384xf32>, vector<8x384xf32> -> vector<8x384xf32>
    %59 = vector.extract_strided_slice %57 {offsets = [0, 0], sizes = [8, 256], strides = [1, 1]} : vector<8x384xf32> to vector<8x256xf32>
    %60 = vector.extract_strided_slice %58 {offsets = [0, 0], sizes = [8, 256], strides = [1, 1]} : vector<8x384xf32> to vector<8x256xf32>
    %61 = arith.addf %59, %60 : vector<8x256xf32>
    %cst_17 = arith.constant 5.000000e-01 : f32
    %62 = vector.broadcast %cst_17 : f32 to vector<8x256xf32>
    %63 = arith.mulf %62, %61 : vector<8x256xf32>
    %64 = math.tanh %63 : vector<8x256xf32>
    %cst_18 = arith.constant 5.000000e-01 : f32
    %65 = vector.broadcast %cst_18 : f32 to vector<8x256xf32>
    %66 = arith.mulf %65, %64 : vector<8x256xf32>
    %cst_19 = arith.constant 5.000000e-01 : f32
    %67 = vector.broadcast %cst_19 : f32 to vector<8x256xf32>
    %68 = arith.addf %66, %67 : vector<8x256xf32>
    %69 = vector.extract_strided_slice %68 {offsets = [0, 0], sizes = [8, 128], strides = [1, 1]} : vector<8x256xf32> to vector<8x128xf32>
    %70 = vector.extract_strided_slice %68 {offsets = [0, 128], sizes = [8, 128], strides = [1, 1]} : vector<8x256xf32> to vector<8x128xf32>
    %71 = vector.extract_strided_slice %57 {offsets = [0, 256], sizes = [8, 128], strides = [1, 1]} : vector<8x384xf32> to vector<8x128xf32>
    %72 = vector.extract_strided_slice %58 {offsets = [0, 256], sizes = [8, 128], strides = [1, 1]} : vector<8x384xf32> to vector<8x128xf32>
    %73 = arith.addf %72, %9 : vector<8x128xf32>
    %74 = arith.mulf %69, %73 : vector<8x128xf32>
    %75 = arith.addf %71, %74 : vector<8x128xf32>
    %76 = math.tanh %75 : vector<8x128xf32>
    %77 = arith.subf %56, %76 : vector<8x128xf32>
    %78 = arith.mulf %70, %77 : vector<8x128xf32>
    %79 = arith.addf %76, %78 : vector<8x128xf32>
    %80 = vector.extract_strided_slice %5 {offsets = [24, 0], sizes = [8, 384], strides = [1, 1]} : vector<48x384xf32> to vector<8x384xf32>
    %cst_20 = arith.constant dense<0.000000e+00> : vector<8x384xf32>
    %81 = tpu.matmul %79, %6, %cst_20 {dimension_numbers = #tpu.dot_dimension_numbers<[1], [0], [0], [1], [0, 0, 1, 1], [], []>} : vector<8x128xf32>, vector<128x384xf32>, vector<8x384xf32> -> vector<8x384xf32>
    %82 = vector.extract_strided_slice %80 {offsets = [0, 0], sizes = [8, 256], strides = [1, 1]} : vector<8x384xf32> to vector<8x256xf32>
    %83 = vector.extract_strided_slice %81 {offsets = [0, 0], sizes = [8, 256], strides = [1, 1]} : vector<8x384xf32> to vector<8x256xf32>
    %84 = arith.addf %82, %83 : vector<8x256xf32>
    %cst_21 = arith.constant 5.000000e-01 : f32
    %85 = vector.broadcast %cst_21 : f32 to vector<8x256xf32>
    %86 = arith.mulf %85, %84 : vector<8x256xf32>
    %87 = math.tanh %86 : vector<8x256xf32>
    %cst_22 = arith.constant 5.000000e-01 : f32
    %88 = vector.broadcast %cst_22 : f32 to vector<8x256xf32>
    %89 = arith.mulf %88, %87 : vector<8x256xf32>
    %cst_23 = arith.constant 5.000000e-01 : f32
    %90 = vector.broadcast %cst_23 : f32 to vector<8x256xf32>
    %91 = arith.addf %89, %90 : vector<8x256xf32>
    %92 = vector.extract_strided_slice %91 {offsets = [0, 0], sizes = [8, 128], strides = [1, 1]} : vector<8x256xf32> to vector<8x128xf32>
    %93 = vector.extract_strided_slice %91 {offsets = [0, 128], sizes = [8, 128], strides = [1, 1]} : vector<8x256xf32> to vector<8x128xf32>
    %94 = vector.extract_strided_slice %80 {offsets = [0, 256], sizes = [8, 128], strides = [1, 1]} : vector<8x384xf32> to vector<8x128xf32>
    %95 = vector.extract_strided_slice %81 {offsets = [0, 256], sizes = [8, 128], strides = [1, 1]} : vector<8x384xf32> to vector<8x128xf32>
    %96 = arith.addf %95, %9 : vector<8x128xf32>
    %97 = arith.mulf %92, %96 : vector<8x128xf32>
    %98 = arith.addf %94, %97 : vector<8x128xf32>
    %99 = math.tanh %98 : vector<8x128xf32>
    %100 = arith.subf %79, %99 : vector<8x128xf32>
    %101 = arith.mulf %93, %100 : vector<8x128xf32>
    %102 = arith.addf %99, %101 : vector<8x128xf32>
    %103 = vector.extract_strided_slice %5 {offsets = [32, 0], sizes = [8, 384], strides = [1, 1]} : vector<48x384xf32> to vector<8x384xf32>
    %cst_24 = arith.constant dense<0.000000e+00> : vector<8x384xf32>
    %104 = tpu.matmul %102, %6, %cst_24 {dimension_numbers = #tpu.dot_dimension_numbers<[1], [0], [0], [1], [0, 0, 1, 1], [], []>} : vector<8x128xf32>, vector<128x384xf32>, vector<8x384xf32> -> vector<8x384xf32>
    %105 = vector.extract_strided_slice %103 {offsets = [0, 0], sizes = [8, 256], strides = [1, 1]} : vector<8x384xf32> to vector<8x256xf32>
    %106 = vector.extract_strided_slice %104 {offsets = [0, 0], sizes = [8, 256], strides = [1, 1]} : vector<8x384xf32> to vector<8x256xf32>
    %107 = arith.addf %105, %106 : vector<8x256xf32>
    %cst_25 = arith.constant 5.000000e-01 : f32
    %108 = vector.broadcast %cst_25 : f32 to vector<8x256xf32>
    %109 = arith.mulf %108, %107 : vector<8x256xf32>
    %110 = math.tanh %109 : vector<8x256xf32>
    %cst_26 = arith.constant 5.000000e-01 : f32
    %111 = vector.broadcast %cst_26 : f32 to vector<8x256xf32>
    %112 = arith.mulf %111, %110 : vector<8x256xf32>
    %cst_27 = arith.constant 5.000000e-01 : f32
    %113 = vector.broadcast %cst_27 : f32 to vector<8x256xf32>
    %114 = arith.addf %112, %113 : vector<8x256xf32>
    %115 = vector.extract_strided_slice %114 {offsets = [0, 0], sizes = [8, 128], strides = [1, 1]} : vector<8x256xf32> to vector<8x128xf32>
    %116 = vector.extract_strided_slice %114 {offsets = [0, 128], sizes = [8, 128], strides = [1, 1]} : vector<8x256xf32> to vector<8x128xf32>
    %117 = vector.extract_strided_slice %103 {offsets = [0, 256], sizes = [8, 128], strides = [1, 1]} : vector<8x384xf32> to vector<8x128xf32>
    %118 = vector.extract_strided_slice %104 {offsets = [0, 256], sizes = [8, 128], strides = [1, 1]} : vector<8x384xf32> to vector<8x128xf32>
    %119 = arith.addf %118, %9 : vector<8x128xf32>
    %120 = arith.mulf %115, %119 : vector<8x128xf32>
    %121 = arith.addf %117, %120 : vector<8x128xf32>
    %122 = math.tanh %121 : vector<8x128xf32>
    %123 = arith.subf %102, %122 : vector<8x128xf32>
    %124 = arith.mulf %116, %123 : vector<8x128xf32>
    %125 = arith.addf %122, %124 : vector<8x128xf32>
    %126 = vector.extract_strided_slice %5 {offsets = [40, 0], sizes = [8, 384], strides = [1, 1]} : vector<48x384xf32> to vector<8x384xf32>
    %cst_28 = arith.constant dense<0.000000e+00> : vector<8x384xf32>
    %127 = tpu.matmul %125, %6, %cst_28 {dimension_numbers = #tpu.dot_dimension_numbers<[1], [0], [0], [1], [0, 0, 1, 1], [], []>} : vector<8x128xf32>, vector<128x384xf32>, vector<8x384xf32> -> vector<8x384xf32>
    %128 = vector.extract_strided_slice %126 {offsets = [0, 0], sizes = [8, 256], strides = [1, 1]} : vector<8x384xf32> to vector<8x256xf32>
    %129 = vector.extract_strided_slice %127 {offsets = [0, 0], sizes = [8, 256], strides = [1, 1]} : vector<8x384xf32> to vector<8x256xf32>
    %130 = arith.addf %128, %129 : vector<8x256xf32>
    %cst_29 = arith.constant 5.000000e-01 : f32
    %131 = vector.broadcast %cst_29 : f32 to vector<8x256xf32>
    %132 = arith.mulf %131, %130 : vector<8x256xf32>
    %133 = math.tanh %132 : vector<8x256xf32>
    %cst_30 = arith.constant 5.000000e-01 : f32
    %134 = vector.broadcast %cst_30 : f32 to vector<8x256xf32>
    %135 = arith.mulf %134, %133 : vector<8x256xf32>
    %cst_31 = arith.constant 5.000000e-01 : f32
    %136 = vector.broadcast %cst_31 : f32 to vector<8x256xf32>
    %137 = arith.addf %135, %136 : vector<8x256xf32>
    %138 = vector.extract_strided_slice %137 {offsets = [0, 0], sizes = [8, 128], strides = [1, 1]} : vector<8x256xf32> to vector<8x128xf32>
    %139 = vector.extract_strided_slice %137 {offsets = [0, 128], sizes = [8, 128], strides = [1, 1]} : vector<8x256xf32> to vector<8x128xf32>
    %140 = vector.extract_strided_slice %126 {offsets = [0, 256], sizes = [8, 128], strides = [1, 1]} : vector<8x384xf32> to vector<8x128xf32>
    %141 = vector.extract_strided_slice %127 {offsets = [0, 256], sizes = [8, 128], strides = [1, 1]} : vector<8x384xf32> to vector<8x128xf32>
    %142 = arith.addf %141, %9 : vector<8x128xf32>
    %143 = arith.mulf %138, %142 : vector<8x128xf32>
    %144 = arith.addf %140, %143 : vector<8x128xf32>
    %145 = math.tanh %144 : vector<8x128xf32>
    %146 = arith.subf %125, %145 : vector<8x128xf32>
    %147 = arith.mulf %139, %146 : vector<8x128xf32>
    %148 = arith.addf %145, %147 : vector<8x128xf32>
    %c0_32 = arith.constant 0 : index
    %c768 = arith.constant 768 : index
    %149 = vector.load %arg2[%c0_32, %c768] : memref<128x2304xf32, #tpu.memory_space<vmem>>, vector<128x128xf32>
    %cst_33 = arith.constant dense<0.000000e+00> : vector<8x128xf32>
    %150 = tpu.matmul %148, %149, %cst_33 {dimension_numbers = #tpu.dot_dimension_numbers<[1], [0], [0], [1], [0, 0, 1, 1], [], []>} : vector<8x128xf32>, vector<128x128xf32>, vector<8x128xf32> -> vector<8x128xf32>
    %c0_34 = arith.constant 0 : index
    %c768_35 = arith.constant 768 : index
    %151 = vector.load %arg3[%c0_34, %c768_35] : memref<1x2304xf32, #tpu.memory_space<vmem>>, vector<1x128xf32>
    %152 = vector.broadcast %151 : vector<1x128xf32> to vector<8x128xf32>
    %153 = arith.addf %150, %152 : vector<8x128xf32>
    %154 = math.tanh %153 : vector<8x128xf32>
    %c0_36 = arith.constant 0 : index
    %c896 = arith.constant 896 : index
    %155 = vector.load %arg2[%c0_36, %c896] : memref<128x2304xf32, #tpu.memory_space<vmem>>, vector<128x128xf32>
    %cst_37 = arith.constant dense<0.000000e+00> : vector<8x128xf32>
    %156 = tpu.matmul %154, %155, %cst_37 {dimension_numbers = #tpu.dot_dimension_numbers<[1], [0], [0], [1], [0, 0, 1, 1], [], []>} : vector<8x128xf32>, vector<128x128xf32>, vector<8x128xf32> -> vector<8x128xf32>
    %c0_38 = arith.constant 0 : index
    %c896_39 = arith.constant 896 : index
    %157 = vector.load %arg3[%c0_38, %c896_39] : memref<1x2304xf32, #tpu.memory_space<vmem>>, vector<1x128xf32>
    %158 = vector.broadcast %157 : vector<1x128xf32> to vector<8x128xf32>
    %159 = arith.addf %156, %158 : vector<8x128xf32>
    %c0_40 = arith.constant 0 : index
    %c1024 = arith.constant 1024 : index
    %160 = vector.load %arg2[%c0_40, %c1024] : memref<128x2304xf32, #tpu.memory_space<vmem>>, vector<128x1280xf32>
    %cst_41 = arith.constant dense<0.000000e+00> : vector<8x1280xf32>
    %161 = tpu.matmul %159, %160, %cst_41 {dimension_numbers = #tpu.dot_dimension_numbers<[1], [0], [0], [1], [0, 0, 1, 1], [], []>} : vector<8x128xf32>, vector<128x1280xf32>, vector<8x1280xf32> -> vector<8x1280xf32>
    %c0_42 = arith.constant 0 : index
    %c1024_43 = arith.constant 1024 : index
    %162 = vector.load %arg3[%c0_42, %c1024_43] : memref<1x2304xf32, #tpu.memory_space<vmem>>, vector<1x1280xf32>
    %163 = vector.broadcast %162 : vector<1x1280xf32> to vector<8x1280xf32>
    %164 = arith.addf %161, %163 : vector<8x1280xf32>
    %c0_44 = arith.constant 0 : index
    %c0_45 = arith.constant 0 : index
    %165 = vector.load %arg4[%c0_44, %c0_45] : memref<8x1408xf32, #tpu.memory_space<vmem>>, vector<8x1280xf32>
    tpu.vector_store %arg4[%c0_44, %c0_45], %164 {strides = array<i32>} : memref<8x1408xf32, #tpu.memory_space<vmem>>, vector<8x1280xf32>,
    %c0_46 = arith.constant 0 : index
    %c0_47 = arith.constant 0 : index
    %166 = vector.load %arg1[%c0_46, %c0_47] : memref<8x128xf32, #tpu.memory_space<vmem>>, vector<8x128xf32>
    %167 = tpu.iota {dimensions = array<i32: 0>} : vector<128x512xi32>
    %168 = tpu.iota {dimensions = array<i32: 1>} : vector<128x512xi32>
    %c32_i32 = arith.constant 32 : i32
    %169 = vector.broadcast %c32_i32 : i32 to vector<128x512xi32>
    %170 = arith.muli %167, %169 : vector<128x512xi32>
    %171 = arith.cmpi sge, %168, %170 : vector<128x512xi32>
    %c1_i32 = arith.constant 1 : i32
    %172 = vector.broadcast %c1_i32 : i32 to vector<128x512xi32>
    %173 = arith.addi %167, %172 : vector<128x512xi32>
    %c32_i32_48 = arith.constant 32 : i32
    %174 = vector.broadcast %c32_i32_48 : i32 to vector<128x512xi32>
    %175 = arith.muli %173, %174 : vector<128x512xi32>
    %176 = arith.cmpi slt, %168, %175 : vector<128x512xi32>
    %177 = arith.andi %171, %176 : vector<128x512xi1>
    %cst_49 = arith.constant 1.000000e+00 : f32
    %cst_50 = arith.constant 0.000000e+00 : f32
    %178 = vector.broadcast %cst_49 : f32 to vector<128x512xf32>
    %179 = vector.broadcast %cst_50 : f32 to vector<128x512xf32>
    %180 = arith.select %177, %178, %179 : vector<128x512xi1>, vector<128x512xf32>
    %181 = tpu.iota {dimensions = array<i32: 0>} : vector<512x128xi32>
    %182 = tpu.iota {dimensions = array<i32: 1>} : vector<512x128xi32>
    %c31_i32 = arith.constant 31 : i32
    %183 = vector.broadcast %c31_i32 : i32 to vector<512x128xi32>
    %184 = arith.andi %181, %183 : vector<512x128xi32>
    %185 = arith.cmpi eq, %184, %182 : vector<512x128xi32>
    %cst_51 = arith.constant 1.000000e+00 : f32
    %cst_52 = arith.constant 0.000000e+00 : f32
    %186 = vector.broadcast %cst_51 : f32 to vector<512x128xf32>
    %187 = vector.broadcast %cst_52 : f32 to vector<512x128xf32>
    %188 = arith.select %185, %186, %187 : vector<512x128xi1>, vector<512x128xf32>
    %189 = vector.extract_strided_slice %164 {offsets = [0, 0], sizes = [8, 512], strides = [1, 1]} : vector<8x1280xf32> to vector<8x512xf32>
    %190 = vector.extract_strided_slice %164 {offsets = [0, 512], sizes = [8, 128], strides = [1, 1]} : vector<8x1280xf32> to vector<8x128xf32>
    %cst_53 = arith.constant dense<0.000000e+00> : vector<8x512xf32>
    %191 = tpu.matmul %166, %180, %cst_53 {dimension_numbers = #tpu.dot_dimension_numbers<[1], [0], [0], [1], [0, 0, 1, 1], [], []>} : vector<8x128xf32>, vector<128x512xf32>, vector<8x512xf32> -> vector<8x512xf32>
    %192 = arith.mulf %191, %189 : vector<8x512xf32>
    %cst_54 = arith.constant dense<0.000000e+00> : vector<8x128xf32>
    %193 = tpu.matmul %192, %188, %cst_54 {dimension_numbers = #tpu.dot_dimension_numbers<[1], [0], [0], [1], [0, 0, 1, 1], [], []>} : vector<8x512xf32>, vector<512x128xf32>, vector<8x128xf32> -> vector<8x128xf32>
    %194 = arith.addf %193, %190 : vector<8x128xf32>
    %195 = math.tanh %194 : vector<8x128xf32>
    %196 = tpu.iota {dimensions = array<i32: 0>} : vector<128x512xi32>
    %197 = tpu.iota {dimensions = array<i32: 1>} : vector<128x512xi32>
    %c16_i32 = arith.constant 16 : i32
    %198 = vector.broadcast %c16_i32 : i32 to vector<128x512xi32>
    %199 = arith.muli %196, %198 : vector<128x512xi32>
    %200 = arith.cmpi sge, %197, %199 : vector<128x512xi32>
    %c1_i32_55 = arith.constant 1 : i32
    %201 = vector.broadcast %c1_i32_55 : i32 to vector<128x512xi32>
    %202 = arith.addi %196, %201 : vector<128x512xi32>
    %c16_i32_56 = arith.constant 16 : i32
    %203 = vector.broadcast %c16_i32_56 : i32 to vector<128x512xi32>
    %204 = arith.muli %202, %203 : vector<128x512xi32>
    %205 = arith.cmpi slt, %197, %204 : vector<128x512xi32>
    %206 = arith.andi %200, %205 : vector<128x512xi1>
    %cst_57 = arith.constant 1.000000e+00 : f32
    %cst_58 = arith.constant 0.000000e+00 : f32
    %207 = vector.broadcast %cst_57 : f32 to vector<128x512xf32>
    %208 = vector.broadcast %cst_58 : f32 to vector<128x512xf32>
    %209 = arith.select %206, %207, %208 : vector<128x512xi1>, vector<128x512xf32>
    %210 = tpu.iota {dimensions = array<i32: 0>} : vector<512x128xi32>
    %211 = tpu.iota {dimensions = array<i32: 1>} : vector<512x128xi32>
    %c15_i32 = arith.constant 15 : i32
    %212 = vector.broadcast %c15_i32 : i32 to vector<512x128xi32>
    %213 = arith.andi %210, %212 : vector<512x128xi32>
    %214 = arith.cmpi eq, %213, %211 : vector<512x128xi32>
    %cst_59 = arith.constant 1.000000e+00 : f32
    %cst_60 = arith.constant 0.000000e+00 : f32
    %215 = vector.broadcast %cst_59 : f32 to vector<512x128xf32>
    %216 = vector.broadcast %cst_60 : f32 to vector<512x128xf32>
    %217 = arith.select %214, %215, %216 : vector<512x128xi1>, vector<512x128xf32>
    %218 = vector.extract_strided_slice %164 {offsets = [0, 640], sizes = [8, 512], strides = [1, 1]} : vector<8x1280xf32> to vector<8x512xf32>
    %219 = vector.extract_strided_slice %164 {offsets = [0, 1152], sizes = [8, 128], strides = [1, 1]} : vector<8x1280xf32> to vector<8x128xf32>
    %cst_61 = arith.constant dense<0.000000e+00> : vector<8x512xf32>
    %220 = tpu.matmul %195, %209, %cst_61 {dimension_numbers = #tpu.dot_dimension_numbers<[1], [0], [0], [1], [0, 0, 1, 1], [], []>} : vector<8x128xf32>, vector<128x512xf32>, vector<8x512xf32> -> vector<8x512xf32>
    %221 = arith.mulf %220, %218 : vector<8x512xf32>
    %cst_62 = arith.constant dense<0.000000e+00> : vector<8x128xf32>
    %222 = tpu.matmul %221, %217, %cst_62 {dimension_numbers = #tpu.dot_dimension_numbers<[1], [0], [0], [1], [0, 0, 1, 1], [], []>} : vector<8x512xf32>, vector<512x128xf32>, vector<8x128xf32> -> vector<8x128xf32>
    %223 = arith.addf %222, %219 : vector<8x128xf32>
    %c0_63 = arith.constant 0 : index
    %c1280 = arith.constant 1280 : index
    %224 = vector.load %arg4[%c0_63, %c1280] : memref<8x1408xf32, #tpu.memory_space<vmem>>, vector<8x128xf32>
    tpu.vector_store %arg4[%c0_63, %c1280], %223 {strides = array<i32>} : memref<8x1408xf32, #tpu.memory_space<vmem>>, vector<8x128xf32>,
    return
  }
}

</mosaic_0001>

<bundles_post_ra>
// kernel: tpu_custom_call.1
= control target key start
LH: loop header
LB: loop body
LE: loop exit
PB: predicated region body
PF: predicated region fallthrough
CT: control target
= control target key end

     0   :  { %9 = vsyncpa [#allocation3], 0  ;;  %s8831_s0 = inlined_call_operand.hbm [shape: f32[48,128], index: 0, kind: input, shape index: {}]   ;;  %s8832_s1 = inlined_call_operand.hbm [shape: f32[8,128], index: 1, kind: input, shape index: {}]   ;;  %s8833_s2 = inlined_call_operand.hbm [shape: f32[128,2304], index: 2, kind: input, shape index: {}]   ;;  %s8834_s3 = inlined_call_operand.hbm [shape: f32[1,2304], index: 3, kind: input, shape index: {}]   ;;  %s8835_s4 = inlined_call_operand.hbm [shape: f32[8,1408], index: 4, kind: output, shape index: {}]  }
   0x1   :  { %10 = vsyncpa [#allocation6], 0 }
   0x2   :  { %11 = vsyncpa [#allocation9], 0 }
   0x3   :  { %12 = vsyncpa [#allocation4], 0  ;;  %s5684_s15 = smov [#allocation5]   ;;  %s5685_s17 = smov [#allocation2]  }
   0x4   :  { %s31_s16 = sshll.u32 %s5684_s15, 4  ;;  %s18_s18 = sshll.u32 %s5685_s17, 4  ;;  %s32_s16 = int_to_ptr.vmem [resolvable:$true] %s31_s16  ;;  %s5722_s18 = int_to_ptr.vmem [resolvable:$true] %s18_s18 }
   0x5   :  { %s5566_s21 = scalar_lea.hbm %s8832_s1, 128 }
   0x6   :  { %p5567_p0 = scmp.ne.s32.totalorder %s8832_s1, %s5566_s21  ;;  %p5570_p1 = scmp.lt.u32.totalorder %s5566_s21, %s8832_s1 }
   0x8   :  { %p5572_p2 = pnand %p5570_p1, %p5567_p0 }
   0xa   :  { %5575 = shalt.err (!%p5572_p2)
}
   0xb   :  { %s5576_s26 = scalar_lea.vmem %s32_s16, 128  ;;  %p5581_p4 = scmp.lt.s32.totalorder %s32_s16, %s32_s16 }
   0xc   :  { %p5577_p3 = scmp.ne.s32.totalorder %s32_s16, %s5576_s26  ;;  %p5582_p5 = scmp.lt.s32.totalorder %s5576_s26, %s5576_s26 }
   0xe   :  { %p5583_p6 = por %p5582_p5, %p5581_p4 }
  0x10   :  { %p5584_p7 = pnand %p5583_p6, %p5577_p3 }
  0x12   :  { %5587 = shalt.err (!%p5584_p7)
}
  0x13   :  { %34 = dma.hbm_to_vmem [thread:$0]  %s8832_s1, 128, %s32_s16, [#allocation6]  }
  0x14   :  { %s5588_s5 = scalar_lea.hbm %s8831_s0, 768 }
  0x15   :  { %p5589_p8 = scmp.ne.s32.totalorder %s8831_s0, %s5588_s5  ;;  %p5592_p9 = scmp.lt.u32.totalorder %s5588_s5, %s8831_s0 }
  0x17   :  { %p5594_p10 = pnand %p5592_p9, %p5589_p8 }
  0x19   :  { %5597 = shalt.err (!%p5594_p10)
}
  0x1a   :  { %s5598_s10 = scalar_lea.vmem %s5722_s18, 768  ;;  %p5603_p12 = scmp.lt.s32.totalorder %s5722_s18, %s5722_s18 }
  0x1b   :  { %p5599_p11 = scmp.ne.s32.totalorder %s5722_s18, %s5598_s10  ;;  %p5604_p13 = scmp.lt.s32.totalorder %s5598_s10, %s5598_s10 }
  0x1d   :  { %p5605_p0 = por %p5604_p13, %p5603_p12 }
  0x1f   :  { %p5606_p1 = pnand %p5605_p0, %p5599_p11 }
  0x21   :  { %5609 = shalt.err (!%p5606_p1)
}
  0x22   :  { %s5686_s1 = smov 128   ;;  %s5687_s11 = smov 8  }
  0x23   :  { %24 = dma.hbm_to_vmem [thread:$0]  %s8831_s0, 768, %s5722_s18, [#allocation3], %s5686_s1, %s5686_s1, %s5687_s11  }
  0x24   :  { %s5688_s14 = smov [#allocation7]   ;;  %s5610_s19 = scalar_lea.hbm %s8833_s2, 36864 }
  0x25   :  { %s40_s15 = sshll.u32 %s5688_s14, 4  ;;  %p5611_p2 = scmp.ne.s32.totalorder %s8833_s2, %s5610_s19  ;;  %s41_s15 = int_to_ptr.vmem [resolvable:$true] %s40_s15 }
  0x26   :  { %p5614_p3 = scmp.lt.u32.totalorder %s5610_s19, %s8833_s2 }
  0x28   :  { %p5616_p4 = pnand %p5614_p3, %p5611_p2 }
  0x2a   :  { %5619 = shalt.err (!%p5616_p4)
}
  0x2b   :  { %s5620_s24 = scalar_lea.vmem %s41_s15, 36864  ;;  %p5625_p6 = scmp.lt.s32.totalorder %s41_s15, %s41_s15 }
  0x2c   :  { %p5621_p5 = scmp.ne.s32.totalorder %s41_s15, %s5620_s24  ;;  %p5626_p7 = scmp.lt.s32.totalorder %s5620_s24, %s5620_s24 }
  0x2e   :  { %p5627_p8 = por %p5626_p7, %p5625_p6 }
  0x30   :  { %p5628_p9 = pnand %p5627_p8, %p5621_p5 }
  0x32   :  { %5631 = shalt.err (!%p5628_p9)
}
  0x33   :  { %s5689_s0 = smov 2304   ;;  %s5690_s18 = smov 144  }
  0x34   :  { %46 = dma.hbm_to_vmem [thread:$0]  %s8833_s2, 36864, %s41_s15, [#allocation6], %s5689_s0, %s5689_s0, %s5690_s18  }
  0x35   :  { %s5691_s27 = smov [#allocation8]   ;;  %s5632_s5 = scalar_lea.hbm %s8834_s3, 288 }
  0x36   :  { %s53_s28 = sshll.u32 %s5691_s27, 4  ;;  %p5633_p10 = scmp.ne.s32.totalorder %s8834_s3, %s5632_s5  ;;  %s54_s28 = int_to_ptr.vmem [resolvable:$true] %s53_s28 }
  0x37   :  { %p5636_p11 = scmp.lt.u32.totalorder %s5632_s5, %s8834_s3 }
  0x39   :  { %p5638_p12 = pnand %p5636_p11, %p5633_p10 }
  0x3b   :  { %5641 = shalt.err (!%p5638_p12)
}
  0x3c   :  { %s5642_s10 = scalar_lea.vmem %s54_s28, 288  ;;  %p5647_p0 = scmp.lt.s32.totalorder %s54_s28, %s54_s28 }
  0x3d   :  { %p5643_p13 = scmp.ne.s32.totalorder %s54_s28, %s5642_s10  ;;  %p5648_p1 = scmp.lt.s32.totalorder %s5642_s10, %s5642_s10 }
  0x3f   :  { %p5649_p2 = por %p5648_p1, %p5647_p0 }
  0x41   :  { %p5650_p3 = pnand %p5649_p2, %p5643_p13 }
  0x43   :  { %5653 = shalt.err (!%p5650_p3)
}
  0x44   :  { %56 = dma.hbm_to_vmem [thread:$0]  %s8834_s3, 288, %s54_s28, [#allocation9]  }
  0x45   :  { %5676 = dma.done.wait [#allocation3], 768  }
  0x46   :  { %5677 = vsyncadd [#allocation3], 4294966528 }
  0x47   :  { %5678 = dma.done.wait [#allocation6], 36992  }
  0x48   :  { %5679 = vsyncadd [#allocation6], 4294930304 }
  0x49   :  { %5680 = dma.done.wait [#allocation9], 288  }
  0x4a   :  { %5681 = vsyncadd [#allocation9], 4294967008  ;;  %v8837_v0 = vmov 0.0   ;;  %v76_v1 = vld [vmem:[#allocation7 + $0x8] sm:$0xff]  ;;  %v79_v2 = vld [vmem:[#allocation7 + $0x98] sm:$0xff]  ;;  %vm5694_vm0 = vmmov 0  }
  0x4b   :  { %204 = vmatprep.mubr.f32.mxu0 %v8837_v0  ;;  %v75_v3 = vld [vmem:[#allocation7] sm:$0xff]  ;;  %v4621_v4 = vpack.c.bf16 %v79_v2, %v76_v1  ;;  %v78_v5 = vld [vmem:[#allocation7 + $0x90] sm:$0xff]  ;;  %v82_v6 = vld [vmem:[#allocation7 + $0x128] sm:$0xff]  ;;  %s5696_s3 = smov [#allocation10]  }
  0x4c   :  { %v85_v7 = vld [vmem:[#allocation7 + $0x1b8] sm:$0xff]  ;;  %v4623_v8 = vpack.c.bf16 %v78_v5, %v75_v3  ;;  %v81_v10 = vld [vmem:[#allocation7 + $0x120] sm:$0xff]  ;;  %v84_v11 = vld [vmem:[#allocation7 + $0x1b0] sm:$0xff]  ;;  %s3732_s11 = sshll.u32 %s5696_s3, 4  ;;  %s3733_s11 = int_to_ptr.vmem [resolvable:$true] %s3732_s11 }
  0x4d   :  { %v4625_v9 = vpack.c.bf16 %v85_v7, %v82_v6  ;;  %v88_v12 = vld [vmem:[#allocation7 + $0x248] sm:$0xff]  ;;  %4622 = vmatprep.subr.bf16.mxu0 %v4621_v4  ;;  %v91_v13 = vld [vmem:[#allocation7 + $0x2d8] sm:$0xff]  ;;  %v4627_v14 = vpack.c.bf16 %v84_v11, %v81_v10  ;;  %v87_v16 = vld [vmem:[#allocation7 + $0x240] sm:$0xff]  ;;  %s5654_s12 = scalar_lea.vmem %s3733_s11, 1408  ;;  %p5659_p5 = scmp.lt.s32.totalorder %s3733_s11, %s3733_s11 }
  0x4e   :  { %4624 = vmatpush1.bf16.msra.mxu0 %v4623_v8  ;;  %v4629_v15 = vpack.c.bf16 %v91_v13, %v88_v12  ;;  %v90_v17 = vld [vmem:[#allocation7 + $0x2d0] sm:$0xff]  ;;  %v94_v18 = vld [vmem:[#allocation7 + $0x368] sm:$0xff]  ;;  %v97_v19 = vld [vmem:[#allocation7 + $0x3f8] sm:$0xff]  ;;  %p5655_p4 = scmp.ne.s32.totalorder %s3733_s11, %s5654_s12  ;;  %p5660_p6 = scmp.lt.s32.totalorder %s5654_s12, %s5654_s12 }
  0x4f   :  { %4626 = vmatprep.subr.bf16.mxu0 %v4625_v9  ;;  %v77_v20 = vld [vmem:[#allocation7 + $0x10] sm:$0xff]  ;;  %v80_v21 = vld [vmem:[#allocation7 + $0xa0] sm:$0xff]  ;;  %v4631_v23 = vpack.c.bf16 %v90_v17, %v87_v16  ;;  %v4633_v26 = vpack.c.bf16 %v97_v19, %v94_v18  ;;  %v100_v29 = vld [vmem:[#allocation7 + $0x488] sm:$0xff] }
  0x50   :  { %v4653_v22 = vpack.c.bf16 %v80_v21, %v77_v20  ;;  %v83_v24 = vld [vmem:[#allocation7 + $0x130] sm:$0xff]  ;;  %v86_v25 = vld [vmem:[#allocation7 + $0x1c0] sm:$0xff]  ;;  %v103_v31 = vld [vmem:[#allocation7 + $0x518] sm:$0xff]  ;;  %p5661_p7 = por %p5660_p6, %p5659_p5 }
  0x51   :  { %v93_v27 = vld [vmem:[#allocation7 + $0x360] sm:$0xff]  ;;  %v96_v28 = vld [vmem:[#allocation7 + $0x3f0] sm:$0xff]  ;;  %v4657_v30 = vpack.c.bf16 %v86_v25, %v83_v24  ;;  %v4637_v38 = vpack.c.bf16 %v103_v31, %v100_v29  ;;  %v106_v41 = vld [vmem:[#allocation7 + $0x5a8] sm:$0xff] }
  0x52   :  { %4628 = vmatpush1.bf16.msra.mxu0 %v4627_v14  ;;  %4654 = vmatprep.subr.bf16.mxu1 %v4653_v22  ;;  %v89_v32 = vld [vmem:[#allocation7 + $0x250] sm:$0xff]  ;;  %v92_v33 = vld [vmem:[#allocation7 + $0x2e0] sm:$0xff]  ;;  %v4635_v35 = vpack.c.bf16 %v96_v28, %v93_v27  ;;  %v109_v42 = vld [vmem:[#allocation7 + $0x638] sm:$0xff]  ;;  %p5662_p8 = pnand %p5661_p7, %p5655_p4 }
  0x53   :  { %4630 = vmatprep.subr.bf16.mxu0 %v4629_v15  ;;  %4656 = vmatpush3.bf16.msra.mxu1 %v4653_v22  ;;  %v4661_v34 = vpack.c.bf16 %v92_v33, %v89_v32  ;;  %v95_v36 = vld [vmem:[#allocation7 + $0x370] sm:$0xff]  ;;  %v98_v37 = vld [vmem:[#allocation7 + $0x400] sm:$0xff]  ;;  %v5778_v43 = vld [vmem:[#allocation2] sm:$0xff]  ;;  %v4641_v48 = vpack.c.bf16 %v109_v42, %v106_v41 }
  0x54   :  { %4658 = vmatprep.subr.bf16.mxu1 %v4657_v30  ;;  %v99_v39 = vld [vmem:[#allocation7 + $0x480] sm:$0xff]  ;;  %v102_v40 = vld [vmem:[#allocation7 + $0x510] sm:$0xff]  ;;  %v4665_v44 = vpack.c.bf16 %v98_v37, %v95_v36  ;;  %4332 = vmatprep.mubr.f32.mxu1 %v5778_v43  ;;  %v112_v51 = vld [vmem:[#allocation7 + $0x6c8] sm:$0xff] }
  0x55   :  { %v4639_v45 = vpack.c.bf16 %v102_v40, %v99_v39  ;;  %v101_v46 = vld [vmem:[#allocation7 + $0x490] sm:$0xff]  ;;  %v104_v47 = vld [vmem:[#allocation7 + $0x520] sm:$0xff]  ;;  %v115_v52 = vld [vmem:[#allocation7 + $0x758] sm:$0xff] }
  0x56   :  { %4632 = vmatpush1.bf16.msra.mxu0 %v4631_v23  ;;  %v105_v49 = vld [vmem:[#allocation7 + $0x5a0] sm:$0xff]  ;;  %v108_v50 = vld [vmem:[#allocation7 + $0x630] sm:$0xff]  ;;  %v4669_v53 = vpack.c.bf16 %v104_v47, %v101_v46  ;;  %v4645_v57 = vpack.c.bf16 %v115_v52, %v112_v51  ;;  %v118_v60 = vld [vmem:[#allocation7 + $0x7e8] sm:$0xff] }
  0x57   :  { %4634 = vmatprep.subr.bf16.mxu0 %v4633_v26  ;;  %4660 = vmatpush3.bf16.msra.mxu1 %v4657_v30  ;;  %v4643_v54 = vpack.c.bf16 %v108_v50, %v105_v49  ;;  %v107_v55 = vld [vmem:[#allocation7 + $0x5b0] sm:$0xff]  ;;  %v110_v56 = vld [vmem:[#allocation7 + $0x640] sm:$0xff]  ;;  %v121_v61 = vld [vmem:[#allocation7 + $0x878] sm:$0xff] }
  0x58   :  { %4662 = vmatprep.subr.bf16.mxu1 %v4661_v34  ;;  %v111_v58 = vld [vmem:[#allocation7 + $0x6c0] sm:$0xff]  ;;  %v114_v59 = vld [vmem:[#allocation7 + $0x750] sm:$0xff]  ;;  %v4673_v62 = vpack.c.bf16 %v110_v56, %v107_v55  ;;  %v4649_v3 = vpack.c.bf16 %v121_v61, %v118_v60  ;;  %v336_v13 = vld [vmem:[#allocation7 + $0x18] sm:$0xff] }
  0x59   :  { %v4647_v63 = vpack.c.bf16 %v114_v59, %v111_v58  ;;  %v113_v1 = vld [vmem:[#allocation7 + $0x6d0] sm:$0xff]  ;;  %v116_v2 = vld [vmem:[#allocation7 + $0x760] sm:$0xff]  ;;  %v339_v14 = vld [vmem:[#allocation7 + $0xa8] sm:$0xff] }
  0x5a   :  { %4636 = vmatpush1.bf16.msra.mxu0 %v4635_v35  ;;  %v117_v4 = vld [vmem:[#allocation7 + $0x7e0] sm:$0xff]  ;;  %v120_v5 = vld [vmem:[#allocation7 + $0x870] sm:$0xff]  ;;  %v4677_v8 = vpack.c.bf16 %v116_v2, %v113_v1  ;;  %v5783_v18 = vpack.c.bf16 %v339_v14, %v336_v13  ;;  %v342_v20 = vld [vmem:[#allocation7 + $0x138] sm:$0xff] }
  0x5b   :  { %4638 = vmatprep.subr.bf16.mxu0 %v4637_v38  ;;  %4664 = vmatpush3.bf16.msra.mxu1 %v4661_v34  ;;  %v337_v6 = vld [vmem:[#allocation7 + $0x20] sm:$0xff]  ;;  %v340_v7 = vld [vmem:[#allocation7 + $0xb0] sm:$0xff]  ;;  %v4651_v9 = vpack.c.bf16 %v120_v5, %v117_v4  ;;  %v345_v21 = vld [vmem:[#allocation7 + $0x1c8] sm:$0xff]  ;;  %v5693_v34 = vmov 0.0|0.0  }
  0x5c   :  { %4666 = vmatprep.subr.bf16.mxu1 %v4665_v44  ;;  %v119_v10 = vld [vmem:[#allocation7 + $0x7f0] sm:$0xff]  ;;  %v122_v11 = vld [vmem:[#allocation7 + $0x880] sm:$0xff]  ;;  %v5781_v12 = vpack.c.bf16 %v340_v7, %v337_v6  ;;  %v338_v24 = vld [vmem:[#allocation7 + $0x28] sm:$0xff]  ;;  %v5790_v26 = vpack.c.bf16 %v345_v21, %v342_v20 }
  0x5d   :  { %v343_v15 = vld [vmem:[#allocation7 + $0x140] sm:$0xff]  ;;  %v346_v16 = vld [vmem:[#allocation7 + $0x1d0] sm:$0xff]  ;;  %v4681_v17 = vpack.c.bf16 %v122_v11, %v119_v10  ;;  %v341_v25 = vld [vmem:[#allocation7 + $0xb8] sm:$0xff] }
  0x5e   :  { %4640 = vmatpush1.bf16.msra.mxu0 %v4639_v45  ;;  %v5786_v19 = vpack.c.bf16 %v346_v16, %v343_v15  ;;  %v349_v22 = vld [vmem:[#allocation7 + $0x260] sm:$0xff]  ;;  %v352_v23 = vld [vmem:[#allocation7 + $0x2f0] sm:$0xff]  ;;  %v348_v29 = vld [vmem:[#allocation7 + $0x258] sm:$0xff]  ;;  %v5796_v33 = vpack.c.bf16 %v341_v25, %v338_v24 }
  0x5f   :  { %4642 = vmatprep.subr.bf16.mxu0 %v4641_v48  ;;  %4668 = vmatpush3.bf16.msra.mxu1 %v4665_v44  ;;  %v70_v27 = vld [vmem:[#allocation2 + $0x8] sm:$0xff]  ;;  %v5794_v28 = vpack.c.bf16 %v352_v23, %v349_v22  ;;  %v351_v30 = vld [vmem:[#allocation7 + $0x2e8] sm:$0xff]  ;;  %v355_v31 = vld [vmem:[#allocation7 + $0x380] sm:$0xff] }
  0x60   :  { %4670 = vmatprep.subr.bf16.mxu1 %v4669_v53  ;;  %v358_v32 = vld [vmem:[#allocation7 + $0x410] sm:$0xff]  ;;  %v344_v35 = vld [vmem:[#allocation7 + $0x148] sm:$0xff]  ;;  %v347_v36 = vld [vmem:[#allocation7 + $0x1d8] sm:$0xff]  ;;  %v5800_v37 = vpack.c.bf16 %v351_v30, %v348_v29 }
  0x61   :  { %v71_v38 = vld [vmem:[#allocation2 + $0x10] sm:$0xff]  ;;  %v5804_v39 = vpack.c.bf16 %v358_v32, %v355_v31  ;;  %v357_v41 = vld [vmem:[#allocation7 + $0x408] sm:$0xff]  ;;  %v361_v42 = vld [vmem:[#allocation7 + $0x4a0] sm:$0xff]  ;;  %v5807_v44 = vpack.c.bf16 %v347_v36, %v344_v35  ;;  %v125_v31 = vlaneseq }
  0x62   :  { %4644 = vmatpush1.bf16.msra.mxu0 %v4643_v54  ;;  %v354_v40 = vld [vmem:[#allocation7 + $0x378] sm:$0xff]  ;;  %v350_v45 = vld [vmem:[#allocation7 + $0x268] sm:$0xff]  ;;  %v72_v48 = vld [vmem:[#allocation2 + $0x18] sm:$0xff] }
  0x63   :  { %4646 = vmatprep.subr.bf16.mxu0 %v4645_v57  ;;  %4672 = vmatpush3.bf16.msra.mxu1 %v4669_v53  ;;  %v353_v46 = vld [vmem:[#allocation7 + $0x2f8] sm:$0xff]  ;;  %v5811_v47 = vpack.c.bf16 %v357_v41, %v354_v40  ;;  %v363_v51 = vld [vmem:[#allocation7 + $0x528] sm:$0xff]  ;;  %v367_v53 = vld [vmem:[#allocation7 + $0x5c0] sm:$0xff]  ;;  %v5910_v32 = vshrl.u32 %v125_v31, 7 }
  0x64   :  { %4674 = vmatprep.subr.bf16.mxu1 %v4673_v62  ;;  %v360_v50 = vld [vmem:[#allocation7 + $0x498] sm:$0xff]  ;;  %v73_v52 = vld [vmem:[#allocation2 + $0x20] sm:$0xff]  ;;  %v370_v54 = vld [vmem:[#allocation7 + $0x650] sm:$0xff]  ;;  %v5818_v55 = vpack.c.bf16 %v353_v46, %v350_v45 }
  0x65   :  { %v356_v56 = vld [vmem:[#allocation7 + $0x388] sm:$0xff]  ;;  %v359_v57 = vld [vmem:[#allocation7 + $0x418] sm:$0xff]  ;;  %v5822_v58 = vpack.c.bf16 %v363_v51, %v360_v50  ;;  %v74_v59 = vld [vmem:[#allocation2 + $0x28] sm:$0xff]  ;;  %v5826_v60 = vpack.c.bf16 %v370_v54, %v367_v53  ;;  %v8836_v35 = vsub.s32 2, %v5910_v32  ;;  %v5926_v54 = vsub.s32 0, %v5910_v32 }
  0x66   :  { %4648 = vmatpush1.bf16.msra.mxu0 %v4647_v63  ;;  %v366_v61 = vld [vmem:[#allocation7 + $0x5b8] sm:$0xff]  ;;  %v373_v63 = vld [vmem:[#allocation7 + $0x6e0] sm:$0xff]  ;;  %v376_v1 = vld [vmem:[#allocation7 + $0x770] sm:$0xff]  ;;  %v5829_v2 = vpack.c.bf16 %v359_v57, %v356_v56 }
  0x67   :  { %4650 = vmatprep.subr.bf16.mxu0 %v4649_v3  ;;  %4676 = vmatpush3.bf16.msra.mxu1 %v4673_v62  ;;  %v369_v62 = vld [vmem:[#allocation7 + $0x648] sm:$0xff]  ;;  %v365_v4 = vld [vmem:[#allocation7 + $0x538] sm:$0xff]  ;;  %v5839_v6 = vpack.c.bf16 %v376_v1, %v373_v63  ;;  %v382_v10 = vld [vmem:[#allocation7 + $0x890] sm:$0xff]  ;;  %8979 = vst [vmem:[#allocation15_spill] sm:$0xff] %v5926_v54 }
  0x68   :  { %4678 = vmatprep.subr.bf16.mxu1 %v4677_v8  ;;  %v362_v3 = vld [vmem:[#allocation7 + $0x4a8] sm:$0xff]  ;;  %v5835_v5 = vpack.c.bf16 %v369_v62, %v366_v61  ;;  %v372_v7 = vld [vmem:[#allocation7 + $0x6d8] sm:$0xff]  ;;  %v123_v36 = vld [vmem:[#allocation8] sm:$0x7]  ;;  %v5933_v62 = vsub.s32 1, %v5910_v32 }
  0x69   :  { %v5842_v11 = vpack.c.bf16 %v365_v4, %v362_v3  ;;  %v368_v13 = vld [vmem:[#allocation7 + $0x5c8] sm:$0xff]  ;;  %v371_v14 = vld [vmem:[#allocation7 + $0x658] sm:$0xff]  ;;  %v5929_v56 = vrot.slane %v123_v36, %v5926_v54  ;;  %v6348_v54 = vadd.s32 40, %v5910_v32 }
  0x6a   :  { %4652 = vmatpush1.bf16.msra.mxu0 %v4651_v9  ;;  %v379_v9 = vld [vmem:[#allocation7 + $0x800] sm:$0xff]  ;;  %v381_v20 = vld [vmem:[#allocation7 + $0x888] sm:$0xff]  ;;  %v5853_v21 = vpack.c.bf16 %v371_v14, %v368_v13  ;;  %v377_v23 = vld [vmem:[#allocation7 + $0x778] sm:$0xff]  ;;  %8980 = vst [vmem:[#allocation16_spill] sm:$0xff] %v5933_v62  ;;  %v5936_v1 = vrot.slane %v123_v36, %v5933_v62 }
  0x6b   :  { %4686 = vmatprep.subr.bf16.mxu0 %v5781_v12  ;;  %4680 = vmatpush3.bf16.msra.mxu1 %v4677_v8  ;;  %v375_v8 = vld [vmem:[#allocation7 + $0x768] sm:$0xff]  ;;  %v5850_v16 = vpack.c.bf16 %v382_v10, %v379_v9  ;;  %v383_v29 = vld [vmem:[#allocation7 + $0x898] sm:$0xff]  ;;  %v6329_v62 = vld [vmem:[#allocation7 + $0x110] sm:$0xff]  ;;  %8991 = vst [vmem:[#allocation26_spill] sm:$0xff] %v6348_v54 }
  0x6c   :  { %4682 = vmatprep.subr.bf16.mxu1 %v4681_v17  ;;  %v5846_v15 = vpack.c.bf16 %v375_v8, %v372_v7  ;;  %v374_v22 = vld [vmem:[#allocation7 + $0x6e8] sm:$0xff]  ;;  %v5939_v8 = vld [vmem:[#allocation8 + $0x5] ss:$0 sm:$0xff] }
  0x6d   :  { %205 = vmatmul.mubr.f32.vlgmr.msra.gmra.mrb[0].mxu0 %v5778_v43  ;;  %v364_v43 = vld [vmem:[#allocation7 + $0x530] sm:$0xff]  ;;  %v5861_v25 = vpack.c.bf16 %v377_v23, %v374_v22 }
  0x6e   :  { %4688 = vmatpush1.bf16.msra.mxu0 %v5783_v18  ;;  %210 = vmatprep.mubr.f32.mxu0 %v8837_v0  ;;  %v5815_v49 = vpack.c.bf16 %v364_v43, %v361_v42 }
  0x6f   :  { %4690 = vmatprep.subr.bf16.mxu0 %v5786_v19  ;;  %4684 = vmatpush3.bf16.msra.mxu1 %v4681_v17  ;;  %v378_v17 = vld [vmem:[#allocation7 + $0x7f8] sm:$0xff] }
  0x70   :  { %4717 = vmatprep.subr.bf16.mxu1 %v5693_v34  ;;  %v5857_v24 = vpack.c.bf16 %v381_v20, %v378_v17 }
  0x71   :  { %211 = vmatmul.mubr.f32.gmra.mrb[2].mxu0 %v70_v27 }
  0x72   :  { %4692 = vmatpush1.bf16.msra.mxu0 %v5790_v26  ;;  %216 = vmatprep.mubr.f32.mxu0 %v8837_v0 }
  0x73   :  { %4694 = vmatprep.subr.bf16.mxu0 %v5794_v28  ;;  %4333 = vmatmul.mubr.f32.vlgmr.msra.gmra.mrb[0].mxu1 %v70_v27  ;;  %v380_v27 = vld [vmem:[#allocation7 + $0x808] sm:$0xff] }
  0x74   :  { %4719 = vmatpush3.bf16.msra.mxu1 %v5796_v33  ;;  %4335 = vmatprep.mubr.f32.mxu1 %v71_v38  ;;  %v5867_v30 = vpack.c.bf16 %v383_v29, %v380_v27 }
  0x75   :  { %217 = vmatmul.mubr.f32.gmra.mrb[4].mxu0 %v71_v38  ;;  %4720 = vmatprep.subr.bf16.mxu1 %v5693_v34  ;;  %v136_v38 = vrot.slane %v123_v36, %v8836_v35  ;;  %v6277_v35 = vadd.s32 16, %v5910_v32 }
  0x76   :  { %4696 = vmatpush1.bf16.msra.mxu0 %v5800_v37  ;;  %222 = vmatprep.mubr.f32.mxu0 %v8837_v0 }
  0x77   :  { %4698 = vmatprep.subr.bf16.mxu0 %v5804_v39  ;;  %4336 = vmatmul.mubr.f32.gmra.mrb[2].mxu1 %v72_v48  ;;  %8984 = vst [vmem:[#allocation20_spill] sm:$0xff] %v6277_v35 }
  0x78   :  { %4722 = vmatpush3.bf16.msra.mxu1 %v5807_v44  ;;  %4338 = vmatprep.mubr.f32.mxu1 %v73_v52 }
  0x79   :  { %223 = vmatmul.mubr.f32.gmra.mrb[6].mxu0 %v72_v48  ;;  %4723 = vmatprep.subr.bf16.mxu1 %v5693_v34 }
  0x7a   :  { %4700 = vmatpush1.bf16.msra.mxu0 %v5811_v47  ;;  %228 = vmatprep.mubr.f32.mxu0 %v8837_v0 }
  0x7b   :  { %4702 = vmatprep.subr.bf16.mxu0 %v5815_v49  ;;  %4339 = vmatmul.mubr.f32.gmra.mrb[4].mxu1 %v74_v59 }
  0x7c   :  { %4725 = vmatpush3.bf16.msra.mxu1 %v5818_v55  ;;  %4373 = vmatprep.mubr.msk.f32.mxu1 %vm5694_vm0, %v8837_v0 }
  0x7d   :  { %229 = vmatmul.mubr.f32.gmra.mrb[8].mxu0 %v73_v52  ;;  %4726 = vmatprep.subr.bf16.mxu1 %v5693_v34 }
  0x7e   :  { %4704 = vmatpush1.bf16.msra.mxu0 %v5822_v58  ;;  %234 = vmatprep.mubr.f32.mxu0 %v8837_v0 }
  0x7f   :  { %4706 = vmatprep.subr.bf16.mxu0 %v5826_v60 }
  0x80   :  { %4728 = vmatpush3.bf16.msra.mxu1 %v5829_v2 }
  0x81   :  { %235 = vmatmul.mubr.f32.gmra.mrb[10].mxu0 %v74_v59  ;;  %4729 = vmatprep.subr.bf16.mxu1 %v5693_v34 }
  0x82   :  { %4708 = vmatpush1.bf16.msra.mxu0 %v5835_v5  ;;  %455 = vmatprep.mubr.f32.mxu0 %v8837_v0 }
  0x83   :  { %4710 = vmatprep.subr.bf16.mxu0 %v5839_v6 }
  0x84   :  { %4731 = vmatpush3.bf16.msra.mxu1 %v5842_v11 }
  0x85   :  { %4732 = vmatprep.subr.bf16.mxu1 %v5693_v34 }
  0x86   :  { %4712 = vmatpush1.bf16.msra.mxu0 %v5846_v15 }
  0x87   :  { %4714 = vmatprep.subr.bf16.mxu0 %v5850_v16 }
  0x88   :  { %4734 = vmatpush3.bf16.msra.mxu1 %v5853_v21 }
  0x89   :  { %4735 = vmatprep.subr.bf16.mxu1 %v5693_v34 }
  0x8a   :  { %4716 = vmatpush1.bf16.msra.mxu0 %v5857_v24 }
  0x8b   :  { %4742 = vmatprep.subr.bf16.mxu0 %v5781_v12 }
  0x8c   :  { %4737 = vmatpush3.bf16.msra.mxu1 %v5861_v25 }
  0x8d   :  { %456 = vmatmul.mubr.f32.vlgmr.msra.gmra.mrb[0].mxu0 %v8837_v0  ;;  %4738 = vmatprep.subr.bf16.mxu1 %v5693_v34 }
  0x8e   :  { %4744 = vmatpush1.bf16.msra.mxu0 %v5783_v18  ;;  %613 = vmatprep.mubr.f32.mxu0 %v8837_v0 }
  0x8f   :  { %4746 = vmatprep.subr.bf16.mxu0 %v5786_v19 }
  0x90   :  { %4740 = vmatpush3.bf16.msra.mxu1 %v5867_v30 }
  0x91   :  { %4773 = vmatprep.subr.bf16.mxu1 %v5693_v34 }
  0x92   :  { %4748 = vmatpush1.bf16.msra.mxu0 %v5790_v26 }
  0x93   :  { %4374 = vmatmul.mubr.f32.vlgmr.msra.gmra.mrb[6].mxu1 %v8837_v0  ;;  %4750 = vmatprep.subr.bf16.mxu0 %v5794_v28 }
  0x94   :  { %4775 = vmatpush3.bf16.msra.mxu1 %v5796_v33  ;;  %4408 = vmatprep.mubr.msk.f32.mxu1 %vm5694_vm0, %v8837_v0 }
  0x95   :  { %4776 = vmatprep.subr.bf16.mxu1 %v5693_v34 }
  0x96   :  { %4752 = vmatpush1.bf16.msra.mxu0 %v5800_v37 }
  0x97   :  { %4754 = vmatprep.subr.bf16.mxu0 %v5804_v39 }
  0x98   :  { %4778 = vmatpush3.bf16.msra.mxu1 %v5807_v44 }
  0x99   :  { %4779 = vmatprep.subr.bf16.mxu1 %v5693_v34 }
  0x9a   :  { %4756 = vmatpush1.bf16.msra.mxu0 %v5811_v47 }
  0x9b   :  { %4758 = vmatprep.subr.bf16.mxu0 %v5815_v49 }
  0x9c   :  { %4781 = vmatpush3.bf16.msra.mxu1 %v5818_v55 }
  0x9d   :  { %4782 = vmatprep.subr.bf16.mxu1 %v5693_v34 }
  0x9e   :  { %4760 = vmatpush1.bf16.msra.mxu0 %v5822_v58 }
  0x9f   :  { %4762 = vmatprep.subr.bf16.mxu0 %v5826_v60 }
  0xa0   :  { %4784 = vmatpush3.bf16.msra.mxu1 %v5829_v2 }
  0xa1   :  { %4785 = vmatprep.subr.bf16.mxu1 %v5693_v34 }
  0xa2   :  { %4764 = vmatpush1.bf16.msra.mxu0 %v5835_v5 }
  0xa3   :  { %4766 = vmatprep.subr.bf16.mxu0 %v5839_v6 }
  0xa4   :  { %4787 = vmatpush3.bf16.msra.mxu1 %v5842_v11 }
  0xa5   :  { %4788 = vmatprep.subr.bf16.mxu1 %v5693_v34 }
  0xa6   :  { %4768 = vmatpush1.bf16.msra.mxu0 %v5846_v15 }
  0xa7   :  { %4770 = vmatprep.subr.bf16.mxu0 %v5850_v16 }
  0xa8   :  { %4790 = vmatpush3.bf16.msra.mxu1 %v5853_v21 }
  0xa9   :  { %4791 = vmatprep.subr.bf16.mxu1 %v5693_v34 }
  0xaa   :  { %4772 = vmatpush1.bf16.msra.mxu0 %v5857_v24 }
  0xab   :  { %4798 = vmatprep.subr.bf16.mxu0 %v5781_v12 }
  0xac   :  { %4793 = vmatpush3.bf16.msra.mxu1 %v5861_v25 }
  0xad   :  { %4794 = vmatprep.subr.bf16.mxu1 %v5693_v34 }
  0xb0   :  { %4796 = vmatpush3.bf16.msra.mxu1 %v5867_v30 }
  0xb1   :  { %4829 = vmatprep.subr.bf16.mxu1 %v5693_v34 }
 0x146   :  { %v4334_v40 = vpop.f32.mrb[0].mxu1 }
 0x147   :  { %v5915_v41 = vadd.f32 %v4334_v40, %v136_v38  ;;  %v307_v42 = vpop.f32.mrb[1].mxu1 }
 0x148   :  { %v308_v20 = vadd.f32 %v307_v42, %v136_v38 }
 0x14a   :  { %v4337_v43 = vpop.f32.mrb[2].mxu1 }
 0x14b   :  { %v5917_v45 = vadd.f32 %v4337_v43, %v136_v38  ;;  %v317_v46 = vpop.f32.mrb[3].mxu1 }
 0x14c   :  { %v5919_v48 = vadd.f32 %v317_v46, %v136_v38 }
 0x14e   :  { %v4340_v50 = vpop.f32.mrb[4].mxu1 }
 0x14f   :  { %v5921_v51 = vadd.f32 %v4340_v50, %v136_v38  ;;  %v327_v52 = vpop.f32.mrb[5].mxu1 }
 0x150   :  { %v5923_v53 = vadd.f32 %v327_v52, %v136_v38 }
 0x160   :  { %v457_v57 = vpop.f32.mrb[0].mxu0 }
 0x161   :  { %v5485_v59 = vadd.f32 %v457_v57, %v5929_v56  ;;  %v459_v61 = vpop.f32.mrb[1].mxu0 }
 0x162   :  { %v5486_v7 = vadd.f32 %v459_v61, %v5936_v1 }
 0x163   :  { %v534_v63 = vmul.f32 0.5, %v5485_v59 }
 0x164   :  { %v535_v9 = vmul.f32 0.5, %v5486_v7 }
 0x165   :  { %5522 = vtanh.f32 %v534_v63 }
 0x166   :  { %v528_v3 = vpop.f32.mrb[6].mxu1  ;;  %5524 = vtanh.f32 %v535_v9 }
 0x167   :  { %v4375_v4 = vpop.f32.mrb[7].mxu1  ;;  %v542_v14 = vadd.f32 %v5939_v8, %v528_v3 }
 0x16f   :  { %v5523_v10 = vpop.eup %5522 }
 0x170   :  { %v538_v13 = vmul.f32 0.5, %v5523_v10  ;;  %v5525_v27 = vpop.eup %5524 }
 0x171   :  { %v539_v29 = vmul.f32 0.5, %v5525_v27 }
 0x172   :  { %v540_v17 = vadd.f32 0.5, %v538_v13 }
 0x173   :  { %v541_v40 = vadd.f32 0.5, %v539_v29 }
 0x174   :  { %v543_v22 = vmul.f32 %v542_v14, %v540_v17 }
 0x176   :  { %v544_v23 = vadd.f32 %v543_v22, %v308_v20 }
 0x178   :  { %5526 = vtanh.f32 %v544_v23 }
 0x182   :  { %v5527_v36 = vpop.eup %5526 }
 0x183   :  { %v546_v43 = vsub.f32 0.0, %v5527_v36 }
 0x185   :  { %v547_v46 = vmul.f32 %v546_v43, %v541_v40 }
 0x187   :  { %v548_v50 = vadd.f32 %v5527_v36, %v547_v46 }
 0x189   :  { %614 = vmatmul.mubr.f32.vlgmr.msra.gmra.mrb[2].mxu0 %v548_v50  ;;  %4409 = vmatmul.mubr.f32.vlgmr.msra.gmra.mrb[8].mxu1 %v548_v50 }
 0x18a   :  { %4800 = vmatpush1.bf16.msra.mxu0 %v5783_v18  ;;  %4831 = vmatpush3.bf16.msra.mxu1 %v5796_v33 }
 0x18b   :  { %4802 = vmatprep.subr.bf16.mxu0 %v5786_v19  ;;  %4832 = vmatprep.subr.bf16.mxu1 %v5693_v34 }
 0x18c   :  { %771 = vmatprep.mubr.f32.mxu0 %v8837_v0  ;;  %4443 = vmatprep.mubr.msk.f32.mxu1 %vm5694_vm0, %v8837_v0 }
 0x18e   :  { %4804 = vmatpush1.bf16.msra.mxu0 %v5790_v26  ;;  %4834 = vmatpush3.bf16.msra.mxu1 %v5807_v44 }
 0x18f   :  { %4806 = vmatprep.subr.bf16.mxu0 %v5794_v28  ;;  %4835 = vmatprep.subr.bf16.mxu1 %v5693_v34 }
 0x192   :  { %4808 = vmatpush1.bf16.msra.mxu0 %v5800_v37  ;;  %4837 = vmatpush3.bf16.msra.mxu1 %v5818_v55 }
 0x193   :  { %4810 = vmatprep.subr.bf16.mxu0 %v5804_v39  ;;  %4838 = vmatprep.subr.bf16.mxu1 %v5693_v34 }
 0x196   :  { %4812 = vmatpush1.bf16.msra.mxu0 %v5811_v47  ;;  %4840 = vmatpush3.bf16.msra.mxu1 %v5829_v2 }
 0x197   :  { %4814 = vmatprep.subr.bf16.mxu0 %v5815_v49  ;;  %4841 = vmatprep.subr.bf16.mxu1 %v5693_v34 }
 0x19a   :  { %4816 = vmatpush1.bf16.msra.mxu0 %v5822_v58  ;;  %4843 = vmatpush3.bf16.msra.mxu1 %v5842_v11 }
 0x19b   :  { %4818 = vmatprep.subr.bf16.mxu0 %v5826_v60  ;;  %4844 = vmatprep.subr.bf16.mxu1 %v5693_v34 }
 0x19e   :  { %4820 = vmatpush1.bf16.msra.mxu0 %v5835_v5  ;;  %4846 = vmatpush3.bf16.msra.mxu1 %v5853_v21 }
 0x19f   :  { %4822 = vmatprep.subr.bf16.mxu0 %v5839_v6  ;;  %4847 = vmatprep.subr.bf16.mxu1 %v5693_v34 }
 0x1a2   :  { %4824 = vmatpush1.bf16.msra.mxu0 %v5846_v15  ;;  %4849 = vmatpush3.bf16.msra.mxu1 %v5861_v25 }
 0x1a3   :  { %4826 = vmatprep.subr.bf16.mxu0 %v5850_v16  ;;  %4850 = vmatprep.subr.bf16.mxu1 %v5693_v34 }
 0x1a6   :  { %4828 = vmatpush1.bf16.msra.mxu0 %v5857_v24  ;;  %4852 = vmatpush3.bf16.msra.mxu1 %v5867_v30 }
 0x1a7   :  { %4854 = vmatprep.subr.bf16.mxu0 %v5781_v12  ;;  %4885 = vmatprep.subr.bf16.mxu1 %v5693_v34 }
 0x25c   :  { %v615_v38 = vpop.f32.mrb[2].mxu0  ;;  %v686_v42 = vpop.f32.mrb[8].mxu1 }
 0x25d   :  { %v5487_v52 = vadd.f32 %v615_v38, %v5929_v56  ;;  %v617_v57 = vpop.f32.mrb[3].mxu0  ;;  %v4410_v59 = vpop.f32.mrb[9].mxu1  ;;  %v700_v10 = vadd.f32 %v5939_v8, %v686_v42 }
 0x25e   :  { %v5488_v63 = vadd.f32 %v617_v57, %v5936_v1 }
 0x25f   :  { %v692_v61 = vmul.f32 0.5, %v5487_v52 }
 0x260   :  { %v693_v3 = vmul.f32 0.5, %v5488_v63 }
 0x261   :  { %5528 = vtanh.f32 %v692_v61 }
 0x262   :  { %5530 = vtanh.f32 %v693_v3 }
 0x26b   :  { %v5529_v4 = vpop.eup %5528 }
 0x26c   :  { %v696_v7 = vmul.f32 0.5, %v5529_v4  ;;  %v5531_v17 = vpop.eup %5530 }
 0x26d   :  { %v697_v20 = vmul.f32 0.5, %v5531_v17 }
 0x26e   :  { %v698_v9 = vadd.f32 0.5, %v696_v7 }
 0x26f   :  { %v699_v23 = vadd.f32 0.5, %v697_v20 }
 0x270   :  { %v701_v13 = vmul.f32 %v700_v10, %v698_v9 }
 0x272   :  { %v702_v14 = vadd.f32 %v701_v13, %v5915_v41 }
 0x274   :  { %5532 = vtanh.f32 %v702_v14 }
 0x27e   :  { %v5533_v22 = vpop.eup %5532 }
 0x27f   :  { %v704_v27 = vsub.f32 %v548_v50, %v5533_v22 }
 0x281   :  { %v705_v29 = vmul.f32 %v704_v27, %v699_v23 }
 0x283   :  { %v706_v36 = vadd.f32 %v5533_v22, %v705_v29 }
 0x285   :  { %772 = vmatmul.mubr.f32.vlgmr.msra.gmra.mrb[4].mxu0 %v706_v36  ;;  %4444 = vmatmul.mubr.f32.vlgmr.msra.gmra.mrb[10].mxu1 %v706_v36 }
 0x286   :  { %4856 = vmatpush1.bf16.msra.mxu0 %v5783_v18  ;;  %4887 = vmatpush3.bf16.msra.mxu1 %v5796_v33 }
 0x287   :  { %4858 = vmatprep.subr.bf16.mxu0 %v5786_v19  ;;  %4888 = vmatprep.subr.bf16.mxu1 %v5693_v34 }
 0x288   :  { %929 = vmatprep.mubr.f32.mxu0 %v8837_v0  ;;  %4478 = vmatprep.mubr.msk.f32.mxu1 %vm5694_vm0, %v8837_v0 }
 0x28a   :  { %4860 = vmatpush1.bf16.msra.mxu0 %v5790_v26  ;;  %4890 = vmatpush3.bf16.msra.mxu1 %v5807_v44 }
 0x28b   :  { %4862 = vmatprep.subr.bf16.mxu0 %v5794_v28  ;;  %4891 = vmatprep.subr.bf16.mxu1 %v5693_v34 }
 0x28e   :  { %4864 = vmatpush1.bf16.msra.mxu0 %v5800_v37  ;;  %4893 = vmatpush3.bf16.msra.mxu1 %v5818_v55 }
 0x28f   :  { %4866 = vmatprep.subr.bf16.mxu0 %v5804_v39  ;;  %4894 = vmatprep.subr.bf16.mxu1 %v5693_v34 }
 0x292   :  { %4868 = vmatpush1.bf16.msra.mxu0 %v5811_v47  ;;  %4896 = vmatpush3.bf16.msra.mxu1 %v5829_v2 }
 0x293   :  { %4870 = vmatprep.subr.bf16.mxu0 %v5815_v49  ;;  %4897 = vmatprep.subr.bf16.mxu1 %v5693_v34 }
 0x296   :  { %4872 = vmatpush1.bf16.msra.mxu0 %v5822_v58  ;;  %4899 = vmatpush3.bf16.msra.mxu1 %v5842_v11 }
 0x297   :  { %4874 = vmatprep.subr.bf16.mxu0 %v5826_v60  ;;  %4900 = vmatprep.subr.bf16.mxu1 %v5693_v34 }
 0x29a   :  { %4876 = vmatpush1.bf16.msra.mxu0 %v5835_v5  ;;  %4902 = vmatpush3.bf16.msra.mxu1 %v5853_v21 }
 0x29b   :  { %4878 = vmatprep.subr.bf16.mxu0 %v5839_v6  ;;  %4903 = vmatprep.subr.bf16.mxu1 %v5693_v34 }
 0x29e   :  { %4880 = vmatpush1.bf16.msra.mxu0 %v5846_v15  ;;  %4905 = vmatpush3.bf16.msra.mxu1 %v5861_v25 }
 0x29f   :  { %4882 = vmatprep.subr.bf16.mxu0 %v5850_v16  ;;  %4906 = vmatprep.subr.bf16.mxu1 %v5693_v34 }
 0x2a2   :  { %4884 = vmatpush1.bf16.msra.mxu0 %v5857_v24  ;;  %4908 = vmatpush3.bf16.msra.mxu1 %v5867_v30 }
 0x2a3   :  { %4910 = vmatprep.subr.bf16.mxu0 %v5781_v12  ;;  %4941 = vmatprep.subr.bf16.mxu1 %v5693_v34 }
 0x358   :  { %v773_v41 = vpop.f32.mrb[4].mxu0  ;;  %v844_v40 = vpop.f32.mrb[10].mxu1 }
 0x359   :  { %v5489_v43 = vadd.f32 %v773_v41, %v5929_v56  ;;  %v775_v46 = vpop.f32.mrb[5].mxu0  ;;  %v4445_v50 = vpop.f32.mrb[11].mxu1  ;;  %v858_v63 = vadd.f32 %v5939_v8, %v844_v40 }
 0x35a   :  { %v5490_v42 = vadd.f32 %v775_v46, %v5936_v1 }
 0x35b   :  { %v850_v38 = vmul.f32 0.5, %v5489_v43 }
 0x35c   :  { %v851_v52 = vmul.f32 0.5, %v5490_v42 }
 0x35d   :  { %5534 = vtanh.f32 %v850_v38 }
 0x35e   :  { %5536 = vtanh.f32 %v851_v52 }
 0x367   :  { %v5535_v57 = vpop.eup %5534 }
 0x368   :  { %v854_v59 = vmul.f32 0.5, %v5535_v57  ;;  %v5537_v7 = vpop.eup %5536 }
 0x369   :  { %v855_v9 = vmul.f32 0.5, %v5537_v7  ;;  %v1342_v7 = vld [vmem:[#allocation7 + $0x1e0] sm:$0xff] }
 0x36a   :  { %v856_v61 = vadd.f32 0.5, %v854_v59 }
 0x36b   :  { %v857_v13 = vadd.f32 0.5, %v855_v9 }
 0x36c   :  { %v859_v3 = vmul.f32 %v858_v63, %v856_v61 }
 0x36e   :  { %v860_v4 = vadd.f32 %v859_v3, %v5919_v48 }
 0x370   :  { %5538 = vtanh.f32 %v860_v4 }
 0x37a   :  { %v5539_v10 = vpop.eup %5538 }
 0x37b   :  { %v862_v14 = vsub.f32 %v706_v36, %v5539_v10 }
 0x37d   :  { %v863_v17 = vmul.f32 %v862_v14, %v857_v13  ;;  %v1344_v13 = vld [vmem:[#allocation7 + $0x300] sm:$0xff] }
 0x37f   :  { %v864_v20 = vadd.f32 %v5539_v10, %v863_v17  ;;  %v1343_v10 = vld [vmem:[#allocation7 + $0x270] sm:$0xff] }
 0x380   :  { %v5028_v14 = vpack.c.bf16 %v1344_v13, %v1343_v10  ;;  %v1345_v17 = vld [vmem:[#allocation7 + $0x390] sm:$0xff]  ;;  %v1444_v13 = vld [vmem:[#allocation7 + $0x668] sm:$0xff] }
 0x381   :  { %930 = vmatmul.mubr.f32.vlgmr.msra.gmra.mrb[6].mxu0 %v864_v20  ;;  %4479 = vmatmul.mubr.f32.vlgmr.msra.gmra.mrb[12].mxu1 %v864_v20 }
 0x382   :  { %4912 = vmatpush1.bf16.msra.mxu0 %v5783_v18  ;;  %4943 = vmatpush3.bf16.msra.mxu1 %v5796_v33 }
 0x383   :  { %4914 = vmatprep.subr.bf16.mxu0 %v5786_v19  ;;  %4944 = vmatprep.subr.bf16.mxu1 %v5693_v34 }
 0x384   :  { %1087 = vmatprep.mubr.f32.mxu0 %v8837_v0  ;;  %4513 = vmatprep.mubr.msk.f32.mxu1 %vm5694_vm0, %v8837_v0 }
 0x386   :  { %4916 = vmatpush1.bf16.msra.mxu0 %v5790_v26  ;;  %4946 = vmatpush3.bf16.msra.mxu1 %v5807_v44 }
 0x387   :  { %4918 = vmatprep.subr.bf16.mxu0 %v5794_v28  ;;  %4947 = vmatprep.subr.bf16.mxu1 %v5693_v34 }
 0x38a   :  { %4920 = vmatpush1.bf16.msra.mxu0 %v5800_v37  ;;  %4949 = vmatpush3.bf16.msra.mxu1 %v5818_v55 }
 0x38b   :  { %4922 = vmatprep.subr.bf16.mxu0 %v5804_v39  ;;  %4950 = vmatprep.subr.bf16.mxu1 %v5693_v34 }
 0x38e   :  { %4924 = vmatpush1.bf16.msra.mxu0 %v5811_v47  ;;  %4952 = vmatpush3.bf16.msra.mxu1 %v5829_v2 }
 0x38f   :  { %4926 = vmatprep.subr.bf16.mxu0 %v5815_v49  ;;  %4953 = vmatprep.subr.bf16.mxu1 %v5693_v34 }
 0x392   :  { %4928 = vmatpush1.bf16.msra.mxu0 %v5822_v58  ;;  %4955 = vmatpush3.bf16.msra.mxu1 %v5842_v11 }
 0x393   :  { %4930 = vmatprep.subr.bf16.mxu0 %v5826_v60  ;;  %4956 = vmatprep.subr.bf16.mxu1 %v5693_v34 }
 0x396   :  { %4932 = vmatpush1.bf16.msra.mxu0 %v5835_v5  ;;  %4958 = vmatpush3.bf16.msra.mxu1 %v5853_v21 }
 0x397   :  { %4934 = vmatprep.subr.bf16.mxu0 %v5839_v6  ;;  %4959 = vmatprep.subr.bf16.mxu1 %v5693_v34 }
 0x39a   :  { %4936 = vmatpush1.bf16.msra.mxu0 %v5846_v15  ;;  %4961 = vmatpush3.bf16.msra.mxu1 %v5861_v25 }
 0x39b   :  { %4938 = vmatprep.subr.bf16.mxu0 %v5850_v16  ;;  %4962 = vmatprep.subr.bf16.mxu1 %v5693_v34 }
 0x39e   :  { %4940 = vmatpush1.bf16.msra.mxu0 %v5857_v24  ;;  %4964 = vmatpush3.bf16.msra.mxu1 %v5867_v30 }
 0x39f   :  { %4966 = vmatprep.subr.bf16.mxu0 %v5781_v12  ;;  %4997 = vmatprep.subr.bf16.mxu1 %v5693_v34 }
 0x454   :  { %v931_v48 = vpop.f32.mrb[6].mxu0  ;;  %v1002_v22 = vpop.f32.mrb[12].mxu1 }
 0x455   :  { %v5491_v23 = vadd.f32 %v931_v48, %v5929_v56  ;;  %v933_v27 = vpop.f32.mrb[7].mxu0  ;;  %v4480_v29 = vpop.f32.mrb[13].mxu1  ;;  %v1016_v38 = vadd.f32 %v5939_v8, %v1002_v22  ;;  %v1347_v22 = vld [vmem:[#allocation7 + $0x4b0] sm:$0xff] }
 0x456   :  { %v5492_v41 = vadd.f32 %v933_v27, %v5936_v1  ;;  %v1349_v29 = vld [vmem:[#allocation7 + $0x5d0] sm:$0xff] }
 0x457   :  { %v1008_v36 = vmul.f32 0.5, %v5491_v23  ;;  %v1348_v23 = vld [vmem:[#allocation7 + $0x540] sm:$0xff] }
 0x458   :  { %v1009_v40 = vmul.f32 0.5, %v5492_v41  ;;  %v5034_v27 = vpack.c.bf16 %v1348_v23, %v1347_v22  ;;  %v1537_v23 = vld [vmem:[#allocation7 + $0xd8] sm:$0xff] }
 0x459   :  { %5540 = vtanh.f32 %v1008_v36  ;;  %v1350_v36 = vld [vmem:[#allocation7 + $0x660] sm:$0xff] }
 0x45a   :  { %5542 = vtanh.f32 %v1009_v40  ;;  %v5037_v41 = vpack.c.bf16 %v1350_v36, %v1349_v29  ;;  %v1351_v40 = vld [vmem:[#allocation7 + $0x6f0] sm:$0xff]  ;;  %v1539_v36 = vld [vmem:[#allocation7 + $0xe8] sm:$0xff] }
 0x463   :  { %v5541_v43 = vpop.eup %5540 }
 0x464   :  { %v1012_v46 = vmul.f32 0.5, %v5541_v43  ;;  %v5543_v52 = vpop.eup %5542  ;;  %v1352_v43 = vld [vmem:[#allocation7 + $0x780] sm:$0xff] }
 0x465   :  { %v1013_v57 = vmul.f32 0.5, %v5543_v52  ;;  %v1434_v52 = vld [vmem:[#allocation7 + $0xc8] sm:$0xff] }
 0x466   :  { %v1014_v50 = vadd.f32 0.5, %v1012_v46  ;;  %v5040_v46 = vpack.c.bf16 %v1352_v43, %v1351_v40  ;;  %v1536_v40 = vld [vmem:[#allocation7 + $0xd0] sm:$0xff] }
 0x467   :  { %v1015_v61 = vadd.f32 0.5, %v1013_v57  ;;  %v1435_v57 = vld [vmem:[#allocation7 + $0x158] sm:$0xff] }
 0x468   :  { %v1017_v12 = vmul.f32 %v1016_v38, %v1014_v50  ;;  %v1353_v50 = vld [vmem:[#allocation7 + $0x810] sm:$0xff]  ;;  %v1354_v38 = vld [vmem:[#allocation7 + $0x8a0] sm:$0xff] }
 0x46a   :  { %v1018_v42 = vadd.f32 %v1017_v12, %v5917_v45  ;;  %v5043_v12 = vpack.c.bf16 %v1354_v38, %v1353_v50  ;;  %v1547_v50 = vld [vmem:[#allocation7 + $0x168] sm:$0xff]  ;;  %v1557_v38 = vld [vmem:[#allocation7 + $0x1f8] sm:$0xff] }
 0x46c   :  { %5544 = vtanh.f32 %v1018_v42  ;;  %v1433_v42 = vld [vmem:[#allocation7 + $0x38] sm:$0xff] }
 0x476   :  { %v5545_v59 = vpop.eup %5544 }
 0x477   :  { %v1020_v63 = vsub.f32 %v864_v20, %v5545_v59  ;;  %v1346_v20 = vld [vmem:[#allocation7 + $0x420] sm:$0xff] }
 0x478   :  { %v5031_v48 = vpack.c.bf16 %v1346_v20, %v1345_v17  ;;  %v1446_v17 = vld [vmem:[#allocation7 + $0x788] sm:$0xff]  ;;  %v1447_v20 = vld [vmem:[#allocation7 + $0x818] sm:$0xff] }
 0x479   :  { %v1021_v3 = vmul.f32 %v1020_v63, %v1015_v61  ;;  %v1436_v61 = vld [vmem:[#allocation7 + $0x1e8] sm:$0xff] }
 0x47a   :  { %v5049_v63 = vpack.c.bf16 %v1436_v61, %v1435_v57 }
 0x47b   :  { %v1022_v4 = vadd.f32 %v5545_v59, %v1021_v3  ;;  %v5046_v59 = vpack.c.bf16 %v1434_v52, %v1433_v42  ;;  %v1437_v3 = vld [vmem:[#allocation7 + $0x278] sm:$0xff]  ;;  %v1546_v42 = vld [vmem:[#allocation7 + $0x160] sm:$0xff]  ;;  %v1556_v52 = vld [vmem:[#allocation7 + $0x1f0] sm:$0xff] }
 0x47c   :  { %v5075_v57 = vpack.c.bf16 %v1556_v52, %v1546_v42  ;;  %v1589_v42 = vld [vmem:[#allocation7 + $0x3b8] sm:$0xff]  ;;  %v1599_v52 = vld [vmem:[#allocation7 + $0x448] sm:$0xff] }
 0x47d   :  { %1088 = vmatmul.mubr.f32.vlgmr.msra.gmra.mrb[8].mxu0 %v1022_v4  ;;  %4514 = vmatmul.mubr.f32.vlgmr.msra.gmra.mrb[14].mxu1 %v1022_v4 }
 0x47e   :  { %4968 = vmatpush1.bf16.msra.mxu0 %v5783_v18  ;;  %4999 = vmatpush3.bf16.msra.mxu1 %v5796_v33 }
 0x47f   :  { %4970 = vmatprep.subr.bf16.mxu0 %v5786_v19  ;;  %5000 = vmatprep.subr.bf16.mxu1 %v5693_v34 }
 0x480   :  { %1245 = vmatprep.mubr.f32.mxu0 %v8837_v0  ;;  %4548 = vmatprep.mubr.msk.f32.mxu1 %vm5694_vm0, %v8837_v0 }
 0x482   :  { %4972 = vmatpush1.bf16.msra.mxu0 %v5790_v26  ;;  %5002 = vmatpush3.bf16.msra.mxu1 %v5807_v44 }
 0x483   :  { %4974 = vmatprep.subr.bf16.mxu0 %v5794_v28  ;;  %5003 = vmatprep.subr.bf16.mxu1 %v5693_v34 }
 0x486   :  { %4976 = vmatpush1.bf16.msra.mxu0 %v5800_v37  ;;  %5005 = vmatpush3.bf16.msra.mxu1 %v5818_v55 }
 0x487   :  { %4978 = vmatprep.subr.bf16.mxu0 %v5804_v39  ;;  %5006 = vmatprep.subr.bf16.mxu1 %v5693_v34 }
 0x48a   :  { %4980 = vmatpush1.bf16.msra.mxu0 %v5811_v47  ;;  %5008 = vmatpush3.bf16.msra.mxu1 %v5829_v2 }
 0x48b   :  { %4982 = vmatprep.subr.bf16.mxu0 %v5815_v49  ;;  %5009 = vmatprep.subr.bf16.mxu1 %v5693_v34 }
 0x48e   :  { %4984 = vmatpush1.bf16.msra.mxu0 %v5822_v58  ;;  %5011 = vmatpush3.bf16.msra.mxu1 %v5842_v11 }
 0x48f   :  { %4986 = vmatprep.subr.bf16.mxu0 %v5826_v60  ;;  %5012 = vmatprep.subr.bf16.mxu1 %v5693_v34 }
 0x492   :  { %4988 = vmatpush1.bf16.msra.mxu0 %v5835_v5  ;;  %5014 = vmatpush3.bf16.msra.mxu1 %v5853_v21 }
 0x493   :  { %4990 = vmatprep.subr.bf16.mxu0 %v5839_v6  ;;  %5015 = vmatprep.subr.bf16.mxu1 %v5693_v34 }
 0x496   :  { %4992 = vmatpush1.bf16.msra.mxu0 %v5846_v15  ;;  %5017 = vmatpush3.bf16.msra.mxu1 %v5861_v25  ;;  %v1339_v25 = vld [vmem:[#allocation7 + $0x30] sm:$0xff] }
 0x497   :  { %4994 = vmatprep.subr.bf16.mxu0 %v5850_v16  ;;  %5018 = vmatprep.subr.bf16.mxu1 %v5693_v34 }
 0x49a   :  { %4996 = vmatpush1.bf16.msra.mxu0 %v5857_v24  ;;  %5020 = vmatpush3.bf16.msra.mxu1 %v5867_v30  ;;  %v1340_v30 = vld [vmem:[#allocation7 + $0xc0] sm:$0xff] }
 0x49b   :  { %5021 = vmatprep.subr.bf16.mxu0 %v5693_v34  ;;  %5045 = vmatprep.subr.bf16.mxu1 %v5693_v34  ;;  %v5022_v45 = vpack.c.bf16 %v1340_v30, %v1339_v25 }
 0x550   :  { %v1089_v18 = vpop.f32.mrb[8].mxu0  ;;  %v1160_v19 = vpop.f32.mrb[14].mxu1 }
 0x551   :  { %v5493_v26 = vadd.f32 %v1089_v18, %v5929_v56  ;;  %v1091_v28 = vpop.f32.mrb[9].mxu0  ;;  %v4515_v33 = vpop.f32.mrb[15].mxu1  ;;  %v1174_v58 = vadd.f32 %v5939_v8, %v1160_v19  ;;  %v1439_v19 = vld [vmem:[#allocation7 + $0x398] sm:$0xff] }
 0x552   :  { %v5494_v39 = vadd.f32 %v1091_v28, %v5936_v1  ;;  %v1441_v33 = vld [vmem:[#allocation7 + $0x4b8] sm:$0xff] }
 0x553   :  { %v1166_v37 = vmul.f32 0.5, %v5493_v26  ;;  %v1440_v26 = vld [vmem:[#allocation7 + $0x428] sm:$0xff] }
 0x554   :  { %v1167_v44 = vmul.f32 0.5, %v5494_v39  ;;  %v5055_v28 = vpack.c.bf16 %v1440_v26, %v1439_v19  ;;  %v1597_v19 = vld [vmem:[#allocation7 + $0x438] sm:$0xff] }
 0x555   :  { %5546 = vtanh.f32 %v1166_v37  ;;  %v1442_v37 = vld [vmem:[#allocation7 + $0x548] sm:$0xff] }
 0x556   :  { %5548 = vtanh.f32 %v1167_v44  ;;  %v5058_v39 = vpack.c.bf16 %v1442_v37, %v1441_v33  ;;  %v1596_v33 = vld [vmem:[#allocation7 + $0x430] sm:$0xff] }
 0x55f   :  { %v5547_v47 = vpop.eup %5546 }
 0x560   :  { %v1170_v49 = vmul.f32 0.5, %v5547_v47  ;;  %v5549_v5 = vpop.eup %5548 }
 0x561   :  { %v1171_v6 = vmul.f32 0.5, %v5549_v5 }
 0x562   :  { %v1172_v55 = vadd.f32 0.5, %v1170_v49 }
 0x563   :  { %v1173_v15 = vadd.f32 0.5, %v1171_v6 }
 0x564   :  { %v1175_v60 = vmul.f32 %v1174_v58, %v1172_v55 }
 0x566   :  { %v1176_v2 = vadd.f32 %v1175_v60, %v5923_v53  ;;  %v1341_v53 = vld [vmem:[#allocation7 + $0x150] sm:$0xff] }
 0x567   :  { %v5025_v9 = vpack.c.bf16 %v1342_v7, %v1341_v53 }
 0x568   :  { %5550 = vtanh.f32 %v1176_v2 }
 0x572   :  { %v5551_v11 = vpop.eup %5550 }
 0x573   :  { %v1178_v16 = vsub.f32 %v1022_v4, %v5551_v11  ;;  %v1438_v4 = vld [vmem:[#allocation7 + $0x308] sm:$0xff] }
 0x574   :  { %v5052_v18 = vpack.c.bf16 %v1438_v4, %v1437_v3  ;;  %v1576_v3 = vld [vmem:[#allocation7 + $0x310] sm:$0xff] }
 0x575   :  { %v1179_v21 = vmul.f32 %v1178_v16, %v1173_v15 }
 0x577   :  { %v6098_v24 = vadd.f32 %v5551_v11, %v1179_v21 }
 0x579   :  { %1246 = vmatmul.mubr.f32.vlgmr.msra.gmra.mrb[10].mxu0 %v6098_v24  ;;  %4549 = vmatmul.mubr.f32.vlgmr.msra.gmra.mrb[16].mxu1 %v6098_v24 }
 0x57a   :  { %4583 = vmatprep.mubr.msk.f32.mxu0 %vm5694_vm0, %v8837_v0  ;;  %4618 = vmatprep.mubr.msk.f32.mxu1 %vm5694_vm0, %v8837_v0 }
 0x57b   :  { %5023 = vmatpush3.bf16.msra.mxu0 %v5022_v45  ;;  %5047 = vmatpush3.bf16.msra.mxu1 %v5046_v59  ;;  %v1577_v59 = vld [vmem:[#allocation7 + $0x318] sm:$0xff] }
 0x57c   :  { %5024 = vmatprep.subr.bf16.mxu0 %v5693_v34  ;;  %5048 = vmatprep.subr.bf16.mxu1 %v5693_v34 }
 0x57f   :  { %5026 = vmatpush3.bf16.msra.mxu0 %v5025_v9  ;;  %5050 = vmatpush3.bf16.msra.mxu1 %v5049_v63  ;;  %v1566_v63 = vld [vmem:[#allocation7 + $0x280] sm:$0xff] }
 0x580   :  { %5027 = vmatprep.subr.bf16.mxu0 %v5693_v34  ;;  %5051 = vmatprep.subr.bf16.mxu1 %v5693_v34  ;;  %v5079_v4 = vpack.c.bf16 %v1576_v3, %v1566_v63  ;;  %v1609_v63 = vld [vmem:[#allocation7 + $0x4d8] sm:$0xff]  ;;  %v1619_v3 = vld [vmem:[#allocation7 + $0x568] sm:$0xff] }
 0x583   :  { %5029 = vmatpush3.bf16.msra.mxu0 %v5028_v14  ;;  %5053 = vmatpush3.bf16.msra.mxu1 %v5052_v18  ;;  %v1587_v18 = vld [vmem:[#allocation7 + $0x3a8] sm:$0xff] }
 0x584   :  { %5030 = vmatprep.subr.bf16.mxu0 %v5693_v34  ;;  %5054 = vmatprep.subr.bf16.mxu1 %v5693_v34  ;;  %v5081_v26 = vpack.c.bf16 %v1597_v19, %v1587_v18  ;;  %v5117_v18 = vpack.c.bf16 %v1619_v3, %v1609_v63  ;;  %v1608_v19 = vld [vmem:[#allocation7 + $0x4d0] sm:$0xff]  ;;  %v6161_v3 = vld [vmem:[#allocation7 + $0x3c0] sm:$0xff] }
 0x587   :  { %5032 = vmatpush3.bf16.msra.mxu0 %v5031_v48  ;;  %5056 = vmatpush3.bf16.msra.mxu1 %v5055_v28  ;;  %v1448_v48 = vld [vmem:[#allocation7 + $0x8a8] sm:$0xff]  ;;  %v1586_v28 = vld [vmem:[#allocation7 + $0x3a0] sm:$0xff] }
 0x588   :  { %5033 = vmatprep.subr.bf16.mxu0 %v5693_v34  ;;  %5057 = vmatprep.subr.bf16.mxu1 %v5693_v34  ;;  %v5067_v22 = vpack.c.bf16 %v1448_v48, %v1447_v20  ;;  %v5083_v37 = vpack.c.bf16 %v1596_v33, %v1586_v28  ;;  %v1528_v20 = vld [vmem:[#allocation7 + $0x50] sm:$0xff]  ;;  %v1538_v48 = vld [vmem:[#allocation7 + $0xe0] sm:$0xff]  ;;  %v1629_v28 = vld [vmem:[#allocation7 + $0x5f8] sm:$0xff] }
 0x589   :  { %v1639_v33 = vld [vmem:[#allocation7 + $0x688] sm:$0xff] }
 0x58b   :  { %5035 = vmatpush3.bf16.msra.mxu0 %v5034_v27  ;;  %5059 = vmatpush3.bf16.msra.mxu1 %v5058_v39  ;;  %v1529_v27 = vld [vmem:[#allocation7 + $0x58] sm:$0xff]  ;;  %v1607_v39 = vld [vmem:[#allocation7 + $0x4c8] sm:$0xff] }
 0x58c   :  { %5036 = vmatprep.subr.bf16.mxu0 %v5693_v34  ;;  %5060 = vmatprep.subr.bf16.mxu1 %v5693_v34  ;;  %v5101_v43 = vpack.c.bf16 %v1539_v36, %v1529_v27  ;;  %v1558_v36 = vld [vmem:[#allocation7 + $0x200] sm:$0xff] }
 0x58f   :  { %5038 = vmatpush3.bf16.msra.mxu0 %v5037_v41  ;;  %v1526_v41 = vld [vmem:[#allocation7 + $0x40] sm:$0xff] }
 0x590   :  { %5039 = vmatprep.subr.bf16.mxu0 %v5693_v34 }
 0x593   :  { %5041 = vmatpush3.bf16.msra.mxu0 %v5040_v46  ;;  %v5071_v46 = vpack.c.bf16 %v1536_v40, %v1526_v41  ;;  %v1569_v40 = vld [vmem:[#allocation7 + $0x298] sm:$0xff] }
 0x594   :  { %5042 = vmatprep.subr.bf16.mxu0 %v5693_v34 }
 0x597   :  { %5044 = vmatpush3.bf16.msra.mxu0 %v5043_v12  ;;  %v5073_v12 = vpack.c.bf16 %v1557_v38, %v1547_v50  ;;  %v1568_v38 = vld [vmem:[#allocation7 + $0x290] sm:$0xff] }
 0x64c   :  { %v1247_v44 = vpop.f32.mrb[10].mxu0  ;;  %v1318_v47 = vpop.f32.mrb[16].mxu1 }
 0x64d   :  { %v5495_v49 = vadd.f32 %v1247_v44, %v5929_v56  ;;  %v1249_v55 = vpop.f32.mrb[11].mxu0  ;;  %v4550_v58 = vpop.f32.mrb[17].mxu1  ;;  %v1332_v16 = vadd.f32 %v5939_v8, %v1318_v47  ;;  %v1445_v8 = vld [vmem:[#allocation7 + $0x6f8] sm:$0xff] }
 0x64e   :  { %v5496_v2 = vadd.f32 %v1249_v55, %v5936_v1  ;;  %v1443_v1 = vld [vmem:[#allocation7 + $0x5d8] sm:$0xff]  ;;  %v1616_v55 = vld [vmem:[#allocation7 + $0x550] sm:$0xff] }
 0x64f   :  { %v1324_v60 = vmul.f32 0.5, %v5495_v49  ;;  %v5061_v14 = vpack.c.bf16 %v1444_v13, %v1443_v1  ;;  %v1617_v44 = vld [vmem:[#allocation7 + $0x558] sm:$0xff]  ;;  %v1606_v49 = vld [vmem:[#allocation7 + $0x4c0] sm:$0xff]  ;;  %v1676_v1 = vld [vmem:[#allocation7 + $0x8b0] sm:$0xff] }
 0x650   :  { %v1325_v5 = vmul.f32 0.5, %v5496_v2  ;;  %v5085_v47 = vpack.c.bf16 %v1617_v44, %v1607_v39  ;;  %v5087_v58 = vpack.c.bf16 %v1616_v55, %v1606_v49  ;;  %v1637_v2 = vld [vmem:[#allocation7 + $0x678] sm:$0xff]  ;;  %v5121_v39 = vpack.c.bf16 %v1639_v33, %v1629_v28  ;;  %v1628_v44 = vld [vmem:[#allocation7 + $0x5f0] sm:$0xff]  ;;  %v1659_v55 = vld [vmem:[#allocation7 + $0x7a8] sm:$0xff] }
 0x651   :  { %5552 = vtanh.f32 %v1324_v60  ;;  %5062 = vmatpush3.bf16.msra.mxu1 %v5061_v14  ;;  %v1627_v60 = vld [vmem:[#allocation7 + $0x5e8] sm:$0xff]  ;;  %v3744_v14 = vld [vmem:[#allocation8 + $0x6] ss:$0 sm:$0xff]  ;;  %v1649_v49 = vld [vmem:[#allocation7 + $0x718] sm:$0xff] }
 0x652   :  { %5554 = vtanh.f32 %v1325_v5  ;;  %5063 = vmatprep.subr.bf16.mxu1 %v5693_v34  ;;  %v5089_v5 = vpack.c.bf16 %v1637_v2, %v1627_v60  ;;  %v5125_v60 = vpack.c.bf16 %v1659_v55, %v1649_v49  ;;  %v1648_v2 = vld [vmem:[#allocation7 + $0x710] sm:$0xff]  ;;  %v6171_v28 = vld [vmem:[#allocation7 + $0x578] sm:$0xff]  ;;  %v6178_v49 = vld [vmem:[#allocation7 + $0x588] sm:$0xff] }
 0x653   :  { %v6180_v55 = vld [vmem:[#allocation7 + $0x4e0] sm:$0xff] }
 0x65b   :  { %v5553_v6 = vpop.eup %5552 }
 0x65c   :  { %v1328_v11 = vmul.f32 0.5, %v5553_v6  ;;  %v5555_v30 = vpop.eup %5554  ;;  %v1626_v6 = vld [vmem:[#allocation7 + $0x5e0] sm:$0xff] }
 0x65d   :  { %v1329_v45 = vmul.f32 0.5, %v5555_v30  ;;  %v1646_v30 = vld [vmem:[#allocation7 + $0x700] sm:$0xff] }
 0x65e   :  { %v1330_v15 = vadd.f32 0.5, %v1328_v11  ;;  %v1636_v11 = vld [vmem:[#allocation7 + $0x670] sm:$0xff] }
 0x65f   :  { %v1331_v53 = vadd.f32 0.5, %v1329_v45  ;;  %v1656_v45 = vld [vmem:[#allocation7 + $0x790] sm:$0xff] }
 0x660   :  { %v1333_v21 = vmul.f32 %v1332_v16, %v1330_v15  ;;  %v5091_v15 = vpack.c.bf16 %v1636_v11, %v1626_v6  ;;  %v1647_v16 = vld [vmem:[#allocation7 + $0x708] sm:$0xff]  ;;  %v1669_v6 = vld [vmem:[#allocation7 + $0x838] sm:$0xff] }
 0x661   :  { %v1679_v11 = vld [vmem:[#allocation7 + $0x8c8] sm:$0xff] }
 0x662   :  { %v1334_v25 = vadd.f32 %v1333_v21, %v5921_v51  ;;  %v5064_v51 = vpack.c.bf16 %v1446_v17, %v1445_v8  ;;  %v1657_v21 = vld [vmem:[#allocation7 + $0x798] sm:$0xff] }
 0x664   :  { %5556 = vtanh.f32 %v1334_v25  ;;  %5065 = vmatpush3.bf16.msra.mxu1 %v5064_v51  ;;  %v5093_v25 = vpack.c.bf16 %v1657_v21, %v1647_v16  ;;  %v5129_v16 = vpack.c.bf16 %v1679_v11, %v1669_v6  ;;  %v1668_v21 = vld [vmem:[#allocation7 + $0x830] sm:$0xff]  ;;  %v6192_v11 = vld [vmem:[#allocation7 + $0x608] sm:$0xff] }
 0x665   :  { %5066 = vmatprep.subr.bf16.mxu1 %v5693_v34  ;;  %v1567_v34 = vld [vmem:[#allocation7 + $0x288] sm:$0xff] }
 0x666   :  { %v5077_v61 = vpack.c.bf16 %v1577_v59, %v1567_v34  ;;  %v5113_v34 = vpack.c.bf16 %v1599_v52, %v1589_v42  ;;  %v1588_v59 = vld [vmem:[#allocation7 + $0x3b0] sm:$0xff]  ;;  %v6153_v42 = vld [vmem:[#allocation7 + $0x3c8] sm:$0xff]  ;;  %v6155_v52 = vld [vmem:[#allocation7 + $0x458] sm:$0xff] }
 0x668   :  { %5068 = vmatpush3.bf16.msra.mxu1 %v5067_v22  ;;  %v1549_v22 = vld [vmem:[#allocation7 + $0x178] sm:$0xff] }
 0x669   :  { %5102 = vmatprep.subr.bf16.mxu1 %v5101_v43  ;;  %v1579_v43 = vld [vmem:[#allocation7 + $0x328] sm:$0xff] }
 0x66a   :  { %v5109_v50 = vpack.c.bf16 %v1579_v43, %v1569_v40  ;;  %v6141_v40 = vld [vmem:[#allocation7 + $0x2b8] sm:$0xff]  ;;  %v6143_v43 = vld [vmem:[#allocation7 + $0x348] sm:$0xff] }
 0x66e   :  { %v5557_v56 = vpop.eup %5556 }
 0x66f   :  { %v1336_v7 = vsub.f32 %v6098_v24, %v5557_v56  ;;  %v1527_v24 = vld [vmem:[#allocation7 + $0x48] sm:$0xff] }
 0x670   :  { %v5069_v29 = vpack.c.bf16 %v1537_v23, %v1527_v24  ;;  %v1559_v24 = vld [vmem:[#allocation7 + $0x208] sm:$0xff]  ;;  %v5103_v23 = vpack.c.bf16 %v1538_v48, %v1528_v20  ;;  %v1561_v20 = vld [vmem:[#allocation7 + $0x218] sm:$0xff] }
 0x671   :  { %v1337_v9 = vmul.f32 %v1336_v7, %v1331_v53  ;;  %v1667_v53 = vld [vmem:[#allocation7 + $0x828] sm:$0xff]  ;;  %v1677_v7 = vld [vmem:[#allocation7 + $0x8b8] sm:$0xff]  ;;  %v5105_v27 = vpack.c.bf16 %v1559_v24, %v1549_v22  ;;  %v6129_v24 = vld [vmem:[#allocation7 + $0x180] sm:$0xff] }
 0x672   :  { %5070 = vmatprep.subr.bf16.mxu0 %v5069_v29  ;;  %v1548_v29 = vld [vmem:[#allocation7 + $0x170] sm:$0xff]  ;;  %v1553_v48 = vld [vmem:[#allocation7 + $0x198] sm:$0xff]  ;;  %v1563_v22 = vld [vmem:[#allocation7 + $0x228] sm:$0xff] }
 0x673   :  { %v1338_v10 = vadd.f32 %v5557_v56, %v1337_v9  ;;  %v5095_v56 = vpack.c.bf16 %v1656_v45, %v1646_v30  ;;  %v5097_v9 = vpack.c.bf16 %v1677_v7, %v1667_v53  ;;  %v1531_v45 = vld [vmem:[#allocation7 + $0x68] sm:$0xff]  ;;  %v1533_v53 = vld [vmem:[#allocation7 + $0x78] sm:$0xff] }
 0x675   :  { %4584 = vmatmul.mubr.f32.vlgmr.msra.gmra.mrb[12].mxu0 %v1338_v10  ;;  %v1666_v10 = vld [vmem:[#allocation7 + $0x820] sm:$0xff] }
 0x676   :  { %1804 = vmatprep.mubr.f32.mxu0 %v8837_v0  ;;  %5072 = vmatpush1.bf16.msra.mxu0 %v5071_v46  ;;  %v5099_v13 = vpack.c.bf16 %v1676_v1, %v1666_v10  ;;  %v5107_v46 = vpack.c.bf16 %v1558_v36, %v1548_v29  ;;  %v1530_v1 = vld [vmem:[#allocation7 + $0x60] sm:$0xff]  ;;  %v6137_v36 = vld [vmem:[#allocation7 + $0x2a8] sm:$0xff] }
 0x677   :  { %5074 = vmatprep.subr.bf16.mxu0 %v5073_v12  ;;  %v1578_v12 = vld [vmem:[#allocation7 + $0x320] sm:$0xff] }
 0x678   :  { %v6135_v29 = vld [vmem:[#allocation7 + $0x220] sm:$0xff] }
 0x67a   :  { %5076 = vmatpush1.bf16.msra.mxu0 %v5075_v57  ;;  %v5111_v57 = vpack.c.bf16 %v1578_v12, %v1568_v38  ;;  %v6149_v38 = vld [vmem:[#allocation7 + $0x2b0] sm:$0xff]  ;;  %v6151_v12 = vld [vmem:[#allocation7 + $0x340] sm:$0xff] }
 0x67b   :  { %5078 = vmatprep.subr.bf16.mxu0 %v5077_v61  ;;  %v1598_v61 = vld [vmem:[#allocation7 + $0x440] sm:$0xff] }
 0x67e   :  { %5080 = vmatpush1.bf16.msra.mxu0 %v5079_v4  ;;  %v5115_v4 = vpack.c.bf16 %v1598_v61, %v1588_v59 }
 0x67f   :  { %5082 = vmatprep.subr.bf16.mxu0 %v5081_v26  ;;  %v1618_v26 = vld [vmem:[#allocation7 + $0x560] sm:$0xff] }
 0x682   :  { %5084 = vmatpush1.bf16.msra.mxu0 %v5083_v37  ;;  %v5119_v37 = vpack.c.bf16 %v1618_v26, %v1608_v19  ;;  %v6167_v19 = vld [vmem:[#allocation7 + $0x460] sm:$0xff]  ;;  %v6169_v26 = vld [vmem:[#allocation7 + $0x4e8] sm:$0xff] }
 0x683   :  { %5086 = vmatprep.subr.bf16.mxu0 %v5085_v47  ;;  %v1638_v47 = vld [vmem:[#allocation7 + $0x680] sm:$0xff] }
 0x686   :  { %5088 = vmatpush1.bf16.msra.mxu0 %v5087_v58  ;;  %v5123_v58 = vpack.c.bf16 %v1638_v47, %v1628_v44  ;;  %v5169_v44 = vpack.c.bf16 %v1563_v22, %v1553_v48  ;;  %v6176_v47 = vld [vmem:[#allocation7 + $0x4f8] sm:$0xff]  ;;  %v6302_v48 = vld [vmem:[#allocation7 + $0x8e0] sm:$0xff] }
 0x687   :  { %5090 = vmatprep.subr.bf16.mxu0 %v5089_v5  ;;  %v1658_v5 = vld [vmem:[#allocation7 + $0x7a0] sm:$0xff]  ;;  %v6238_v22 = vld [vmem:[#allocation7 + $0x738] sm:$0xff] }
 0x68a   :  { %5092 = vmatpush1.bf16.msra.mxu0 %v5091_v15  ;;  %v5127_v15 = vpack.c.bf16 %v1658_v5, %v1648_v2  ;;  %v6186_v2 = vld [vmem:[#allocation7 + $0x580] sm:$0xff] }
 0x68b   :  { %5094 = vmatprep.subr.bf16.mxu0 %v5093_v25  ;;  %v1678_v25 = vld [vmem:[#allocation7 + $0x8c0] sm:$0xff] }
 0x68c   :  { %v5131_v30 = vpack.c.bf16 %v1678_v25, %v1668_v21  ;;  %v6198_v21 = vld [vmem:[#allocation7 + $0x6a8] sm:$0xff]  ;;  %v6201_v25 = vadd.s32 8, %v5910_v32 }
 0x68e   :  { %5096 = vmatpush1.bf16.msra.mxu0 %v5095_v56  ;;  %v1541_v56 = vld [vmem:[#allocation7 + $0xf8] sm:$0xff]  ;;  %8981 = vst [vmem:[#allocation17_spill] sm:$0xff] %v6201_v25 }
 0x68f   :  { %5098 = vmatprep.subr.bf16.mxu0 %v5097_v9  ;;  %v5133_v7 = vpack.c.bf16 %v1541_v56, %v1531_v45  ;;  %v1543_v9 = vld [vmem:[#allocation7 + $0x108] sm:$0xff]  ;;  %v5173_v45 = vpack.c.bf16 %v6143_v43, %v6141_v40  ;;  %v6253_v40 = vld [vmem:[#allocation7 + $0x7b0] sm:$0xff] }
 0x690   :  { %v5165_v10 = vpack.c.bf16 %v1543_v9, %v1533_v53  ;;  %v6211_v53 = vld [vmem:[#allocation7 + $0x600] sm:$0xff]  ;;  %v6215_v9 = vld [vmem:[#allocation7 + $0x610] sm:$0xff] }
 0x691   :  { %v6255_v43 = vld [vmem:[#allocation7 + $0x730] sm:$0xff] }
 0x692   :  { %5100 = vmatpush1.bf16.msra.mxu0 %v5099_v13  ;;  %v1540_v13 = vld [vmem:[#allocation7 + $0xf0] sm:$0xff] }
 0x693   :  { %5134 = vmatprep.subr.bf16.mxu0 %v5133_v7  ;;  %v5135_v61 = vpack.c.bf16 %v1540_v13, %v1530_v1  ;;  %v6213_v7 = vld [vmem:[#allocation7 + $0x690] sm:$0xff]  ;;  %v5175_v1 = vpack.c.bf16 %v6151_v12, %v6149_v38  ;;  %v6257_v38 = vld [vmem:[#allocation7 + $0x7c0] sm:$0xff]  ;;  %v6262_v12 = vadd.s32 1, %v6201_v25 }
 0x695   :  { %8983 = vst [vmem:[#allocation19_spill] sm:$0xff] %v6262_v12  ;;  %v6321_v13 = vmul.u32 32, %v6262_v12 }
 0x748   :  { %v1428_v8 = vpop.f32.mrb[12].mxu0 }
 0x749   :  { %v1429_v17 = vadd.f32 %v3744_v14, %v1428_v8  ;;  %v4585_v51 = vpop.f32.mrb[13].mxu0  ;;  %v1532_v14 = vld [vmem:[#allocation7 + $0x70] sm:$0xff]  ;;  %v1542_v8 = vld [vmem:[#allocation7 + $0x100] sm:$0xff] }
 0x74a   :  { %v6127_v51 = vld [vmem:[#allocation7 + $0x188] sm:$0xff]  ;;  %v5167_v63 = vpack.c.bf16 %v1542_v8, %v1532_v14  ;;  %v6226_v8 = vld [vmem:[#allocation7 + $0x6a0] sm:$0xff]  ;;  %v6318_v14 = vld [vmem:[#allocation7 + $0x118] sm:$0xff] }
 0x74b   :  { %5558 = vtanh.f32 %v1429_v17  ;;  %v3745_v17 = vld [vmem:[#allocation8 + $0x7] ss:$0 sm:$0xff] }
 0x755   :  { %v5559_v41 = vpop.eup %5558 }
 0x756   :  { %4619 = vmatmul.mubr.f32.vlgmr.msra.gmra.mrb[18].mxu1 %v5559_v41  ;;  %v6139_v41 = vld [vmem:[#allocation7 + $0x338] sm:$0xff] }
 0x757   :  { %5104 = vmatpush1.bf16.msra.mxu1 %v5103_v23  ;;  %1875 = vmatprep.mubr.f32.mxu1 %v8837_v0  ;;  %v6131_v23 = vld [vmem:[#allocation7 + $0x210] sm:$0xff] }
 0x758   :  { %5106 = vmatprep.subr.bf16.mxu1 %v5105_v27  ;;  %v6133_v27 = vld [vmem:[#allocation7 + $0x190] sm:$0xff]  ;;  %v5139_v5 = vpack.c.bf16 %v6131_v23, %v6129_v24  ;;  %v6240_v24 = vld [vmem:[#allocation7 + $0x7c8] sm:$0xff]  ;;  %v6242_v23 = vld [vmem:[#allocation7 + $0x720] sm:$0xff] }
 0x759   :  { %v5171_v6 = vpack.c.bf16 %v6135_v29, %v6133_v27  ;;  %v6245_v27 = vadd.s32 1, %v5910_v32  ;;  %v6294_v29 = vadd.s32 24, %v5910_v32 }
 0x75b   :  { %5108 = vmatpush1.bf16.msra.mxu1 %v5107_v46  ;;  %v6145_v46 = vld [vmem:[#allocation7 + $0x2a0] sm:$0xff]  ;;  %8982 = vst [vmem:[#allocation18_spill] sm:$0xff] %v6245_v27  ;;  %8986 = vst [vmem:[#allocation22_spill] sm:$0xff] %v6294_v29 }
 0x75c   :  { %5110 = vmatprep.subr.bf16.mxu1 %v5109_v50  ;;  %v6147_v50 = vld [vmem:[#allocation7 + $0x330] sm:$0xff] }
 0x75d   :  { %v8989_v12 = vpack.c.bf16 %v6147_v50, %v6145_v46 }
 0x75f   :  { %5112 = vmatpush1.bf16.msra.mxu1 %v5111_v57  ;;  %v6157_v57 = vld [vmem:[#allocation7 + $0x3d8] sm:$0xff] }
 0x760   :  { %5114 = vmatprep.subr.bf16.mxu1 %v5113_v34  ;;  %v6159_v34 = vld [vmem:[#allocation7 + $0x468] sm:$0xff] }
 0x761   :  { %v8993_v46 = vpack.c.bf16 %v6159_v34, %v6157_v57  ;;  %v6373_v57 = vld [vmem:[#allocation7 + $0x238] sm:$0xff]  ;;  %v6376_v34 = vmul.u32 32, %v6294_v29 }
 0x763   :  { %5116 = vmatpush1.bf16.msra.mxu1 %v5115_v4  ;;  %v6163_v4 = vld [vmem:[#allocation7 + $0x450] sm:$0xff] }
 0x764   :  { %5118 = vmatprep.subr.bf16.mxu1 %v5117_v18  ;;  %v6165_v18 = vld [vmem:[#allocation7 + $0x3d0] sm:$0xff] }
 0x765   :  { %v8997_v50 = vpack.c.bf16 %v6167_v19, %v6165_v18 }
 0x767   :  { %5120 = vmatpush1.bf16.msra.mxu1 %v5119_v37 }
 0x768   :  { %5122 = vmatprep.subr.bf16.mxu1 %v5121_v39  ;;  %v5137_v39 = vpack.c.bf16 %v1561_v20, %v6127_v51  ;;  %v6230_v51 = vld [vmem:[#allocation7 + $0x7b8] sm:$0xff]  ;;  %v6305_v20 = vmul.u32 32, %v6201_v25  ;;  %v8992_v25 = vpack.c.bf16 %v6155_v52, %v6153_v42  ;;  %v6371_v52 = vld [vmem:[#allocation7 + $0x1a8] sm:$0xff]  ;;  %v8996_v42 = vpack.c.bf16 %v6163_v4, %v6161_v3 }
 0x769   :  { %v9000_v3 = vpack.c.bf16 %v6171_v28, %v6169_v26  ;;  %v9001_v4 = vpack.c.bf16 %v6178_v49, %v6176_v47  ;;  %v6438_v28 = vmul.u32 32, %v6348_v54  ;;  %v1585_v26 = vld [vmem:[#allocation7 + $0x358] sm:$0xff]  ;;  %v9081_v47 = vmov 0 }
 0x76a   :  { %v9096_v18 = vpack.c.bf16 %v6373_v57, %v6371_v52  ;;  %v9102_v52 = vmov 0 }
 0x76b   :  { %5124 = vmatpush1.bf16.msra.mxu1 %v5123_v58  ;;  %v6182_v58 = vld [vmem:[#allocation7 + $0x570] sm:$0xff] }
 0x76c   :  { %5126 = vmatprep.subr.bf16.mxu1 %v5125_v60  ;;  %v6184_v60 = vld [vmem:[#allocation7 + $0x4f0] sm:$0xff] }
 0x76f   :  { %5128 = vmatpush1.bf16.msra.mxu1 %v5127_v15  ;;  %v6194_v15 = vld [vmem:[#allocation7 + $0x698] sm:$0xff] }
 0x770   :  { %5130 = vmatprep.subr.bf16.mxu1 %v5129_v16  ;;  %v6196_v16 = vld [vmem:[#allocation7 + $0x618] sm:$0xff] }
 0x773   :  { %5132 = vmatpush1.bf16.msra.mxu1 %v5131_v30  ;;  %v5141_v30 = vpack.c.bf16 %v6139_v41, %v6137_v36  ;;  %v6285_v41 = vld [vmem:[#allocation7 + $0x8d0] sm:$0xff]  ;;  %v6291_v36 = vmul.u32 32, %v5910_v32 }
 0x774   :  { %5166 = vmatprep.subr.bf16.mxu1 %v5165_v10  ;;  %v6218_v10 = vand.u32 127, %v125_v31  ;;  %v6308_v31 = vmul.u32 32, %v6245_v27  ;;  %v6345_v27 = vadd.s32 1, %v6294_v29  ;;  %v6404_v29 = vadd.s32 56, %v5910_v32 }
 0x776   :  { %8990 = vst [vmem:[#allocation25_spill] sm:$0xff] %v6345_v27  ;;  %vm2144_vm5 = vcmp.ge.s32.totalorder %v6218_v10, %v6291_v36  ;;  %vm2148_vm6 = vcmp.ge.s32.totalorder %v6218_v10, %v6305_v20  ;;  %vm2240_vm7 = vcmp.lt.s32.totalorder %v6218_v10, %v6308_v31  ;;  %v6398_v56 = vmul.u32 32, %v6345_v27  ;;  %8999 = vst [vmem:[#allocation30_spill] sm:$0xff] %v6404_v29 }
 0x777   :  { %vm2244_vm8 = vcmp.lt.s32.totalorder %v6218_v10, %v6321_v13  ;;  %vm2156_vm13 = vcmp.ge.s32.totalorder %v6218_v10, %v6376_v34  ;;  %vm6473_vm0 = vmand %vm2144_vm5, %vm2240_vm7  ;;  %v9025_v27 = vpack.c.bf16 %v6226_v8, %v6215_v9  ;;  %v6580_v9 = vadd.s32 88, %v5910_v32 }
 0x779   :  { %9029 = vst [vmem:[#allocation38_spill] sm:$0xff] %v6580_v9 }
 0x829   :  { %v1522_v59 = vpop.f32.mrb[18].mxu1 }
 0x82a   :  { %v6173_v33 = vadd.f32 %v3745_v17, %v1522_v59  ;;  %v4620_v37 = vpop.f32.mrb[19].mxu1  ;;  %v6228_v17 = vld [vmem:[#allocation7 + $0x728] sm:$0xff] }
 0x82b   :  { %v6270_v37 = vld [vmem:[#allocation7 + $0x848] sm:$0xff]  ;;  %v9030_v8 = vpack.c.bf16 %v6230_v51, %v6228_v17  ;;  %v9035_v51 = vmov 0 }
 0x82c   :  { %1805 = vmatmul.mubr.f32.vlgmr.msra.gmra.mrb[14].mxu0 %v6173_v33  ;;  %1876 = vmatmul.mubr.f32.vlgmr.msra.gmra.mrb[20].mxu1 %v6173_v33  ;;  %v6281_v59 = vld [vmem:[#allocation7 + $0x8e8] sm:$0xff] }
 0x82d   :  { %5136 = vmatpush1.bf16.msra.mxu0 %v5135_v61  ;;  %5168 = vmatpush1.bf16.msra.mxu1 %v5167_v63  ;;  %v6283_v61 = vld [vmem:[#allocation7 + $0x840] sm:$0xff]  ;;  %v6288_v63 = vadd.s32 128, %v6218_v10 }
 0x82e   :  { %5138 = vmatprep.subr.bf16.mxu0 %v5137_v39  ;;  %5170 = vmatprep.subr.bf16.mxu1 %v5169_v44  ;;  %v6272_v39 = vld [vmem:[#allocation7 + $0x8d8] sm:$0xff] }
 0x82f   :  { %1946 = vmatprep.mubr.f32.mxu0 %v8837_v0  ;;  %2017 = vmatprep.mubr.f32.mxu1 %v8837_v0  ;;  %v6274_v44 = vld [vmem:[#allocation7 + $0x858] sm:$0xff]  ;;  %8985 = vst [vmem:[#allocation21_spill] sm:$0xff] %v6288_v63  ;;  %v6300_v0 = vld [vmem:[#allocation7 + $0x850] sm:$0xff]  ;;  %vm2145_vm1 = vcmp.ge.s32.totalorder %v6288_v63, %v6291_v36  ;;  %vm2149_vm2 = vcmp.ge.s32.totalorder %v6288_v63, %v6305_v20 }
 0x830   :  { %vm2241_vm3 = vcmp.lt.s32.totalorder %v6288_v63, %v6308_v31  ;;  %vm2245_vm4 = vcmp.lt.s32.totalorder %v6288_v63, %v6321_v13  ;;  %vm2157_vm11 = vcmp.ge.s32.totalorder %v6288_v63, %v6376_v34 }
 0x831   :  { %5140 = vmatpush1.bf16.msra.mxu0 %v5139_v5  ;;  %5172 = vmatpush1.bf16.msra.mxu1 %v5171_v6  ;;  %v6316_v6 = vld [vmem:[#allocation7 + $0x88] sm:$0xff]  ;;  %v6335_v5 = vadd.s32 32, %v5910_v32  ;;  %vm6427_vm10 = vmand %vm2145_vm1, %vm2241_vm3  ;;  %vm2253_vm1 = vcmp.lt.s32.totalorder %v6288_v63, %v6398_v56 }
 0x832   :  { %5142 = vmatprep.subr.bf16.mxu0 %v5141_v30  ;;  %5174 = vmatprep.subr.bf16.mxu1 %v5173_v45  ;;  %v6327_v30 = vld [vmem:[#allocation7 + $0x80] sm:$0xff]  ;;  %v6332_v45 = vadd.s32 1, %v6277_v35  ;;  %vm6446_vm14 = vmand %vm2149_vm2, %vm2245_vm4  ;;  %vm2252_vm4 = vcmp.lt.s32.totalorder %v6218_v10, %v6398_v56 }
 0x833   :  { %8988 = vst [vmem:[#allocation24_spill] sm:$0xff] %v6335_v5  ;;  %v6419_v19 = vmul.u32 32, %v6335_v5  ;;  %vm6500_vm2 = vmand %vm2148_vm6, %vm2244_vm8  ;;  %vm9052_vm8 = vcmp.ge.s32.totalorder %v6218_v10, %v6438_v28 }
 0x834   :  { %8987 = vst [vmem:[#allocation23_spill] sm:$0xff] %v6332_v45 }
 0x835   :  { %5144 = vmatpush1.bf16.msra.mxu0 %v8989_v12  ;;  %5176 = vmatpush1.bf16.msra.mxu1 %v5175_v1  ;;  %v6363_v1 = vmul.u32 32, %v6277_v35  ;;  %v6384_v12 = vadd.s32 1, %v6335_v5  ;;  %v9088_v5 = vpack.c.bf16 %v6329_v62, %v6327_v30  ;;  %v9089_v35 = vmov 1.0|1.0  }
 0x836   :  { %5146 = vmatprep.subr.bf16.mxu0 %v8992_v25  ;;  %5178 = vmatprep.subr.bf16.mxu1 %v8993_v46  ;;  %v6381_v25 = vmul.u32 32, %v6332_v45  ;;  %v6387_v46 = vadd.s32 48, %v5910_v32  ;;  %v6401_v45 = vadd.s32 1, %v6348_v54 }
 0x837   :  { %8994 = vst [vmem:[#allocation27_spill] sm:$0xff] %v6384_v12  ;;  %vm2153_vm9 = vcmp.ge.s32.totalorder %v6288_v63, %v6363_v1  ;;  %vm2152_vm12 = vcmp.ge.s32.totalorder %v6218_v10, %v6363_v1  ;;  %v6453_v49 = vmul.u32 32, %v6384_v12  ;;  %v9024_v12 = vpack.c.bf16 %v6213_v7, %v6211_v53 }
 0x838   :  { %8995 = vst [vmem:[#allocation28_spill] sm:$0xff] %v6387_v46  ;;  %8998 = vst [vmem:[#allocation29_spill] sm:$0xff] %v6401_v45  ;;  %vm2249_vm15 = vcmp.lt.s32.totalorder %v6288_v63, %v6381_v25  ;;  %vm2248_vm3 = vcmp.lt.s32.totalorder %v6218_v10, %v6381_v25 }
 0x839   :  { %5148 = vmatpush1.bf16.msra.mxu0 %v8996_v42  ;;  %5180 = vmatpush1.bf16.msra.mxu1 %v8997_v50  ;;  %v6456_v50 = vadd.s32 1, %v6387_v46  ;;  %v6459_v42 = vadd.s32 64, %v5910_v32  ;;  %vm6520_vm6 = vmand %vm2153_vm9, %vm2249_vm15  ;;  %vm2257_vm15 = vcmp.lt.s32.totalorder %v6288_v63, %v6453_v49 }
 0x83a   :  { %5150 = vmatprep.subr.bf16.mxu0 %v9000_v3  ;;  %5182 = vmatprep.subr.bf16.mxu1 %v9001_v4  ;;  %v9008_v3 = vpack.c.bf16 %v6182_v58, %v6180_v55  ;;  %v9009_v4 = vpack.c.bf16 %v6186_v2, %v6184_v60  ;;  %v6480_v55 = vmul.u32 32, %v6401_v45  ;;  %v6483_v58 = vadd.s32 1, %v6404_v29  ;;  %vm6540_vm9 = vmand %vm2157_vm11, %vm2253_vm1 }
 0x83b   :  { %9006 = vst [vmem:[#allocation31_spill] sm:$0xff] %v6456_v50  ;;  %9007 = vst [vmem:[#allocation32_spill] sm:$0xff] %v6459_v42  ;;  %v6486_v60 = vadd.s32 72, %v5910_v32  ;;  %v9014_v2 = vpack.c.bf16 %v6194_v15, %v6192_v11  ;;  %v9018_v11 = vmov 0  ;;  %v6529_v15 = vmul.u32 32, %v6387_v46 }
 0x83c   :  { %9012 = vst [vmem:[#allocation33_spill] sm:$0xff] %v6483_v58  ;;  %v9019_v11 = vsel %vm6520_vm6, 4294967295, %v9018_v11  ;;  %v6553_v45 = vadd.s32 80, %v5910_v32  ;;  %vm6567_vm11 = vmand %vm2152_vm12, %vm2248_vm3  ;;  %vm2261_vm1 = vcmp.lt.s32.totalorder %v6288_v63, %v6480_v55  ;;  %v6574_v53 = vmul.u32 32, %v6483_v58 }
 0x83d   :  { %5152 = vmatpush1.bf16.msra.mxu0 %v9008_v3  ;;  %5184 = vmatpush1.bf16.msra.mxu1 %v9009_v4  ;;  %9013 = vst [vmem:[#allocation34_spill] sm:$0xff] %v6486_v60  ;;  %v9015_v3 = vpack.c.bf16 %v6198_v21, %v6196_v16  ;;  %v6532_v16 = vmul.u32 32, %v6404_v29  ;;  %v9020_v21 = vmov 0  ;;  %v6577_v7 = vadd.s32 1, %v6486_v60  ;;  %vm6598_vm3 = vmand %vm2156_vm13, %vm2252_vm4 }
 0x83e   :  { %5154 = vmatprep.subr.bf16.mxu0 %v9014_v2  ;;  %v9021_v21 = vsel %vm6540_vm9, 4294967295, %v9020_v21  ;;  %v6547_v2 = vmul.u32 32, %v6456_v50  ;;  %9023 = vst [vmem:[#allocation36_spill] sm:$0xff] %v6553_v45  ;;  %v6609_v17 = vmul.u32 32, %v6459_v42  ;;  %vm9034_vm4 = vcmp.ge.s32.totalorder %v6288_v63, %v6419_v19 }
 0x83f   :  { %5186 = vmatprep.subr.bf16.mxu1 %v9015_v3  ;;  %v6550_v3 = vadd.s32 1, %v6459_v42  ;;  %9028 = vst [vmem:[#allocation37_spill] sm:$0xff] %v6577_v7  ;;  %vm6621_vm12 = vmand %vm9034_vm4, %vm2257_vm15  ;;  %vm9037_vm15 = vcmp.ge.s32.totalorder %v6288_v63, %v6438_v28  ;;  %v6653_v58 = vadd.s32 96, %v5910_v32  ;;  %v9042_v42 = vpack.c.bf16 %v6257_v38, %v6255_v43 }
 0x840   :  { %v9036_v51 = vsel %vm6621_vm12, 4294967295, %v9035_v51  ;;  %vm6640_vm4 = vmand %vm9037_vm15, %vm2261_vm1  ;;  %vm9043_vm1 = vcmp.lt.s32.totalorder %v6218_v10, %v6453_v49  ;;  %vm9044_vm15 = vcmp.ge.s32.totalorder %v6218_v10, %v6419_v19  ;;  %v6680_v43 = vadd.s32 104, %v5910_v32 }
 0x841   :  { %9022 = vst [vmem:[#allocation35_spill] sm:$0xff] %v6550_v3  ;;  %5156 = vmatpush1.bf16.msra.mxu0 %v9024_v12  ;;  %5188 = vmatpush1.bf16.msra.mxu1 %v9025_v27  ;;  %v9031_v27 = vpack.c.bf16 %v6240_v24, %v6238_v22  ;;  %v6632_v22 = vmul.u32 32, %v6486_v60  ;;  %v9038_v24 = vmov 0  ;;  %v9041_v60 = vpack.c.bf16 %v6253_v40, %v6242_v23  ;;  %vm6667_vm5 = vmand %vm9044_vm15, %vm9043_vm1 }
 0x842   :  { %5158 = vmatprep.subr.bf16.mxu0 %v9030_v8  ;;  %v9039_v24 = vsel %vm6640_vm4, 4294967295, %v9038_v24  ;;  %v6647_v8 = vmul.u32 32, %v6550_v3  ;;  %v9045_v3 = vmov 0  ;;  %v6674_v23 = vmul.u32 32, %v6577_v7  ;;  %9048 = vst [vmem:[#allocation41_spill] sm:$0xff] %v6680_v43 }
 0x843   :  { %5190 = vmatprep.subr.bf16.mxu1 %v9031_v27  ;;  %v6650_v27 = vadd.s32 1, %v6553_v45  ;;  %v9046_v3 = vsel %vm6667_vm5, 4294967295, %v9045_v3  ;;  %v6677_v40 = vadd.s32 1, %v6580_v9  ;;  %v9049_v38 = vpack.c.bf16 %v6272_v39, %v6270_v37  ;;  %v6710_v37 = vld [vmem:[#allocation7 + $0x230] sm:$0xff] }
 0x844   :  { %vm9051_vm15 = vcmp.lt.s32.totalorder %v6218_v10, %v6480_v55  ;;  %vm9056_vm1 = vcmp.ge.s32.totalorder %v6288_v63, %v6529_v15  ;;  %v9057_v39 = vmov 0  ;;  %v9065_v29 = vpack.c.bf16 %v6285_v41, %v6283_v61 }
 0x845   :  { %9040 = vst [vmem:[#allocation39_spill] sm:$0xff] %v6650_v27  ;;  %5160 = vmatpush1.bf16.msra.mxu0 %v9041_v60  ;;  %5192 = vmatpush1.bf16.msra.mxu1 %v9042_v42  ;;  %9047 = vst [vmem:[#allocation40_spill] sm:$0xff] %v6677_v40  ;;  %v9050_v42 = vpack.c.bf16 %v6281_v59, %v6274_v44  ;;  %v6708_v59 = vld [vmem:[#allocation7 + $0x1a0] sm:$0xff]  ;;  %v6731_v44 = vmul.u32 32, %v6553_v45  ;;  %v6749_v7 = vmul.u32 32, %v6650_v27  ;;  %v6752_v45 = vadd.s32 1, %v6653_v58 }
 0x846   :  { %5162 = vmatprep.subr.bf16.mxu0 %v9049_v38  ;;  %vm6698_vm7 = vmand %vm9052_vm8, %vm9051_vm15  ;;  %vm9055_vm15 = vcmp.lt.s32.totalorder %v6288_v63, %v6547_v2  ;;  %v6734_v38 = vmul.u32 32, %v6580_v9  ;;  %vm9059_vm8 = vcmp.lt.s32.totalorder %v6288_v63, %v6574_v53  ;;  %v6755_v9 = vadd.s32 112, %v5910_v32 }
 0x847   :  { %5194 = vmatprep.subr.bf16.mxu1 %v9050_v42  ;;  %vm6722_vm13 = vmand %vm9056_vm1, %vm9055_vm15  ;;  %vm9060_vm1 = vcmp.ge.s32.totalorder %v6288_v63, %v6532_v16  ;;  %9063 = vst [vmem:[#allocation42_spill] sm:$0xff] %v6752_v45  ;;  %v9066_v46 = vpack.c.bf16 %v6302_v48, %v6300_v0  ;;  %v6776_v41 = vmul.u32 32, %v6677_v40  ;;  %v6782_v0 = vadd.s32 120, %v5910_v32  ;;  %v1635_v42 = vld [vmem:[#allocation7 + $0x628] sm:$0xff] }
 0x848   :  { %v9058_v39 = vsel %vm6722_vm13, 4294967295, %v9057_v39  ;;  %vm6742_vm15 = vmand %vm9060_vm1, %vm9059_vm8  ;;  %9064 = vst [vmem:[#allocation43_spill] sm:$0xff] %v6755_v9  ;;  %vm9067_vm8 = vcmp.lt.s32.totalorder %v6218_v10, %v6547_v2  ;;  %vm9068_vm1 = vcmp.ge.s32.totalorder %v6218_v10, %v6529_v15  ;;  %v9073_v48 = vpack.c.bf16 %v6318_v14, %v6316_v6  ;;  %v1575_v6 = vld [vmem:[#allocation7 + $0x2c8] sm:$0xff]  ;;  %v1644_v14 = vld [vmem:[#allocation7 + $0x6b0] sm:$0xff] }
 0x849   :  { %5164 = vmatpush1.bf16.msra.mxu0 %v9065_v29  ;;  %5196 = vmatpush1.bf16.msra.mxu1 %v9066_v46  ;;  %vm6769_vm6 = vmand %vm9068_vm1, %vm9067_vm8  ;;  %v6779_v29 = vadd.s32 1, %v6680_v43  ;;  %9072 = vst [vmem:[#allocation45_spill] sm:$0xff] %v6782_v0  ;;  %v8875_v61 = vmov 1.0|1.0   ;;  %v5203_v46 = vpack.c.bf16 %v6710_v37, %v6708_v59  ;;  %vm9075_vm9 = vcmp.lt.s32.totalorder %v6218_v10, %v6574_v53  ;;  %v1574_v59 = vld [vmem:[#allocation7 + $0x2c0] sm:$0xff]  ;;  %v1584_v37 = vld [vmem:[#allocation7 + $0x350] sm:$0xff] }
 0x84a   :  { %5198 = vmatprep.subr.bf16.mxu0 %v9073_v48  ;;  %vm9074_vm8 = vmpackc.low %vm6446_vm14, %vm6427_vm10  ;;  %vm9076_vm12 = vcmp.ge.s32.totalorder %v6218_v10, %v6532_v16  ;;  %vm9079_vm1 = vcmp.lt.s32.totalorder %v6288_v63, %v6647_v8  ;;  %v9085_v48 = vmov 0  ;;  %v6853_v40 = vmul.u32 32, %v6752_v45 }
 0x84b   :  { %9071 = vst [vmem:[#allocation44_spill] sm:$0xff] %v6779_v29  ;;  %5230 = vmatprep.subr.msk.bf16.mxu1 %vm9074_vm8, %v8875_v61  ;;  %vm6805_vm4 = vmand %vm9076_vm12, %vm9075_vm9  ;;  %vm9080_vm9 = vcmp.ge.s32.totalorder %v6288_v63, %v6609_v17  ;;  %v6850_v61 = vmul.u32 32, %v6653_v58  ;;  %v6856_v54 = vadd.s32 1, %v6755_v9  ;;  %vm9092_vm8 = vcmp.ge.s32.totalorder %v6218_v10, %v6609_v17 }
 0x84c   :  { %vm6823_vm12 = vmand %vm9080_vm9, %vm9079_vm1  ;;  %1947 = vmatmul.mubr.f32.vlgmr.msra.gmra.mrb[16].mxu0 %v6173_v33  ;;  %2018 = vmatmul.mubr.f32.vlgmr.msra.gmra.mrb[22].mxu1 %v6173_v33  ;;  %vm9083_vm1 = vcmp.lt.s32.totalorder %v6288_v63, %v6674_v23  ;;  %vm9084_vm9 = vcmp.ge.s32.totalorder %v6288_v63, %v6632_v22  ;;  %v9093_v45 = vmov 0  ;;  %v6880_v62 = vmul.u32 32, %v6680_v43 }
 0x84d   :  { %v9082_v47 = vsel %vm6823_vm12, 4294967295, %v9081_v47  ;;  %vm6843_vm10 = vmand %vm9084_vm9, %vm9083_vm1  ;;  %9087 = vst [vmem:[#allocation46_spill] sm:$0xff] %v6856_v54  ;;  %5200 = vmatpush1.bf16.msra.mxu0 %v9088_v5  ;;  %vm9091_vm9 = vcmp.lt.s32.totalorder %v6218_v10, %v6647_v8  ;;  %v6883_v5 = vmul.u32 32, %v6779_v29  ;;  %v6886_v30 = vadd.s32 1, %v6782_v0 }
 0x84e   :  { %v9086_v48 = vsel %vm6843_vm10, 4294967295, %v9085_v48  ;;  %vm9090_vm1 = vmpackc.low %vm6500_vm2, %vm6473_vm0  ;;  %5202 = vmatprep.subr.bf16.mxu0 %v9096_v18  ;;  %vm9097_vm0 = vnez %v9021_v21  ;;  %vm9098_vm2 = vnez %v9019_v11  ;;  %v5205_v4 = vpack.c.bf16 %v1585_v26, %v1575_v6  ;;  %v1595_v11 = vld [vmem:[#allocation7 + $0x3e8] sm:$0xff]  ;;  %v1605_v21 = vld [vmem:[#allocation7 + $0x478] sm:$0xff] }
 0x84f   :  { %5232 = vmatpush1.bf16.msk.msra.mxu1 %vm9090_vm1, %v9089_v35  ;;  %vm6873_vm5 = vmand %vm9092_vm8, %vm9091_vm9  ;;  %9095 = vst [vmem:[#allocation47_spill] sm:$0xff] %v6886_v30  ;;  %vm9100_vm9 = vcmp.lt.s32.totalorder %v6218_v10, %v6674_v23  ;;  %vm9101_vm14 = vcmp.ge.s32.totalorder %v6218_v10, %v6632_v22  ;;  %v5207_v57 = vpack.c.bf16 %v1584_v37, %v1574_v59  ;;  %v9106_v6 = vmov 0 }
 0x850   :  { %v9094_v45 = vsel %vm6873_vm5, 4294967295, %v9093_v45  ;;  %vm9099_vm8 = vmpackc.low %vm9097_vm0, %vm9098_vm2  ;;  %v9108_v26 = vmov 0.0   ;;  %vm9110_vm12 = vcmp.ge.s32.totalorder %v6288_v63, %v6734_v38  ;;  %v6950_v37 = vmul.u32 32, %v6755_v9  ;;  %v1604_v9 = vld [vmem:[#allocation7 + $0x470] sm:$0xff] }
 0x851   :  { %5234 = vmatprep.subr.msk.bf16.mxu1 %vm9099_vm8, %v9089_v35  ;;  %vm6907_vm13 = vmand %vm9101_vm14, %vm9100_vm9  ;;  %vm9104_vm14 = vcmp.lt.s32.totalorder %v6288_v63, %v6749_v7  ;;  %vm9105_vm9 = vcmp.ge.s32.totalorder %v6288_v63, %v6731_v44  ;;  %2088 = vmatprep.mubr.f32.mxu0 %v9108_v26  ;;  %vm9109_vm8 = vcmp.lt.s32.totalorder %v6288_v63, %v6776_v41  ;;  %v6953_v18 = vmul.u32 32, %v6856_v54  ;;  %v1594_v54 = vld [vmem:[#allocation7 + $0x3e0] sm:$0xff] }
 0x852   :  { %v9103_v52 = vsel %vm6907_vm13, 4294967295, %v9102_v52  ;;  %vm6925_vm1 = vmand %vm9105_vm9, %vm9104_vm14  ;;  %2736 = vmatprep.mubr.f32.mxu1 %v9108_v26  ;;  %5204 = vmatpush1.bf16.msra.mxu0 %v5203_v46  ;;  %vm9115_vm9 = vcmp.ge.s32.totalorder %v6218_v10, %v6731_v44  ;;  %v9116_v29 = vmov 0  ;;  %v6976_v50 = vmul.u32 32, %v6782_v0 }
 0x853   :  { %v9107_v6 = vsel %vm6925_vm1, 4294967295, %v9106_v6  ;;  %vm6941_vm14 = vmand %vm9110_vm12, %vm9109_vm8  ;;  %vm9114_vm8 = vcmp.lt.s32.totalorder %v6218_v10, %v6749_v7  ;;  %v6979_v12 = vmul.u32 32, %v6886_v30  ;;  %5206 = vmatprep.subr.bf16.mxu0 %v5205_v4  ;;  %v5209_v46 = vpack.c.bf16 %v1605_v21, %v1595_v11  ;;  %v1625_v4 = vld [vmem:[#allocation7 + $0x598] sm:$0xff] }
 0x854   :  { %vm9113_vm12 = vmpackc.low %vm6598_vm3, %vm6567_vm11  ;;  %vm9118_vm11 = vnez %v9039_v24  ;;  %vm9119_vm3 = vnez %v9036_v51  ;;  %vm9122_vm2 = vcmp.ge.s32.totalorder %v6218_v10, %v6734_v38  ;;  %v1615_v51 = vld [vmem:[#allocation7 + $0x508] sm:$0xff]  ;;  %v9127_v11 = vmov 0  ;;  %v1674_v24 = vld [vmem:[#allocation7 + $0x860] sm:$0xff] }
 0x855   :  { %5236 = vmatpush1.bf16.msk.msra.mxu1 %vm9113_vm12, %v9089_v35  ;;  %vm6967_vm0 = vmand %vm9115_vm9, %vm9114_vm8  ;;  %vm9121_vm8 = vcmp.lt.s32.totalorder %v6218_v10, %v6776_v41  ;;  %vm9125_vm12 = vcmp.lt.s32.totalorder %v6288_v63, %v6853_v40  ;;  %vm9129_vm13 = vcmp.lt.s32.totalorder %v6288_v63, %v6883_v5  ;;  %v9131_v21 = vmov 0 }
 0x856   :  { %v9117_v29 = vsel %vm6967_vm0, 4294967295, %v9116_v29  ;;  %vm9120_vm9 = vmpackc.low %vm9118_vm11, %vm9119_vm3  ;;  %vm2288_vm3 = vcmp.lt.s32.totalorder %v6218_v10, %v6853_v40  ;;  %v7038_v30 = vadd.s32 384, %v6218_v10  ;;  %5208 = vmatpush1.bf16.msra.mxu0 %v5207_v57  ;;  %vm9133_vm11 = vnez %v9046_v3  ;;  %v1614_v3 = vld [vmem:[#allocation7 + $0x500] sm:$0xff]  ;;  %v1645_v57 = vld [vmem:[#allocation7 + $0x6b8] sm:$0xff] }
 0x857   :  { %5238 = vmatprep.subr.msk.bf16.mxu1 %vm9120_vm9, %v9089_v35  ;;  %vm6997_vm10 = vmand %vm9122_vm2, %vm9121_vm8  ;;  %vm9126_vm2 = vcmp.ge.s32.totalorder %v6288_v63, %v6850_v61  ;;  %vm9130_vm9 = vcmp.ge.s32.totalorder %v6288_v63, %v6880_v62  ;;  %v5211_v0 = vpack.c.bf16 %v1604_v9, %v1594_v54  ;;  %v9136_v43 = vmov 0  ;;  %5210 = vmatprep.subr.bf16.mxu0 %v5209_v46  ;;  %v1624_v9 = vld [vmem:[#allocation7 + $0x590] sm:$0xff] }
 0x858   :  { %vm7015_vm8 = vmand %vm9126_vm2, %vm9125_vm12  ;;  %v5213_v54 = vpack.c.bf16 %v1625_v4, %v1615_v51  ;;  %v9142_v60 = vmov 0  ;;  %v9146_v46 = vmov 0  ;;  %vm9148_vm0 = vcmp.lt.s32.totalorder %v6288_v63, %v6979_v12 }
 0x859   :  { %v9128_v11 = vsel %vm7015_vm8, 4294967295, %v9127_v11  ;;  %vm7029_vm1 = vmand %vm9130_vm9, %vm9129_vm13  ;;  %vm9135_vm13 = vcmp.ge.s32.totalorder %v6218_v10, %v6850_v61  ;;  %v9150_v51 = vmov 0  ;;  %v5215_v4 = vpack.c.bf16 %v1624_v9, %v1614_v3 }
 0x85a   :  { %v9132_v21 = vsel %vm7029_vm1, 4294967295, %v9131_v21  ;;  %vm9134_vm5 = vmpackc.low %vm6698_vm7, %vm9133_vm11  ;;  %5212 = vmatpush1.bf16.msra.mxu0 %v5211_v0  ;;  %vm9156_vm2 = vnez %v9086_v48  ;;  %v5217_v27 = vpack.c.bf16 %v1645_v57, %v1635_v42  ;;  %v1634_v0 = vld [vmem:[#allocation7 + $0x620] sm:$0xff]  ;;  %v9161_v48 = vmov 0  ;;  %v1664_v42 = vld [vmem:[#allocation7 + $0x7d0] sm:$0xff] }
 0x85b   :  { %5240 = vmatpush1.bf16.msk.msra.mxu1 %vm9134_vm5, %v9089_v35  ;;  %vm7049_vm9 = vmand %vm9135_vm13, %vm2288_vm3  ;;  %vm9138_vm5 = vnez %v9058_v39  ;;  %vm9140_vm3 = vcmp.lt.s32.totalorder %v6218_v10, %v6883_v5  ;;  %vm9141_vm13 = vcmp.ge.s32.totalorder %v6218_v10, %v6880_v62  ;;  %v7082_v39 = vadd.s32 256, %v6218_v10  ;;  %5214 = vmatprep.subr.bf16.mxu0 %v5213_v54  ;;  %v1665_v54 = vld [vmem:[#allocation7 + $0x7d8] sm:$0xff] }
 0x85c   :  { %v9137_v43 = vsel %vm7049_vm9, 4294967295, %v9136_v43  ;;  %vm9139_vm7 = vmpackc.low %vm6742_vm15, %vm9138_vm5  ;;  %vm2296_vm5 = vcmp.lt.s32.totalorder %v6218_v10, %v6953_v18  ;;  %v9165_v3 = vmov 0  ;;  %vm9172_vm9 = vnez %v9094_v45  ;;  %v1685_v57 = vld [vmem:[#allocation7 + $0x8f8] sm:$0xff] }
 0x85d   :  { %5242 = vmatprep.subr.msk.bf16.mxu1 %vm9139_vm7, %v9089_v35  ;;  %vm7073_vm12 = vmand %vm9141_vm13, %vm9140_vm3  ;;  %vm9144_vm3 = vcmp.lt.s32.totalorder %v6288_v63, %v6953_v18  ;;  %vm9145_vm13 = vcmp.ge.s32.totalorder %v6288_v63, %v6950_v37  ;;  %vm9149_vm7 = vcmp.ge.s32.totalorder %v6288_v63, %v6976_v50  ;;  %v9154_v63 = vmov 0 }
 0x85e   :  { %v9143_v60 = vsel %vm7073_vm12, 4294967295, %v9142_v60  ;;  %vm7094_vm11 = vmand %vm9145_vm13, %vm9144_vm3  ;;  %vm9167_vm12 = vcmp.lt.s32.totalorder %v7038_v30, %v6321_v13  ;;  %5216 = vmatpush1.bf16.msra.mxu0 %v5215_v4  ;;  %vm9171_vm13 = vnez %v9103_v52  ;;  %v9174_v9 = vmov 0  ;;  %v1654_v52 = vld [vmem:[#allocation7 + $0x740] sm:$0xff]  ;;  %v1684_v4 = vld [vmem:[#allocation7 + $0x8f0] sm:$0xff] }
 0x85f   :  { %v9147_v46 = vsel %vm7094_vm11, 4294967295, %v9146_v46  ;;  %vm7108_vm8 = vmand %vm9149_vm7, %vm9148_vm0  ;;  %vm9153_vm0 = vcmp.ge.s32.totalorder %v6218_v10, %v6950_v37  ;;  %5218 = vmatprep.subr.bf16.mxu0 %v5217_v27  ;;  %v9180_v59 = vmov 0 }
 0x860   :  { %v9151_v51 = vsel %vm7108_vm8, 4294967295, %v9150_v51  ;;  %vm9152_vm15 = vmpackc.low %vm6805_vm4, %vm6769_vm6  ;;  %vm9157_vm6 = vnez %v9082_v47  ;;  %v1655_v47 = vld [vmem:[#allocation7 + $0x748] sm:$0xff] }
 0x861   :  { %5244 = vmatpush1.bf16.msk.msra.mxu1 %vm9152_vm15, %v9089_v35  ;;  %vm7125_vm7 = vmand %vm9153_vm0, %vm2296_vm5  ;;  %vm9159_vm5 = vcmp.lt.s32.totalorder %v6218_v10, %v6979_v12  ;;  %vm9160_vm0 = vcmp.ge.s32.totalorder %v6218_v10, %v6976_v50  ;;  %vm9163_vm15 = vcmp.lt.s32.totalorder %v7038_v30, %v6308_v31  ;;  %v5221_v45 = vpack.c.bf16 %v1665_v54, %v1655_v47 }
 0x862   :  { %v9155_v63 = vsel %vm7125_vm7, 4294967295, %v9154_v63  ;;  %vm9158_vm4 = vmpackc.low %vm9156_vm2, %vm9157_vm6  ;;  %vm2146_vm2 = vcmp.ge.s32.totalorder %v7082_v39, %v6291_v36  ;;  %vm2242_vm6 = vcmp.lt.s32.totalorder %v7082_v39, %v6308_v31  ;;  %v9169_v31 = vmov 0 }
 0x863   :  { %5246 = vmatprep.subr.msk.bf16.mxu1 %vm9158_vm4, %v9089_v35  ;;  %vm7149_vm3 = vmand %vm9160_vm0, %vm9159_vm5  ;;  %vm9164_vm5 = vcmp.ge.s32.totalorder %v7038_v30, %v6291_v36  ;;  %vm9168_vm4 = vcmp.ge.s32.totalorder %v7038_v30, %v6305_v20  ;;  %v5219_v36 = vpack.c.bf16 %v1644_v14, %v1634_v0  ;;  %v9300_v0 = vld [vmem:[#allocation22_spill] sm:$0xff]  ;;  %v7653_v54 = vadd.s32 160, %v5910_v32 }
 0x864   :  { %v9162_v48 = vsel %vm7149_vm3, 4294967295, %v9161_v48  ;;  %vm7167_vm0 = vmand %vm9164_vm5, %vm9163_vm15  ;;  %vm9176_vm15 = vnez %v9107_v6  ;;  %v1675_v6 = vld [vmem:[#allocation7 + $0x868] sm:$0xff]  ;;  %v2483_v14 = vand.u32 31, %v9300_v0 }
 0x865   :  { %v9166_v3 = vsel %vm7167_vm0, 4294967295, %v9165_v3  ;;  %vm7181_vm11 = vmand %vm9168_vm4, %vm9167_vm12  ;;  %vm2255_vm4 = vcmp.lt.s32.totalorder %v7038_v30, %v6398_v56  ;;  %5220 = vmatpush1.bf16.msra.mxu0 %v5219_v36  ;;  %v7808_v36 = vadd.s32 248, %v5910_v32 }
 0x866   :  { %v9170_v31 = vsel %vm7181_vm11, 4294967295, %v9169_v31  ;;  %vm9173_vm8 = vmpackc.low %vm9171_vm13, %vm9172_vm9  ;;  %vm9178_vm9 = vcmp.lt.s32.totalorder %v7082_v39, %v6321_v13  ;;  %vm9179_vm13 = vcmp.ge.s32.totalorder %v7082_v39, %v6305_v20  ;;  %v9184_v13 = vmov 0  ;;  %5222 = vmatprep.subr.bf16.mxu0 %v5221_v45 }
 0x867   :  { %5248 = vmatpush1.bf16.msk.msra.mxu1 %vm9173_vm8, %v9089_v35  ;;  %vm7195_vm1 = vmand %vm2146_vm2, %vm2242_vm6  ;;  %vm2250_vm6 = vcmp.lt.s32.totalorder %v7082_v39, %v6381_v25  ;;  %v9187_v20 = vmov 0  ;;  %vm9189_vm8 = vnez %v9117_v29  ;;  %v5225_v29 = vpack.c.bf16 %v1685_v57, %v1675_v6  ;;  %v9342_v57 = vld [vmem:[#allocation45_spill] sm:$0xff] }
 0x868   :  { %v9175_v9 = vsel %vm7195_vm1, 4294967295, %v9174_v9  ;;  %vm9177_vm5 = vmpackc.low %vm6941_vm14, %vm9176_vm15  ;;  %vm2154_vm14 = vcmp.ge.s32.totalorder %v7082_v39, %v6363_v1  ;;  %vm9186_vm15 = vcmp.ge.s32.totalorder %v7038_v30, %v6376_v34  ;;  %vm9204_vm1 = vcmp.ge.s32.totalorder %v7038_v30, %v6438_v28 }
 0x869   :  { %5250 = vmatprep.subr.msk.bf16.mxu1 %vm9177_vm5, %v9089_v35  ;;  %vm7219_vm2 = vmand %vm9179_vm13, %vm9178_vm9  ;;  %vm9182_vm5 = vcmp.lt.s32.totalorder %v7038_v30, %v6381_v25  ;;  %vm9183_vm9 = vcmp.ge.s32.totalorder %v7038_v30, %v6363_v1  ;;  %v5223_v1 = vpack.c.bf16 %v1664_v42, %v1654_v52  ;;  %v9191_v25 = vmov 0  ;;  %v9306_v52 = vld [vmem:[#allocation26_spill] sm:$0xff] }
 0x86a   :  { %v9181_v59 = vsel %vm7219_vm2, 4294967295, %v9180_v59  ;;  %vm7237_vm13 = vmand %vm9183_vm9, %vm9182_vm5  ;;  %vm9193_vm5 = vnez %v9132_v21  ;;  %vm9194_vm9 = vnez %v9128_v11  ;;  %v9198_v21 = vmov 0 }
 0x86b   :  { %v9185_v13 = vsel %vm7237_vm13, 4294967295, %v9184_v13  ;;  %vm7251_vm0 = vmand %vm9186_vm15, %vm2255_vm4  ;;  %vm2263_vm15 = vcmp.lt.s32.totalorder %v7038_v30, %v6480_v55  ;;  %vm2262_vm4 = vcmp.lt.s32.totalorder %v7082_v39, %v6480_v55  ;;  %5224 = vmatpush1.bf16.msra.mxu0 %v5223_v1  ;;  %vm9212_vm13 = vnez %v9151_v51  ;;  %v9299_v51 = vld [vmem:[#allocation20_spill] sm:$0xff] }
 0x86c   :  { %v9188_v20 = vsel %vm7251_vm0, 4294967295, %v9187_v20  ;;  %vm9190_vm12 = vmpackc.low %vm6997_vm10, %vm9189_vm8  ;;  %vm9197_vm8 = vcmp.ge.s32.totalorder %v7082_v39, %v6376_v34  ;;  %vm2166_vm10 = vcmp.ge.s32.totalorder %v7082_v39, %v6438_v28  ;;  %v9205_v34 = vmov 0  ;;  %5226 = vmatprep.subr.bf16.mxu0 %v5225_v29 }
 0x86d   :  { %5252 = vmatpush1.bf16.msk.msra.mxu1 %vm9190_vm12, %v9089_v35  ;;  %vm7265_vm11 = vmand %vm2154_vm14, %vm2250_vm6  ;;  %vm9196_vm12 = vcmp.lt.s32.totalorder %v7082_v39, %v6398_v56  ;;  %vm2258_vm6 = vcmp.lt.s32.totalorder %v7082_v39, %v6453_v49  ;;  %v9202_v56 = vmov 0  ;;  %vm9208_vm0 = vnez %v9137_v43 }
 0x86e   :  { %v9192_v25 = vsel %vm7265_vm11, 4294967295, %v9191_v25  ;;  %vm9195_vm7 = vmpackc.low %vm9193_vm5, %vm9194_vm9  ;;  %vm9200_vm9 = vcmp.lt.s32.totalorder %v7038_v30, %v6453_v49  ;;  %v9210_v28 = vmov 0  ;;  %v9215_v49 = vmov 0 }
 0x86f   :  { %5254 = vmatprep.subr.msk.bf16.mxu1 %vm9195_vm7, %v9089_v35  ;;  %vm7289_vm14 = vmand %vm9197_vm8, %vm9196_vm12  ;;  %vm2162_vm7 = vcmp.ge.s32.totalorder %v7082_v39, %v6419_v19  ;;  %vm9201_vm12 = vcmp.ge.s32.totalorder %v7038_v30, %v6419_v19  ;;  %v5227_v19 = vpack.c.bf16 %v1684_v4, %v1674_v24  ;;  %v9220_v55 = vmov 0  ;;  %v9313_v24 = vld [vmem:[#allocation30_spill] sm:$0xff] }
 0x870   :  { %v9199_v21 = vsel %vm7289_vm14, 4294967295, %v9198_v21  ;;  %vm7307_vm8 = vmand %vm9201_vm12, %vm9200_vm9  ;;  %vm2267_vm9 = vcmp.lt.s32.totalorder %v7038_v30, %v6547_v2  ;;  %vm9207_vm12 = vnez %v9143_v60  ;;  %vm2279_vm11 = vcmp.lt.s32.totalorder %v7038_v30, %v6674_v23 }
 0x871   :  { %v9203_v56 = vsel %vm7307_vm8, 4294967295, %v9202_v56  ;;  %vm7318_vm5 = vmand %vm9204_vm1, %vm2263_vm15  ;;  %vm2175_vm1 = vcmp.ge.s32.totalorder %v7038_v30, %v6532_v16  ;;  %vm2271_vm15 = vcmp.lt.s32.totalorder %v7038_v30, %v6574_v53  ;;  %5228 = vmatpush1.bf16.msra.mxu0 %v5227_v19  ;;  %vm9229_vm14 = vnez %v9170_v31 }
 0x872   :  { %v9206_v34 = vsel %vm7318_vm5, 4294967295, %v9205_v34  ;;  %vm9209_vm2 = vmpackc.low %vm9207_vm12, %vm9208_vm0  ;;  %vm9213_vm5 = vnez %v9147_v46  ;;  %vm2275_vm12 = vcmp.lt.s32.totalorder %v7038_v30, %v6647_v8  ;;  %v9237_v43 = vmov 0 }
 0x873   :  { %5256 = vmatpush1.bf16.msk.msra.mxu1 %vm9209_vm2, %v9089_v35  ;;  %vm7332_vm3 = vmand %vm2162_vm7, %vm2258_vm6  ;;  %vm2170_vm7 = vcmp.ge.s32.totalorder %v7082_v39, %v6529_v15  ;;  %vm2266_vm6 = vcmp.lt.s32.totalorder %v7082_v39, %v6547_v2  ;;  %v9222_v2 = vmov 0  ;;  %v7640_v60 = vadd.s32 144, %v5910_v32 }
 0x874   :  { %v9211_v28 = vsel %vm7332_vm3, 4294967295, %v9210_v28  ;;  %vm9214_vm8 = vmpackc.low %vm9212_vm13, %vm9213_vm5  ;;  %vm2179_vm5 = vcmp.ge.s32.totalorder %v7038_v30, %v6609_v17  ;;  %2089 = vmatmul.mubr.f32.vlgmr.msra.gmra.mrb[18].mxu0 %v6173_v33  ;;  %v9247_v33 = vmov 0  ;;  %v7643_v46 = vadd.s32 152, %v5910_v32 }
 0x875   :  { %5258 = vmatprep.subr.msk.bf16.mxu1 %vm9214_vm8, %v9089_v35  ;;  %vm7350_vm2 = vmand %vm2166_vm10, %vm2262_vm4  ;;  %vm9219_vm8 = vcmp.ge.s32.totalorder %v7038_v30, %v6529_v15  ;;  %vm2174_vm4 = vcmp.ge.s32.totalorder %v7082_v39, %v6532_v16  ;;  %vm2270_vm10 = vcmp.lt.s32.totalorder %v7082_v39, %v6574_v53  ;;  %v7387_v15 = vld [vmem:[#allocation5] sm:$0xff]  ;;  %v9227_v16 = vmov 0  ;;  %2807 = vmatprep.mubr.f32.mxu0 %v9108_v26 }
 0x876   :  { %v9216_v49 = vsel %vm7350_vm2, 4294967295, %v9215_v49  ;;  %vm7365_vm3 = vmand %vm9219_vm8, %vm2267_vm9  ;;  %vm9224_vm9 = vnez %v9162_v48  ;;  %vm9225_vm8 = vnez %v9155_v63  ;;  %v9233_v63 = vmov 0 }
 0x877   :  { %v9221_v55 = vsel %vm7365_vm3, 4294967295, %v9220_v55  ;;  %vm7373_vm0 = vmand %vm2175_vm1, %vm2271_vm15  ;;  %vm2183_vm15 = vcmp.ge.s32.totalorder %v7038_v30, %v6632_v22  ;;  %v9235_v53 = vmov 0  ;;  %v2482_v27 = vand.u32 31, %v9299_v51 }
 0x878   :  { %v9223_v2 = vsel %vm7373_vm0, 4294967295, %v9222_v2  ;;  %vm9226_vm13 = vmpackc.low %vm9224_vm9, %vm9225_vm8  ;;  %vm9230_vm0 = vnez %v9166_v3  ;;  %v2498_v48 = vand.u32 31, %v7640_v60  ;;  %v2499_v47 = vand.u32 31, %v7643_v46 }
 0x879   :  { %5260 = vmatpush1.bf16.msk.msra.mxu1 %vm9226_vm13, %v9089_v35  ;;  %vm7389_vm1 = vmand %vm2170_vm7, %vm2266_vm6  ;;  %vm9245_vm7 = vnez %v9185_v13  ;;  %v7656_v3 = vadd.s32 168, %v5910_v32  ;;  %v2485_v42 = vand.u32 31, %v9306_v52  ;;  %v7693_v1 = vadd.s32 184, %v5910_v32 }
 0x87a   :  { %v9228_v16 = vsel %vm7389_vm1, 4294967295, %v9227_v16  ;;  %vm9231_vm3 = vmpackc.low %vm9229_vm14, %vm9230_vm0  ;;  %vm9240_vm14 = vnez %v9175_v9  ;;  %vm2287_vm1 = vcmp.lt.s32.totalorder %v7038_v30, %v6776_v41  ;;  %v9305_v9 = vld [vmem:[#allocation24_spill] sm:$0xff]  ;;  %v2487_v4 = vand.u32 31, %v9313_v24 }
 0x87b   :  { %5262 = vmatprep.subr.msk.bf16.mxu0 %vm9231_vm3, %v9089_v35  ;;  %vm7407_vm6 = vmand %vm2174_vm4, %vm2270_vm10  ;;  %vm9239_vm3 = vnez %v9181_v59  ;;  %vm2178_vm10 = vcmp.ge.s32.totalorder %v7082_v39, %v6609_v17  ;;  %vm2278_vm4 = vcmp.lt.s32.totalorder %v7082_v39, %v6674_v23  ;;  %v9252_v17 = vmov 0 }
 0x87c   :  { %v9234_v63 = vsel %vm7407_vm6, 4294967295, %v9233_v63  ;;  %vm7411_vm9 = vmand %vm2179_vm5, %vm2275_vm12  ;;  %2737 = vmatmul.mubr.f32.vlgmr.msra.gmra.mrb[24].mxu1 %v7387_v15  ;;  %vm9249_vm6 = vnez %v9199_v21  ;;  %vm9250_vm12 = vnez %v9192_v25  ;;  %vm9255_vm5 = vnez %v9203_v56  ;;  %v9312_v25 = vld [vmem:[#allocation28_spill] sm:$0xff] }
 0x87d   :  { %v9236_v53 = vsel %vm7411_vm9, 4294967295, %v9235_v53  ;;  %vm7417_vm8 = vmand %vm2183_vm15, %vm2279_vm11  ;;  %vm2274_vm11 = vcmp.lt.s32.totalorder %v7082_v39, %v6647_v8  ;;  %vm9244_vm15 = vnez %v9188_v20  ;;  %v9259_v8 = vmov 0 }
 0x87e   :  { %v9238_v43 = vsel %vm7417_vm8, 4294967295, %v9237_v43  ;;  %vm9241_vm0 = vmpackc.low %vm9239_vm3, %vm9240_vm14  ;;  %vm2191_vm14 = vcmp.ge.s32.totalorder %v7038_v30, %v6734_v38  ;;  %v9266_v23 = vmov 0  ;;  %v2484_v45 = vand.u32 31, %v9305_v9 }
 0x87f   :  { %5264 = vmatpush1.bf16.msk.msra.mxu0 %vm9241_vm0, %v9089_v35  ;;  %vm9246_vm3 = vmpackc.low %vm9244_vm15, %vm9245_vm7  ;;  %vm2182_vm0 = vcmp.ge.s32.totalorder %v7082_v39, %v6632_v22  ;;  %vm2187_vm7 = vcmp.ge.s32.totalorder %v7038_v30, %v6731_v44  ;;  %vm2283_vm15 = vcmp.lt.s32.totalorder %v7038_v30, %v6749_v7  ;;  %v9257_v22 = vmov 0 }
 0x880   :  { %5266 = vmatprep.subr.msk.bf16.mxu0 %vm9246_vm3, %v9089_v35  ;;  %vm7458_vm3 = vmand %vm2178_vm10, %vm2274_vm11  ;;  %vm2186_vm10 = vcmp.ge.s32.totalorder %v7082_v39, %v6731_v44  ;;  %vm2282_vm11 = vcmp.lt.s32.totalorder %v7082_v39, %v6749_v7  ;;  %v9261_v7 = vmov 0  ;;  %v2500_v59 = vand.u32 31, %v7653_v54 }
 0x881   :  { %v9248_v33 = vsel %vm7458_vm3, 4294967295, %v9247_v33  ;;  %vm9251_vm9 = vmpackc.low %vm9249_vm6, %vm9250_vm12  ;;  %vm9254_vm3 = vnez %v9206_v34  ;;  %vm2190_vm6 = vcmp.ge.s32.totalorder %v7082_v39, %v6734_v38  ;;  %v2501_v6 = vand.u32 31, %v7656_v3 }
 0x882   :  { %vm7472_vm8 = vmand %vm2182_vm0, %vm2278_vm4  ;;  %v7690_v20 = vadd.s32 176, %v5910_v32  ;;  %v2486_v29 = vand.u32 31, %v9312_v25  ;;  %v2503_v56 = vand.u32 31, %v7693_v1  ;;  %v7704_v34 = vadd.s32 192, %v5910_v32 }
 0x883   :  { %5268 = vmatpush1.bf16.msk.msra.mxu0 %vm9251_vm9, %v9089_v35  ;;  %v9253_v17 = vsel %vm7472_vm8, 4294967295, %v9252_v17  ;;  %vm9256_vm13 = vmpackc.low %vm9254_vm3, %vm9255_vm5  ;;  %vm2286_vm9 = vcmp.lt.s32.totalorder %v7082_v39, %v6776_v41  ;;  %vm9264_vm5 = vnez %v9211_v28  ;;  %v9284_v41 = vmov 0 }
 0x884   :  { %5270 = vmatprep.subr.msk.bf16.mxu0 %vm9256_vm13, %v9089_v35  ;;  %vm7486_vm2 = vmand %vm2187_vm7, %vm2283_vm15  ;;  %vm9263_vm13 = vnez %v9216_v49  ;;  %v2502_v21 = vand.u32 31, %v7690_v20  ;;  %9314 = vst [vmem:[#allocation20_spill] sm:$0xff] %v7704_v34  ;;  %v7707_v19 = vadd.s32 200, %v5910_v32  ;;  %v7758_v44 = vadd.s32 232, %v5910_v32 }
 0x885   :  { %v9258_v22 = vsel %vm7486_vm2, 4294967295, %v9257_v22  ;;  %vm7494_vm12 = vmand %vm2191_vm14, %vm2287_vm1  ;;  %vm9268_vm1 = vnez %v9223_v2  ;;  %vm9269_vm14 = vnez %v9221_v55  ;;  %v9320_v55 = vld [vmem:[#allocation32_spill] sm:$0xff]  ;;  %v7805_v31 = vadd.s32 240, %v5910_v32 }
 0x886   :  { %v9260_v8 = vsel %vm7494_vm12, 4294967295, %v9259_v8  ;;  %vm7498_vm4 = vmand %vm2186_vm10, %vm2282_vm11  ;;  %vm2195_vm11 = vcmp.ge.s32.totalorder %v7038_v30, %v6850_v61  ;;  %vm9278_vm12 = vnez %v9236_v53  ;;  %9315 = vst [vmem:[#allocation22_spill] sm:$0xff] %v7707_v19  ;;  %v2488_v2 = vand.u32 31, %v9320_v55 }
 0x887   :  { %v9262_v7 = vsel %vm7498_vm4, 4294967295, %v9261_v7  ;;  %vm9265_vm0 = vmpackc.low %vm9263_vm13, %vm9264_vm5  ;;  %vm2199_vm13 = vcmp.ge.s32.totalorder %v7038_v30, %v6880_v62  ;;  %vm2295_vm5 = vcmp.lt.s32.totalorder %v7038_v30, %v6883_v5  ;;  %vm2294_vm4 = vcmp.lt.s32.totalorder %v7082_v39, %v6883_v5  ;;  %9329 = vst [vmem:[#allocation30_spill] sm:$0xff] %v7758_v44 }
 0x888   :  { %5272 = vmatpush1.bf16.msk.msra.mxu0 %vm9265_vm0, %v9089_v35  ;;  %vm7508_vm7 = vmand %vm2190_vm6, %vm2286_vm9  ;;  %vm2291_vm6 = vcmp.lt.s32.totalorder %v7038_v30, %v6853_v40  ;;  %vm9273_vm9 = vnez %v9228_v16  ;;  %vm2198_vm0 = vcmp.ge.s32.totalorder %v7082_v39, %v6880_v62  ;;  %v7628_v62 = vadd.s32 128, %v5910_v32  ;;  %9339 = vst [vmem:[#allocation32_spill] sm:$0xff] %v7805_v31 }
 0x889   :  { %v9267_v23 = vsel %vm7508_vm7, 4294967295, %v9266_v23  ;;  %vm9270_vm15 = vmpackc.low %vm9268_vm1, %vm9269_vm14  ;;  %vm2194_vm1 = vcmp.ge.s32.totalorder %v7082_v39, %v6850_v61  ;;  %vm2290_vm14 = vcmp.lt.s32.totalorder %v7082_v39, %v6853_v40  ;;  %vm9277_vm7 = vnez %v9238_v43 }
 0x88a   :  { %5274 = vmatprep.subr.msk.bf16.mxu0 %vm9270_vm15, %v9089_v35  ;;  %vm9272_vm15 = vnez %v9234_v63  ;;  %vm7548_vm2 = vmand %vm2195_vm11, %vm2291_vm6  ;;  %vm2299_vm11 = vcmp.lt.s32.totalorder %v7038_v30, %v6953_v18  ;;  %v7631_v5 = vadd.s32 136, %v5910_v32  ;;  %v2504_v63 = vand.u32 31, %v7704_v34 }
 0x88b   :  { %vm9274_vm10 = vmpackc.low %vm9272_vm15, %vm9273_vm9  ;;  %vm2207_vm9 = vcmp.ge.s32.totalorder %v7038_v30, %v6976_v50  ;;  %vm9292_vm15 = vnez %v9258_v22  ;;  %v2505_v53 = vand.u32 31, %v7707_v19  ;;  %v7731_v43 = vadd.s32 208, %v5910_v32 }
 0x88c   :  { %5276 = vmatpush1.bf16.msk.msra.mxu0 %vm9274_vm10, %v9089_v35  ;;  %vm9279_vm3 = vmpackc.low %vm9277_vm7, %vm9278_vm12  ;;  %vm2203_vm10 = vcmp.ge.s32.totalorder %v7038_v30, %v6950_v37  ;;  %vm2303_vm12 = vcmp.lt.s32.totalorder %v7038_v30, %v6979_v12  ;;  %v2495_v13 = vand.u32 31, %v9342_v57  ;;  %v7832_v49 = vadd.s32 264, %v5910_v32 }
 0x88d   :  { %5278 = vmatprep.subr.msk.bf16.mxu0 %vm9279_vm3, %v9089_v35  ;;  %vm7562_vm8 = vmand %vm2199_vm13, %vm2295_vm5  ;;  %vm9286_vm3 = vnez %v9253_v17  ;;  %vm9287_vm13 = vnez %v9248_v33  ;;  %9322 = vst [vmem:[#allocation24_spill] sm:$0xff] %v7731_v43  ;;  %v7734_v33 = vadd.s32 216, %v5910_v32  ;;  %v7847_v17 = vadd.s32 272, %v5910_v32 }
 0x88e   :  { %vm7570_vm6 = vmand %vm2194_vm1, %vm2290_vm14  ;;  %vm9291_vm14 = vnez %v9260_v8  ;;  %v2506_v8 = vand.u32 31, %v7731_v43  ;;  %v7850_v22 = vadd.s32 280, %v5910_v32  ;;  %v7859_v40 = vadd.s32 424, %v5910_v32 }
 0x88f   :  { %vm7578_vm7 = vmand %vm2198_vm0, %vm2294_vm4  ;;  %9323 = vst [vmem:[#allocation26_spill] sm:$0xff] %v7734_v33  ;;  %v1708_v19 = vsub.s32 4, %v5910_v32  ;;  %v1716_v34 = vsub.s32 6, %v5910_v32 }
 0x890   :  { %v9285_v41 = vsel %vm7578_vm7, 4294967295, %v9284_v41  ;;  %vm9288_vm5 = vmpackc.low %vm9286_vm3, %vm9287_vm13  ;;  %vm2202_vm3 = vcmp.ge.s32.totalorder %v7082_v39, %v6950_v37  ;;  %v2496_v37 = vand.u32 31, %v7628_v62 }
 0x891   :  { %5280 = vmatpush1.bf16.msk.msra.mxu0 %vm9288_vm5, %v9089_v35  ;;  %vm7588_vm1 = vmand %vm2203_vm10, %vm2299_vm11  ;;  %vm2298_vm10 = vcmp.lt.s32.totalorder %v7082_v39, %v6953_v18  ;;  %vm9294_vm11 = vnez %v9285_v41  ;;  %vm2206_vm5 = vcmp.ge.s32.totalorder %v7082_v39, %v6976_v50  ;;  %v2497_v18 = vand.u32 31, %v7631_v5  ;;  %v9334_v41 = vld [vmem:[#allocation36_spill] sm:$0xff] }
 0x892   :  { %vm9293_vm4 = vmpackc.low %vm9291_vm14, %vm9292_vm15  ;;  %v2480_v50 = vand.u32 31, %v5910_v32  ;;  %v2490_v61 = vand.u32 31, %v9334_v41 }
 0x893   :  { %5282 = vmatprep.subr.msk.bf16.mxu0 %vm9293_vm4, %v9089_v35  ;;  %vm2367_vm0 = vmand %vm2207_vm9, %vm2303_vm12  ;;  %vm2302_vm9 = vcmp.lt.s32.totalorder %v7082_v39, %v6979_v12  ;;  %v9298_v12 = vld [vmem:[#allocation17_spill] sm:$0xff] }
 0x894   :  { %vm5285_vm7 = vmpackc.low %vm7562_vm8, %vm7548_vm2  ;;  %vm9295_vm2 = vnez %v9267_v23  ;;  %vm9296_vm8 = vnez %v9262_v7  ;;  %v2481_v11 = vand.u32 31, %v9298_v12  ;;  %9311 = vst [vmem:[#allocation17_spill] sm:$0xff] %v7693_v1  ;;  %v2507_v7 = vand.u32 31, %v7734_v33  ;;  %v1687_v1 = vld [vmem:[#allocation8 + $0x10] sm:$0x3] }
 0x895   :  { %vm5287_vm13 = vmpackc.low %vm9294_vm11, %vm7570_vm6  ;;  %v7755_v23 = vadd.s32 224, %v5910_v32  ;;  %v8001_v33 = vadd.s32 488, %v5910_v32 }
 0x896   :  { %vm9297_vm12 = vmpackc.low %vm9295_vm2, %vm9296_vm8  ;;  %vm2563_vm2 = vcmp.eq.s32.totalorder %v2499_v47, %v6218_v10 }
 0x897   :  { %5284 = vmatpush1.bf16.msk.msra.mxu0 %vm9297_vm12, %v9089_v35  ;;  %vm5289_vm14 = vmpackc.low %vm2367_vm0, %vm7588_vm1  ;;  %vm2561_vm1 = vcmp.eq.s32.totalorder %v2497_v18, %v6218_v10  ;;  %9328 = vst [vmem:[#allocation28_spill] sm:$0xff] %v7755_v23 }
 0x898   :  { %5286 = vmatprep.subr.msk.bf16.mxu0 %vm5285_vm7, %v9089_v35  ;;  %vm2362_vm15 = vmand %vm2202_vm3, %vm2298_vm10  ;;  %vm2560_vm7 = vcmp.eq.s32.totalorder %v2496_v37, %v6218_v10  ;;  %vm2544_vm3 = vcmp.eq.s32.totalorder %v2480_v50, %v6218_v10  ;;  %vm2545_vm10 = vcmp.eq.s32.totalorder %v2481_v11, %v6218_v10  ;;  %v9335_v37 = vld [vmem:[#allocation38_spill] sm:$0xff]  ;;  %v2508_v11 = vand.u32 31, %v7755_v23  ;;  %9376 = vst [vmem:[#allocation56_spill] sm:$0xff] %v8001_v33 }
 0x899   :  { %vm2366_vm6 = vmand %vm2206_vm5, %vm2302_vm9  ;;  %vm7665_vm5 = vcmp.eq.s32.totalorder %v2483_v14, %v6218_v10  ;;  %vm2562_vm9 = vcmp.eq.s32.totalorder %v2498_v48, %v6218_v10  ;;  %v2491_v18 = vand.u32 31, %v9335_v37  ;;  %v2492_v14 = vand.u32 31, %v6653_v58  ;;  %v9338_v48 = vld [vmem:[#allocation41_spill] sm:$0xff] }
 0x89a   :  { %vm5291_vm4 = vmpackc.low %vm2366_vm6, %vm2362_vm15  ;;  %vm7685_vm15 = vcmp.eq.s32.totalorder %v2485_v42, %v6218_v10  ;;  %vm2564_vm6 = vcmp.eq.s32.totalorder %v2500_v59, %v6218_v10  ;;  %v2493_v47 = vand.u32 31, %v9338_v48  ;;  %v2511_v42 = vand.u32 31, %v7808_v36  ;;  %v9341_v59 = vld [vmem:[#allocation43_spill] sm:$0xff] }
 0x89b   :  { %5288 = vmatpush1.bf16.msk.msra.mxu0 %vm5287_vm13, %v9089_v35  ;;  %vm5293_vm0 = vmpackc.low %vm2561_vm1, %vm2560_vm7  ;;  %vm7660_vm13 = vcmp.eq.s32.totalorder %v2482_v27, %v6218_v10  ;;  %v2509_v27 = vand.u32 31, %v7758_v44  ;;  %v7865_v50 = vadd.s32 288, %v5910_v32  ;;  %v7982_v44 = vadd.s32 336, %v5910_v32 }
 0x89c   :  { %5290 = vmatprep.subr.msk.bf16.mxu0 %vm5289_vm14, %v9089_v35  ;;  %5294 = vmatprep.subr.msk.bf16.mxu1 %vm5293_vm0, %v9089_v35  ;;  %vm5295_vm11 = vmpackc.low %vm2545_vm10, %vm2544_vm3  ;;  %vm7680_vm14 = vcmp.eq.s32.totalorder %v2484_v45, %v6218_v10  ;;  %vm7715_vm0 = vcmp.eq.s32.totalorder %v2486_v29, %v6218_v10  ;;  %vm7720_vm3 = vcmp.eq.s32.totalorder %v2487_v4, %v6218_v10  ;;  %v2510_v45 = vand.u32 31, %v7805_v31 }
 0x89d   :  { %5296 = vmatpush3.bf16.msk.msra.mxu1 %vm5295_vm11, %v9089_v35  ;;  %vm5299_vm8 = vmpackc.low %vm7665_vm5, %vm7660_vm13  ;;  %vm2566_vm10 = vcmp.eq.s32.totalorder %v2502_v21, %v6218_v10  ;;  %vm2567_vm11 = vcmp.eq.s32.totalorder %v2503_v56, %v6218_v10  ;;  %vm7738_vm5 = vcmp.eq.s32.totalorder %v2504_v63, %v6218_v10  ;;  %v7818_v29 = vadd.s32 384, %v5910_v32  ;;  %9371 = vst [vmem:[#allocation53_spill] sm:$0xff] %v7982_v44 }
 0x89e   :  { %vm5297_vm12 = vmpackc.low %vm2563_vm2, %vm2562_vm9  ;;  %vm7743_vm9 = vcmp.eq.s32.totalorder %v2505_v53, %v6218_v10  ;;  %v7821_v4 = vadd.s32 392, %v5910_v32  ;;  %v7826_v21 = vadd.s32 256, %v5910_v32  ;;  %v7840_v63 = vadd.s32 400, %v5910_v32 }
 0x89f   :  { %5292 = vmatpush1.bf16.msk.msra.mxu0 %vm5291_vm4, %v9089_v35  ;;  %5298 = vmatprep.subr.msk.bf16.mxu1 %vm5297_vm12, %v9089_v35  ;;  %vm2565_vm4 = vcmp.eq.s32.totalorder %v2501_v6, %v6218_v10  ;;  %vm5303_vm1 = vmpackc.low %vm7685_vm15, %vm7680_vm14  ;;  %vm7765_vm12 = vcmp.eq.s32.totalorder %v2488_v2, %v6218_v10  ;;  %vm7777_vm15 = vcmp.eq.s32.totalorder %v2506_v8, %v6218_v10  ;;  %v2494_v6 = vand.u32 31, %v9341_v59 }
 0x8a0   :  { %vm5301_vm7 = vmpackc.low %vm2565_vm4, %vm2564_vm6  ;;  %vm2571_vm6 = vcmp.eq.s32.totalorder %v2507_v7, %v6218_v10  ;;  %v2528_v56 = vand.u32 31, %v7818_v29  ;;  %v2529_v28 = vand.u32 31, %v7821_v4  ;;  %v2512_v2 = vand.u32 31, %v7826_v21 }
 0x8a1   :  { %5300 = vmatpush3.bf16.msk.msra.mxu1 %vm5299_vm8, %v9089_v35  ;;  %vm5305_vm13 = vmpackc.low %vm2567_vm11, %vm2566_vm10  ;;  %vm2573_vm10 = vcmp.eq.s32.totalorder %v2509_v27, %v6218_v10  ;;  %v7844_v53 = vadd.s32 408, %v5910_v32  ;;  %v2530_v8 = vand.u32 31, %v7840_v63  ;;  %v7856_v7 = vadd.s32 416, %v5910_v32 }
 0x8a2   :  { %2808 = vmatmul.mubr.f32.vlgmr.msra.gmra.mrb[20].mxu0 %v7387_v15  ;;  %5302 = vmatprep.subr.msk.bf16.mxu1 %vm5301_vm7, %v9089_v35  ;;  %v9321_v15 = vld [vmem:[#allocation34_spill] sm:$0xff]  ;;  %vm5307_vm2 = vmpackc.low %vm7720_vm3, %vm7715_vm0  ;;  %vm2555_vm0 = vcmp.eq.s32.totalorder %v2491_v18, %v6218_v10  ;;  %vm2572_vm3 = vcmp.eq.s32.totalorder %v2508_v11, %v6218_v10  ;;  %v2515_v18 = vand.u32 31, %v7850_v22  ;;  %v2533_v27 = vand.u32 31, %v7859_v40 }
 0x8a3   :  { %v2489_v16 = vand.u32 31, %v9321_v15  ;;  %vm5309_vm8 = vmpackc.low %vm7743_vm9, %vm7738_vm5  ;;  %vm2556_vm5 = vcmp.eq.s32.totalorder %v2492_v14, %v6218_v10  ;;  %vm2557_vm9 = vcmp.eq.s32.totalorder %v2493_v47, %v6218_v10  ;;  %9340 = vst [vmem:[#allocation34_spill] sm:$0xff] %v7808_v36  ;;  %v2531_v38 = vand.u32 31, %v7844_v53 }
 0x8a4   :  { %vm5313_vm7 = vmpackc.low %vm2571_vm6, %vm7777_vm15  ;;  %vm2558_vm15 = vcmp.eq.s32.totalorder %v2494_v6, %v6218_v10  ;;  %vm2559_vm6 = vcmp.eq.s32.totalorder %v2495_v13, %v6218_v10  ;;  %v2532_v11 = vand.u32 31, %v7856_v7  ;;  %v7872_v14 = vadd.s32 296, %v5910_v32 }
 0x8a5   :  { %5304 = vmatpush3.bf16.msk.msra.mxu1 %vm5303_vm1, %v9089_v35  ;;  %vm7770_vm14 = vcmp.eq.s32.totalorder %v2489_v16, %v6218_v10  ;;  %vm2554_vm1 = vcmp.eq.s32.totalorder %v2490_v61, %v6218_v10  ;;  %v2513_v16 = vand.u32 31, %v7832_v49  ;;  %v2514_v61 = vand.u32 31, %v7847_v17 }
 0x8a6   :  { %5306 = vmatprep.subr.msk.bf16.mxu1 %vm5305_vm13, %v9089_v35  ;;  %vm5311_vm4 = vmpackc.low %vm7770_vm14, %vm7765_vm12  ;;  %vm2575_vm12 = vcmp.eq.s32.totalorder %v2511_v42, %v6218_v10  ;;  %v2516_v47 = vand.u32 31, %v7865_v50  ;;  %v2517_v6 = vand.u32 31, %v7872_v14  ;;  %v7890_v13 = vadd.s32 432, %v5910_v32 }
 0x8a7   :  { %vm5315_vm11 = vmpackc.low %vm2555_vm0, %vm2554_vm1  ;;  %vm2593_vm1 = vcmp.eq.s32.totalorder %v2529_v28, %v6218_v10  ;;  %v7899_v28 = vadd.s32 440, %v5910_v32  ;;  %v7985_v23 = vadd.s32 344, %v5910_v32  ;;  %v2522_v31 = vand.u32 31, %v7982_v44 }
 0x8a8   :  { %vm5317_vm13 = vmpackc.low %vm2573_vm10, %vm2572_vm3  ;;  %vm2576_vm3 = vcmp.eq.s32.totalorder %v2512_v2, %v6218_v10  ;;  %vm2577_vm10 = vcmp.eq.s32.totalorder %v2513_v16, %v6218_v10  ;;  %9347 = vst [vmem:[#allocation36_spill] sm:$0xff] %v7890_v13  ;;  %v7902_v2 = vadd.s32 304, %v5910_v32  ;;  %v7905_v16 = vadd.s32 312, %v5910_v32 }
 0x8a9   :  { %5308 = vmatpush3.bf16.msk.msra.mxu1 %vm5307_vm2, %v9089_v35  ;;  %vm5319_vm2 = vmpackc.low %vm2557_vm9, %vm2556_vm5  ;;  %vm2595_vm5 = vcmp.eq.s32.totalorder %v2531_v38, %v6218_v10  ;;  %vm2578_vm9 = vcmp.eq.s32.totalorder %v2514_v61, %v6218_v10  ;;  %9350 = vst [vmem:[#allocation38_spill] sm:$0xff] %v7899_v28  ;;  %v2534_v38 = vand.u32 31, %v7890_v13  ;;  %v7919_v61 = vadd.s32 448, %v5910_v32 }
 0x8aa   :  { %5310 = vmatprep.subr.msk.bf16.mxu1 %vm5309_vm8, %v9089_v35  ;;  %vm2574_vm8 = vcmp.eq.s32.totalorder %v2510_v45, %v6218_v10  ;;  %9351 = vst [vmem:[#allocation41_spill] sm:$0xff] %v7902_v2  ;;  %9352 = vst [vmem:[#allocation43_spill] sm:$0xff] %v7905_v16  ;;  %v7933_v45 = vadd.s32 320, %v5910_v32 }
 0x8ab   :  { %vm5321_vm14 = vmpackc.low %vm2575_vm12, %vm2574_vm8  ;;  %vm7879_vm12 = vcmp.eq.s32.totalorder %v2532_v11, %v6218_v10  ;;  %9355 = vst [vmem:[#allocation45_spill] sm:$0xff] %v7919_v61  ;;  %v2535_v11 = vand.u32 31, %v7899_v28  ;;  %v2536_v42 = vand.u32 31, %v7919_v61 }
 0x8ac   :  { %9357 = vst [vmem:[#allocation49_spill] sm:$0xff] %v7933_v45  ;;  %9372 = vst [vmem:[#allocation54_spill] sm:$0xff] %v7985_v23 }
 0x8ad   :  { %5312 = vmatpush3.bf16.msk.msra.mxu1 %vm5311_vm4, %v9089_v35  ;;  %vm5323_vm4 = vmpackc.low %vm2559_vm6, %vm2558_vm15  ;;  %vm7894_vm6 = vcmp.eq.s32.totalorder %v2516_v47, %v6218_v10  ;;  %v2519_v47 = vand.u32 31, %v7905_v16 }
 0x8ae   :  { %5314 = vmatprep.subr.msk.bf16.mxu1 %vm5313_vm7, %v9089_v35  ;;  %vm2592_vm7 = vcmp.eq.s32.totalorder %v2528_v56, %v6218_v10  ;;  %v7939_v56 = vadd.s32 328, %v5910_v32 }
 0x8af   :  { %vm5325_vm0 = vmpackc.low %vm2593_vm1, %vm2592_vm7  ;;  %vm7913_vm7 = vcmp.eq.s32.totalorder %v2517_v6, %v6218_v10 }
 0x8b0   :  { %5326 = vmatprep.subr.msk.bf16.mxu0 %vm5325_vm0, %v9089_v35  ;;  %vm5335_vm1 = vmpackc.low %vm7913_vm7, %vm7894_vm6  ;;  %vm2598_vm0 = vcmp.eq.s32.totalorder %v2534_v38, %v6218_v10  ;;  %9358 = vst [vmem:[#allocation50_spill] sm:$0xff] %v7939_v56  ;;  %v2520_v38 = vand.u32 31, %v7933_v45  ;;  %v2541_v45 = vand.u32 31, %v8001_v33 }
 0x8b1   :  { %5316 = vmatpush3.bf16.msk.msra.mxu1 %vm5315_vm11, %v9089_v35  ;;  %vm5327_vm11 = vmpackc.low %vm2577_vm10, %vm2576_vm3  ;;  %vm2599_vm3 = vcmp.eq.s32.totalorder %v2535_v11, %v6218_v10  ;;  %v2523_v11 = vand.u32 31, %v7985_v23 }
 0x8b2   :  { %5318 = vmatprep.subr.msk.bf16.mxu1 %vm5317_vm13, %v9089_v35  ;;  %5328 = vmatpush3.bf16.msk.msra.mxu0 %vm5327_vm11, %v9089_v35  ;;  %vm2594_vm13 = vcmp.eq.s32.totalorder %v2530_v8, %v6218_v10  ;;  %vm7948_vm11 = vcmp.eq.s32.totalorder %v2519_v47, %v6218_v10  ;;  %v7966_v47 = vadd.s32 464, %v5910_v32 }
 0x8b3   :  { %vm5329_vm8 = vmpackc.low %vm2595_vm5, %vm2594_vm13  ;;  %vm7955_vm5 = vcmp.eq.s32.totalorder %v2536_v42, %v6218_v10  ;;  %v8043_v42 = vadd.s32 504, %v5910_v32 }
 0x8b4   :  { %5330 = vmatprep.subr.msk.bf16.mxu0 %vm5329_vm8, %v9089_v35  ;;  %vm5337_vm13 = vmpackc.low %vm2599_vm3, %vm2598_vm0  ;;  %9367 = vst [vmem:[#allocation51_spill] sm:$0xff] %v7966_v47  ;;  %vm7974_vm8 = vcmp.eq.s32.totalorder %v2520_v38, %v6218_v10  ;;  %v2538_v8 = vand.u32 31, %v7966_v47  ;;  %v7998_v38 = vadd.s32 480, %v5910_v32  ;;  %vm2587_vm0 = vcmp.eq.s32.totalorder %v2523_v11, %v6218_v10 }
 0x8b5   :  { %5320 = vmatpush3.bf16.msk.msra.mxu1 %vm5319_vm2, %v9089_v35  ;;  %vm2579_vm2 = vcmp.eq.s32.totalorder %v2515_v18, %v6218_v10  ;;  %v7922_v18 = vadd.s32 456, %v5910_v32  ;;  %9382 = vst [vmem:[#allocation60_spill] sm:$0xff] %v8043_v42 }
 0x8b6   :  { %5322 = vmatprep.subr.msk.bf16.mxu1 %vm5321_vm14, %v9089_v35  ;;  %vm7884_vm14 = vcmp.eq.s32.totalorder %v2533_v27, %v6218_v10  ;;  %vm5331_vm15 = vmpackc.low %vm2579_vm2, %vm2578_vm9  ;;  %v2518_v27 = vand.u32 31, %v7902_v2  ;;  %9375 = vst [vmem:[#allocation55_spill] sm:$0xff] %v7998_v38  ;;  %v2540_v47 = vand.u32 31, %v7998_v38 }
 0x8b7   :  { %5332 = vmatpush3.bf16.msk.msra.mxu0 %vm5331_vm15, %v9089_v35  ;;  %9356 = vst [vmem:[#allocation48_spill] sm:$0xff] %v7922_v18  ;;  %v2537_v6 = vand.u32 31, %v7922_v18  ;;  %vm8011_vm15 = vcmp.eq.s32.totalorder %v2538_v8, %v6218_v10 }
 0x8b8   :  { %vm7943_vm10 = vcmp.eq.s32.totalorder %v2518_v27, %v6218_v10  ;;  %v2521_v27 = vand.u32 31, %v7939_v56  ;;  %v8007_v56 = vadd.s32 352, %v5910_v32  ;;  %vm2604_vm3 = vcmp.eq.s32.totalorder %v2540_v47, %v6218_v10 }
 0x8b9   :  { %5324 = vmatpush3.bf16.msk.msra.mxu1 %vm5323_vm4, %v9089_v35  ;;  %vm5333_vm4 = vmpackc.low %vm7884_vm14, %vm7879_vm12  ;;  %vm7960_vm9 = vcmp.eq.s32.totalorder %v2537_v6, %v6218_v10  ;;  %v7979_v6 = vadd.s32 472, %v5910_v32  ;;  %v8050_v47 = vadd.s32 376, %v5910_v32 }
 0x8ba   :  { %5334 = vmatprep.subr.msk.bf16.mxu0 %vm5333_vm4, %v9089_v35  ;;  %vm5339_vm2 = vmpackc.low %vm7948_vm11, %vm7943_vm10  ;;  %vm7992_vm14 = vcmp.eq.s32.totalorder %v2521_v27, %v6218_v10  ;;  %9377 = vst [vmem:[#allocation57_spill] sm:$0xff] %v8007_v56  ;;  %v2524_v8 = vand.u32 31, %v8007_v56  ;;  %vm2605_vm10 = vcmp.eq.s32.totalorder %v2541_v45, %v6218_v10  ;;  %v8047_v45 = vadd.s32 368, %v5910_v32  ;;  %v1686_v27 = vld [vmem:[#allocation8 + $0x8] sm:$0xff] }
 0x8bb   :  { %5336 = vmatpush3.bf16.msk.msra.mxu0 %vm5335_vm1, %v9089_v35  ;;  %9370 = vst [vmem:[#allocation52_spill] sm:$0xff] %v7979_v6  ;;  %vm5341_vm12 = vmpackc.low %vm7960_vm9, %vm7955_vm5  ;;  %v2539_v43 = vand.u32 31, %v7979_v6  ;;  %v8018_v6 = vadd.s32 360, %v5910_v32  ;;  %vm2586_vm1 = vcmp.eq.s32.totalorder %v2522_v31, %v6218_v10  ;;  %v2527_v11 = vand.u32 31, %v8050_v47 }
 0x8bc   :  { %5338 = vmatprep.subr.msk.bf16.mxu0 %vm5337_vm13, %v9089_v35  ;;  %vm5343_vm6 = vmpackc.low %vm7992_vm14, %vm7974_vm8  ;;  %vm2588_vm5 = vcmp.eq.s32.totalorder %v2524_v8, %v6218_v10  ;;  %9383 = vst [vmem:[#allocation61_spill] sm:$0xff] %v8047_v45  ;;  %v2526_v31 = vand.u32 31, %v8047_v45  ;;  %v1704_v8 = vsub.s32 3, %v5910_v32  ;;  %v1709_v16 = vrot.slane %v1686_v27, %v1708_v19 }
 0x8bd   :  { %9380 = vst [vmem:[#allocation58_spill] sm:$0xff] %v8018_v6  ;;  %vm2603_vm4 = vcmp.eq.s32.totalorder %v2539_v43, %v6218_v10  ;;  %v2525_v33 = vand.u32 31, %v8018_v6  ;;  %vm5347_vm11 = vmpackc.low %vm2587_vm0, %vm2586_vm1  ;;  %v8040_v43 = vadd.s32 496, %v5910_v32  ;;  %v1717_v2 = vrot.slane %v1686_v27, %v1716_v34 }
 0x8be   :  { %vm5345_vm7 = vmpackc.low %vm2603_vm4, %vm8011_vm15  ;;  %9384 = vst [vmem:[#allocation62_spill] sm:$0xff] %v8050_v47  ;;  %vm2590_vm15 = vcmp.eq.s32.totalorder %v2526_v31, %v6218_v10  ;;  %v9385_v47 = vld [vmem:[#allocation15_spill] sm:$0xff]  ;;  %v1705_v6 = vrot.slane %v1686_v27, %v1704_v8  ;;  %v1720_v8 = vsub.s32 7, %v5910_v32 }
 0x8bf   :  { %5340 = vmatpush3.bf16.msk.msra.mxu0 %vm5339_vm2, %v9089_v35  ;;  %vm5349_vm13 = vmpackc.low %vm2605_vm10, %vm2604_vm3  ;;  %vm2589_vm9 = vcmp.eq.s32.totalorder %v2525_v33, %v6218_v10  ;;  %9381 = vst [vmem:[#allocation59_spill] sm:$0xff] %v8040_v43  ;;  %v2542_v36 = vand.u32 31, %v8040_v43  ;;  %v2543_v33 = vand.u32 31, %v8043_v42  ;;  %v1693_v45 = vrot.slane %v1686_v27, %v9385_v47  ;;  %v9387_v43 = vld [vmem:[#allocation16_spill] sm:$0xff] }
 0x8c0   :  { %5342 = vmatprep.subr.msk.bf16.mxu0 %vm5341_vm12, %v9089_v35  ;;  %vm5351_vm2 = vmpackc.low %vm2589_vm9, %vm2588_vm5  ;;  %v9386_v42 = vsub.s32 2, %v5910_v32  ;;  %v1725_v19 = vrot.slane %v1687_v1, %v9385_v47  ;;  %v1729_v34 = vrot.slane %v1687_v1, %v9387_v43 }
 0x8c1   :  { %vm2606_vm8 = vcmp.eq.s32.totalorder %v2542_v36, %v6218_v10  ;;  %vm2607_vm12 = vcmp.eq.s32.totalorder %v2543_v33, %v6218_v10  ;;  %v1697_v33 = vrot.slane %v1686_v27, %v9387_v43  ;;  %v2960_v43 = vmul.u32 16, %v9298_v12 }
 0x8c2   :  { %vm5353_vm14 = vmpackc.low %vm2607_vm12, %vm2606_vm8  ;;  %v1701_v36 = vrot.slane %v1686_v27, %v9386_v42  ;;  %v1712_v42 = vsub.s32 5, %v5910_v32 }
 0x8c3   :  { %5344 = vmatpush3.bf16.msk.msra.mxu0 %vm5343_vm6, %v9089_v35  ;;  %vm2591_vm6 = vcmp.eq.s32.totalorder %v2527_v11, %v6218_v10  ;;  %vm2982_vm9 = vcmp.ge.s32.totalorder %v7038_v30, %v2960_v43 }
 0x8c4   :  { %5346 = vmatprep.subr.msk.bf16.mxu0 %vm5345_vm7, %v9089_v35  ;;  %vm5355_vm4 = vmpackc.low %vm2591_vm6, %vm2590_vm15 }
 0x8c7   :  { %5348 = vmatpush3.bf16.msk.msra.mxu0 %vm5347_vm11, %v9089_v35 }
 0x8c8   :  { %5350 = vmatprep.subr.msk.bf16.mxu0 %vm5349_vm13, %v9089_v35 }
 0x8cb   :  { %5352 = vmatpush3.bf16.msk.msra.mxu0 %vm5351_vm2, %v9089_v35 }
 0x8cc   :  { %5354 = vmatprep.subr.msk.bf16.mxu0 %vm5353_vm14, %v9089_v35 }
 0x8cf   :  { %5356 = vmatpush3.bf16.msk.msra.mxu0 %vm5355_vm4, %v9089_v35  ;;  %vm2979_vm4 = vcmp.ge.s32.totalorder %v6218_v10, %v2960_v43 }
 0x8ff   :  { %v1806_v56 = vpop.f32.mrb[14].mxu0  ;;  %v1877_v31 = vpop.f32.mrb[20].mxu1 }
 0x900   :  { %v1807_v38 = vadd.f32 %v1806_v56, %v1693_v45  ;;  %v1878_v11 = vadd.f32 %v1877_v31, %v1701_v36  ;;  %v1808_v23 = vpop.f32.mrb[15].mxu0  ;;  %v1879_v44 = vpop.f32.mrb[21].mxu1  ;;  %v1713_v56 = vrot.slane %v1686_v27, %v1712_v42  ;;  %v1721_v45 = vrot.slane %v1686_v27, %v1720_v8 }
 0x901   :  { %v1809_v18 = vadd.f32 %v1808_v23, %v1697_v33  ;;  %v1880_v61 = vadd.f32 %v1879_v44, %v1705_v6 }
 0x902   :  { %2095 = vst [vmem:[#allocation10] sm:$0xff] %v1807_v38  ;;  %2097 = vst [vmem:[#allocation10 + $0x10] sm:$0xff] %v1878_v11 }
 0x903   :  { %2096 = vst [vmem:[#allocation10 + $0x8] sm:$0xff] %v1809_v18  ;;  %2098 = vst [vmem:[#allocation10 + $0x18] sm:$0xff] %v1880_v61 }
 0x91f   :  { %v1948_v36 = vpop.f32.mrb[16].mxu0  ;;  %v2019_v31 = vpop.f32.mrb[22].mxu1 }
 0x920   :  { %v8072_v23 = vadd.f32 %v1948_v36, %v1709_v16  ;;  %v2020_v44 = vadd.f32 %v2019_v31, %v1717_v2  ;;  %v1950_v6 = vpop.f32.mrb[17].mxu0  ;;  %v2021_v33 = vpop.f32.mrb[23].mxu1 }
 0x921   :  { %v1951_v28 = vadd.f32 %v1950_v6, %v1713_v56  ;;  %v2022_v13 = vadd.f32 %v2021_v33, %v1721_v45  ;;  %v9390_v33 = vld [vmem:[#allocation21_spill] sm:$0xff] }
 0x922   :  { %2099 = vst [vmem:[#allocation10 + $0x20] sm:$0xff] %v8072_v23  ;;  %2101 = vst [vmem:[#allocation10 + $0x30] sm:$0xff] %v2020_v44  ;;  %v9389_v44 = vld [vmem:[#allocation19_spill] sm:$0xff]  ;;  %vm2980_vm1 = vcmp.ge.s32.totalorder %v9390_v33, %v2960_v43 }
 0x923   :  { %2100 = vst [vmem:[#allocation10 + $0x28] sm:$0xff] %v1951_v28  ;;  %2102 = vst [vmem:[#allocation10 + $0x38] sm:$0xff] %v2022_v13  ;;  %v3040_v6 = vmul.u32 16, %v9389_v44 }
 0x925   :  { %vm3060_vm3 = vcmp.lt.s32.totalorder %v9390_v33, %v3040_v6  ;;  %vm3062_vm2 = vcmp.lt.s32.totalorder %v7038_v30, %v3040_v6 }
 0x926   :  { %vm3124_vm5 = vmand %vm2980_vm1, %vm3060_vm3 }
 0x927   :  { %vm3126_vm6 = vmand %vm2982_vm9, %vm3062_vm2 }
 0x947   :  { %v2090_v27 = vpop.f32.mrb[18].mxu0 }
 0x948   :  { %v8077_v8 = vadd.f32 %v2090_v27, %v1725_v19  ;;  %v2092_v2 = vpop.f32.mrb[19].mxu0  ;;  %v2962_v19 = vmul.u32 16, %v9300_v0 }
 0x949   :  { %v2093_v31 = vadd.f32 %v2092_v2, %v1729_v34  ;;  %v9392_v34 = vld [vmem:[#allocation25_spill] sm:$0xff] }
 0x94a   :  { %2103 = vst [vmem:[#allocation10 + $0x40] sm:$0xff] %v8077_v8  ;;  %v3042_v27 = vmul.u32 16, %v9392_v34 }
 0x94b   :  { %2104 = vst [vmem:[#allocation10 + $0x48] sm:$0xff] %v2093_v31  ;;  %v9394_v31 = vld [vmem:[#allocation29_spill] sm:$0xff] }
 0x94f   :  { %v2738_v42 = vpop.f32.mrb[24].mxu1 }
 0x950   :  { %v2814_v16 = vmul.f32 %v2738_v42, %v1807_v38  ;;  %v2740_v36 = vpop.f32.mrb[25].mxu1  ;;  %v2959_v38 = vmul.u32 16, %v5910_v32  ;;  %v2963_v42 = vmul.u32 16, %v9305_v9 }
 0x951   :  { %v2815_v56 = vmul.f32 %v2740_v36, %v1809_v18  ;;  %v9388_v18 = vld [vmem:[#allocation18_spill] sm:$0xff]  ;;  %v2964_v36 = vmul.u32 16, %v9306_v52 }
 0x952   :  { %v3039_v45 = vmul.u32 16, %v9388_v18  ;;  %vm2976_vm7 = vcmp.ge.s32.totalorder %v9390_v33, %v2959_v38  ;;  %vm2978_vm11 = vcmp.ge.s32.totalorder %v7038_v30, %v2959_v38  ;;  %vm2975_vm14 = vcmp.ge.s32.totalorder %v6218_v10, %v2959_v38 }
 0x953   :  { %2882 = vmatprep.mubr.f32.mxu1 %v2815_v56  ;;  %vm2977_vm3 = vcmp.ge.s32.totalorder %v7082_v39, %v2959_v38  ;;  %v3044_v56 = vmul.u32 16, %v9394_v31  ;;  %v9396_v38 = vld [vmem:[#allocation33_spill] sm:$0xff]  ;;  %v2967_v18 = vmul.u32 16, %v9320_v55 }
 0x954   :  { %2883 = vmatmul.mubr.f32.vlgmr.msra.gmra.mrb[26].mxu1 %v2814_v16  ;;  %vm3056_vm0 = vcmp.lt.s32.totalorder %v9390_v33, %v3039_v45  ;;  %vm3058_vm13 = vcmp.lt.s32.totalorder %v7038_v30, %v3039_v45  ;;  %vm3055_vm15 = vcmp.lt.s32.totalorder %v6218_v10, %v3039_v45  ;;  %v9393_v16 = vld [vmem:[#allocation27_spill] sm:$0xff] }
 0x955   :  { %3503 = vmatprep.mubr.f32.mxu1 %v9108_v26  ;;  %vm3120_vm10 = vmand %vm2976_vm7, %vm3056_vm0  ;;  %vm3059_vm7 = vcmp.lt.s32.totalorder %v6218_v10, %v3040_v6  ;;  %v3043_v2 = vmul.u32 16, %v9393_v16 }
 0x956   :  { %vm5357_vm8 = vmpackc.low %vm3124_vm5, %vm3120_vm10  ;;  %vm3057_vm10 = vcmp.lt.s32.totalorder %v7082_v39, %v3039_v45  ;;  %vm3061_vm5 = vcmp.lt.s32.totalorder %v7082_v39, %v3040_v6  ;;  %v9397_v45 = vld [vmem:[#allocation35_spill] sm:$0xff]  ;;  %v2968_v6 = vmul.u32 16, %v9321_v15 }
 0x957   :  { %5358 = vmatprep.subr.msk.bf16.mxu1 %vm5357_vm8, %v9089_v35  ;;  %vm3122_vm12 = vmand %vm2978_vm11, %vm3058_vm13  ;;  %vm2981_vm13 = vcmp.ge.s32.totalorder %v7082_v39, %v2960_v43  ;;  %v3046_v43 = vmul.u32 16, %v9396_v38  ;;  %v3047_v44 = vmul.u32 16, %v9397_v45 }
 0x958   :  { %vm5389_vm0 = vmpackc.low %vm3126_vm6, %vm3122_vm12  ;;  %vm3068_vm6 = vcmp.lt.s32.totalorder %v9390_v33, %v3042_v27 }
 0x959   :  { %5390 = vmatprep.subr.msk.bf16.mxu0 %vm5389_vm0, %v9089_v35  ;;  %vm3119_vm1 = vmand %vm2975_vm14, %vm3055_vm15  ;;  %vm2988_vm15 = vcmp.ge.s32.totalorder %v9390_v33, %v2962_v19 }
 0x95a   :  { %vm3123_vm11 = vmand %vm2979_vm4, %vm3059_vm7 }
 0x95b   :  { %vm5359_vm9 = vmpackc.low %vm3123_vm11, %vm3119_vm1 }
 0x95c   :  { %5360 = vmatpush1.bf16.msk.msra.mxu1 %vm5359_vm9, %v9089_v35  ;;  %vm3121_vm2 = vmand %vm2977_vm3, %vm3057_vm10  ;;  %vm2990_vm3 = vcmp.ge.s32.totalorder %v7038_v30, %v2962_v19  ;;  %vm3070_vm10 = vcmp.lt.s32.totalorder %v7038_v30, %v3042_v27 }
 0x95d   :  { %vm3125_vm14 = vmand %vm2981_vm13, %vm3061_vm5 }
 0x95e   :  { %vm5391_vm0 = vmpackc.low %vm3125_vm14, %vm3121_vm2 }
 0x95f   :  { %vm3132_vm11 = vmand %vm2988_vm15, %vm3068_vm6 }
 0x960   :  { %vm3134_vm14 = vmand %vm2990_vm3, %vm3070_vm10 }
 0x975   :  { %v2809_v13 = vpop.f32.mrb[20].mxu0 }
 0x976   :  { %v2811_v28 = vpop.f32.mrb[21].mxu0  ;;  %v2816_v1 = vmul.f32 %v2809_v13, %v1878_v11  ;;  %v2965_v13 = vmul.u32 16, %v9312_v25 }
 0x977   :  { %v2817_v47 = vmul.f32 %v2811_v28, %v1880_v61  ;;  %v9391_v61 = vld [vmem:[#allocation23_spill] sm:$0xff] }
 0x978   :  { %v3041_v11 = vmul.u32 16, %v9391_v61  ;;  %v9395_v28 = vld [vmem:[#allocation31_spill] sm:$0xff] }
 0x979   :  { %2952 = vmatprep.mubr.f32.mxu0 %v2817_v47  ;;  %v3045_v47 = vmul.u32 16, %v9395_v28 }
 0x97a   :  { %2953 = vmatmul.mubr.f32.vlgmr.msra.gmra.mrb[22].mxu0 %v2816_v1  ;;  %vm3064_vm12 = vcmp.lt.s32.totalorder %v9390_v33, %v3041_v11  ;;  %vm3066_vm1 = vcmp.lt.s32.totalorder %v7038_v30, %v3041_v11  ;;  %vm3063_vm2 = vcmp.lt.s32.totalorder %v6218_v10, %v3041_v11  ;;  %v2966_v1 = vmul.u32 16, %v9313_v24 }
 0x97b   :  { %3574 = vmatprep.mubr.f32.mxu0 %v9108_v26  ;;  %v2961_v26 = vmul.u32 16, %v9299_v51  ;;  %5392 = vmatpush1.bf16.msk.msra.mxu0 %vm5391_vm0, %v9089_v35 }
 0x97d   :  { %vm2984_vm8 = vcmp.ge.s32.totalorder %v9390_v33, %v2961_v26  ;;  %vm2986_vm7 = vcmp.ge.s32.totalorder %v7038_v30, %v2961_v26  ;;  %vm2983_vm5 = vcmp.ge.s32.totalorder %v6218_v10, %v2961_v26  ;;  %vm2985_vm6 = vcmp.ge.s32.totalorder %v7082_v39, %v2961_v26  ;;  %v9398_v26 = vld [vmem:[#allocation37_spill] sm:$0xff] }
 0x97e   :  { %vm3128_vm4 = vmand %vm2984_vm8, %vm3064_vm12  ;;  %vm2987_vm8 = vcmp.ge.s32.totalorder %v6218_v10, %v2962_v19  ;;  %vm3067_vm12 = vcmp.lt.s32.totalorder %v6218_v10, %v3042_v27  ;;  %v3048_v61 = vmul.u32 16, %v9398_v26 }
 0x97f   :  { %vm5361_vm9 = vmpackc.low %vm3132_vm11, %vm3128_vm4  ;;  %vm3065_vm4 = vcmp.lt.s32.totalorder %v7082_v39, %v3041_v11  ;;  %vm3069_vm11 = vcmp.lt.s32.totalorder %v7082_v39, %v3042_v27  ;;  %v2969_v11 = vmul.u32 16, %v9334_v41  ;;  %v2970_v27 = vmul.u32 16, %v9335_v37 }
 0x980   :  { %5362 = vmatprep.subr.msk.bf16.mxu1 %vm5361_vm9, %v9089_v35  ;;  %vm3130_vm13 = vmand %vm2986_vm7, %vm3066_vm1  ;;  %vm2989_vm1 = vcmp.ge.s32.totalorder %v7082_v39, %v2962_v19  ;;  %vm2992_vm9 = vcmp.ge.s32.totalorder %v9390_v33, %v2963_v42  ;;  %v9399_v19 = vld [vmem:[#allocation39_spill] sm:$0xff] }
 0x981   :  { %vm5393_vm0 = vmpackc.low %vm3134_vm14, %vm3130_vm13  ;;  %vm3072_vm13 = vcmp.lt.s32.totalorder %v9390_v33, %v3043_v2  ;;  %vm3076_vm14 = vcmp.lt.s32.totalorder %v9390_v33, %v3044_v56  ;;  %v3049_v34 = vmul.u32 16, %v9399_v19  ;;  %v3247_v19 = vand.u32 15, %v5910_v32  ;;  %v9466_v32 = vld [vmem:[#allocation45_spill] sm:$0xff] }
 0x982   :  { %5394 = vmatprep.subr.msk.bf16.mxu0 %vm5393_vm0, %v9089_v35  ;;  %vm3127_vm15 = vmand %vm2983_vm5, %vm3063_vm2  ;;  %vm2996_vm2 = vcmp.ge.s32.totalorder %v9390_v33, %v2964_v36 }
 0x983   :  { %vm3131_vm7 = vmand %vm2987_vm8, %vm3067_vm12  ;;  %vm2994_vm12 = vcmp.ge.s32.totalorder %v7038_v30, %v2963_v42 }
 0x984   :  { %vm5363_vm3 = vmpackc.low %vm3131_vm7, %vm3127_vm15  ;;  %vm3074_vm15 = vcmp.lt.s32.totalorder %v7038_v30, %v3043_v2 }
 0x985   :  { %5364 = vmatpush1.bf16.msk.msra.mxu1 %vm5363_vm3, %v9089_v35  ;;  %vm3129_vm10 = vmand %vm2985_vm6, %vm3065_vm4  ;;  %vm2998_vm6 = vcmp.ge.s32.totalorder %v7038_v30, %v2964_v36  ;;  %vm3078_vm4 = vcmp.lt.s32.totalorder %v7038_v30, %v3044_v56 }
 0x986   :  { %vm3133_vm5 = vmand %vm2989_vm1, %vm3069_vm11  ;;  %vm2991_vm11 = vcmp.ge.s32.totalorder %v6218_v10, %v2963_v42 }
 0x987   :  { %vm5395_vm0 = vmpackc.low %vm3133_vm5, %vm3129_vm10  ;;  %vm3071_vm10 = vcmp.lt.s32.totalorder %v6218_v10, %v3043_v2 }
 0x988   :  { %5396 = vmatpush1.bf16.msk.msra.mxu0 %vm5395_vm0, %v9089_v35  ;;  %vm3136_vm8 = vmand %vm2992_vm9, %vm3072_vm13  ;;  %vm2995_vm9 = vcmp.ge.s32.totalorder %v6218_v10, %v2964_v36  ;;  %vm3075_vm13 = vcmp.lt.s32.totalorder %v6218_v10, %v3044_v56 }
 0x989   :  { %vm3140_vm7 = vmand %vm2996_vm2, %vm3076_vm14  ;;  %vm2993_vm14 = vcmp.ge.s32.totalorder %v7082_v39, %v2963_v42  ;;  %v9400_v42 = vld [vmem:[#allocation40_spill] sm:$0xff] }
 0x98a   :  { %vm5365_vm3 = vmpackc.low %vm3140_vm7, %vm3136_vm8  ;;  %vm3073_vm8 = vcmp.lt.s32.totalorder %v7082_v39, %v3043_v2  ;;  %vm3077_vm7 = vcmp.lt.s32.totalorder %v7082_v39, %v3044_v56  ;;  %v3050_v16 = vmul.u32 16, %v9400_v42  ;;  %v2971_v2 = vmul.u32 16, %v6653_v58 }
 0x98b   :  { %5366 = vmatprep.subr.msk.bf16.mxu1 %vm5365_vm3, %v9089_v35  ;;  %vm3138_vm1 = vmand %vm2994_vm12, %vm3074_vm15  ;;  %vm2997_vm15 = vcmp.ge.s32.totalorder %v7082_v39, %v2964_v36  ;;  %vm3000_vm3 = vcmp.ge.s32.totalorder %v9390_v33, %v2965_v13  ;;  %v9401_v36 = vld [vmem:[#allocation42_spill] sm:$0xff]  ;;  %v2972_v56 = vmul.u32 16, %v9338_v48  ;;  %v3280_v42 = vand.u32 15, %v7832_v49 }
 0x98c   :  { %vm3142_vm5 = vmand %vm2998_vm6, %vm3078_vm4  ;;  %v3051_v31 = vmul.u32 16, %v9401_v36  ;;  %v3297_v36 = vand.u32 15, %v7840_v63  ;;  %v3281_v49 = vand.u32 15, %v7847_v17  ;;  %v3282_v63 = vand.u32 15, %v7850_v22 }
 0x98d   :  { %vm5397_vm0 = vmpackc.low %vm3142_vm5, %vm3138_vm1  ;;  %vm3080_vm1 = vcmp.lt.s32.totalorder %v9390_v33, %v3045_v47  ;;  %vm3084_vm5 = vcmp.lt.s32.totalorder %v9390_v33, %v3046_v43 }
 0x98e   :  { %5398 = vmatprep.subr.msk.bf16.mxu0 %vm5397_vm0, %v9089_v35  ;;  %vm3135_vm2 = vmand %vm2991_vm11, %vm3071_vm10  ;;  %vm3004_vm10 = vcmp.ge.s32.totalorder %v9390_v33, %v2966_v1 }
 0x98f   :  { %vm3139_vm12 = vmand %vm2995_vm9, %vm3075_vm13  ;;  %vm3002_vm13 = vcmp.ge.s32.totalorder %v7038_v30, %v2965_v13 }
 0x990   :  { %vm5367_vm6 = vmpackc.low %vm3139_vm12, %vm3135_vm2  ;;  %vm3082_vm2 = vcmp.lt.s32.totalorder %v7038_v30, %v3045_v47 }
 0x991   :  { %5368 = vmatpush1.bf16.msk.msra.mxu1 %vm5367_vm6, %v9089_v35  ;;  %vm3137_vm4 = vmand %vm2993_vm14, %vm3073_vm8  ;;  %vm3006_vm14 = vcmp.ge.s32.totalorder %v7038_v30, %v2966_v1  ;;  %vm3086_vm8 = vcmp.lt.s32.totalorder %v7038_v30, %v3046_v43 }
 0x992   :  { %vm3141_vm11 = vmand %vm2997_vm15, %vm3077_vm7  ;;  %vm2999_vm7 = vcmp.ge.s32.totalorder %v6218_v10, %v2965_v13 }
 0x993   :  { %vm5399_vm0 = vmpackc.low %vm3141_vm11, %vm3137_vm4  ;;  %vm3079_vm4 = vcmp.lt.s32.totalorder %v6218_v10, %v3045_v47 }
 0x994   :  { %5400 = vmatpush1.bf16.msk.msra.mxu0 %vm5399_vm0, %v9089_v35  ;;  %vm3144_vm9 = vmand %vm3000_vm3, %vm3080_vm1  ;;  %vm3003_vm3 = vcmp.ge.s32.totalorder %v6218_v10, %v2966_v1  ;;  %vm3083_vm1 = vcmp.lt.s32.totalorder %v6218_v10, %v3046_v43 }
 0x995   :  { %vm3148_vm12 = vmand %vm3004_vm10, %vm3084_vm5  ;;  %vm3001_vm5 = vcmp.ge.s32.totalorder %v7082_v39, %v2965_v13  ;;  %v9402_v13 = vld [vmem:[#allocation44_spill] sm:$0xff] }
 0x996   :  { %vm5369_vm6 = vmpackc.low %vm3148_vm12, %vm3144_vm9  ;;  %vm3081_vm9 = vcmp.lt.s32.totalorder %v7082_v39, %v3045_v47  ;;  %vm3085_vm12 = vcmp.lt.s32.totalorder %v7082_v39, %v3046_v43  ;;  %v3052_v28 = vmul.u32 16, %v9402_v13  ;;  %v2973_v47 = vmul.u32 16, %v9341_v59 }
 0x997   :  { %5370 = vmatprep.subr.msk.bf16.mxu1 %vm5369_vm6, %v9089_v35  ;;  %vm3146_vm15 = vmand %vm3002_vm13, %vm3082_vm2  ;;  %vm3005_vm2 = vcmp.ge.s32.totalorder %v7082_v39, %v2966_v1  ;;  %vm3008_vm6 = vcmp.ge.s32.totalorder %v9390_v33, %v2967_v18  ;;  %v9403_v1 = vld [vmem:[#allocation46_spill] sm:$0xff]  ;;  %v2974_v43 = vmul.u32 16, %v9342_v57  ;;  %v3299_v13 = vand.u32 15, %v7856_v7 }
 0x998   :  { %vm3150_vm11 = vmand %vm3006_vm14, %vm3086_vm8  ;;  %v3053_v38 = vmul.u32 16, %v9403_v1  ;;  %v3252_v7 = vand.u32 15, %v9306_v52  ;;  %v9495_v1 = vld [vmem:[#allocation51_spill] sm:$0xff] }
 0x999   :  { %vm5401_vm0 = vmpackc.low %vm3150_vm11, %vm3146_vm15  ;;  %vm3088_vm15 = vcmp.lt.s32.totalorder %v9390_v33, %v3047_v44  ;;  %vm3092_vm11 = vcmp.lt.s32.totalorder %v9390_v33, %v3048_v61 }
 0x99a   :  { %5402 = vmatprep.subr.msk.bf16.mxu0 %vm5401_vm0, %v9089_v35  ;;  %vm3143_vm10 = vmand %vm2999_vm7, %vm3079_vm4  ;;  %vm3012_vm4 = vcmp.ge.s32.totalorder %v9390_v33, %v2968_v6 }
 0x99b   :  { %vm3147_vm13 = vmand %vm3003_vm3, %vm3083_vm1  ;;  %vm3010_vm1 = vcmp.ge.s32.totalorder %v7038_v30, %v2967_v18 }
 0x99c   :  { %vm5371_vm14 = vmpackc.low %vm3147_vm13, %vm3143_vm10  ;;  %vm3090_vm10 = vcmp.lt.s32.totalorder %v7038_v30, %v3047_v44 }
 0x99d   :  { %5372 = vmatpush1.bf16.msk.msra.mxu1 %vm5371_vm14, %v9089_v35  ;;  %vm3145_vm8 = vmand %vm3001_vm5, %vm3081_vm9  ;;  %vm3014_vm5 = vcmp.ge.s32.totalorder %v7038_v30, %v2968_v6  ;;  %vm3094_vm9 = vcmp.lt.s32.totalorder %v7038_v30, %v3048_v61 }
 0x99e   :  { %vm3149_vm7 = vmand %vm3005_vm2, %vm3085_vm12  ;;  %vm3007_vm12 = vcmp.ge.s32.totalorder %v6218_v10, %v2967_v18 }
 0x99f   :  { %vm5403_vm0 = vmpackc.low %vm3149_vm7, %vm3145_vm8  ;;  %vm3087_vm8 = vcmp.lt.s32.totalorder %v6218_v10, %v3047_v44 }
 0x9a0   :  { %5404 = vmatpush1.bf16.msk.msra.mxu0 %vm5403_vm0, %v9089_v35  ;;  %vm3152_vm3 = vmand %vm3008_vm6, %vm3088_vm15  ;;  %vm3011_vm6 = vcmp.ge.s32.totalorder %v6218_v10, %v2968_v6  ;;  %vm3091_vm15 = vcmp.lt.s32.totalorder %v6218_v10, %v3048_v61 }
 0x9a1   :  { %vm3156_vm13 = vmand %vm3012_vm4, %vm3092_vm11  ;;  %vm3009_vm11 = vcmp.ge.s32.totalorder %v7082_v39, %v2967_v18  ;;  %v9404_v18 = vld [vmem:[#allocation47_spill] sm:$0xff] }
 0x9a2   :  { %vm5373_vm14 = vmpackc.low %vm3156_vm13, %vm3152_vm3  ;;  %vm3089_vm3 = vcmp.lt.s32.totalorder %v7082_v39, %v3047_v44  ;;  %vm3093_vm13 = vcmp.lt.s32.totalorder %v7082_v39, %v3048_v61  ;;  %v3054_v45 = vmul.u32 16, %v9404_v18  ;;  %v3264_v44 = vand.u32 15, %v7631_v5 }
 0x9a3   :  { %5374 = vmatprep.subr.msk.bf16.mxu1 %vm5373_vm14, %v9089_v35  ;;  %vm3154_vm2 = vmand %vm3010_vm1, %vm3090_vm10  ;;  %vm3013_vm10 = vcmp.ge.s32.totalorder %v7082_v39, %v2968_v6  ;;  %vm3016_vm14 = vcmp.ge.s32.totalorder %v9390_v33, %v2969_v11  ;;  %v3296_v6 = vand.u32 15, %v7821_v4 }
 0x9a4   :  { %vm3158_vm7 = vmand %vm3014_vm5, %vm3094_vm9 }
 0x9a5   :  { %vm5405_vm0 = vmpackc.low %vm3158_vm7, %vm3154_vm2  ;;  %vm3096_vm2 = vcmp.lt.s32.totalorder %v9390_v33, %v3049_v34  ;;  %vm3100_vm7 = vcmp.lt.s32.totalorder %v9390_v33, %v3050_v16 }
 0x9a6   :  { %5406 = vmatprep.subr.msk.bf16.mxu0 %vm5405_vm0, %v9089_v35  ;;  %vm3151_vm4 = vmand %vm3007_vm12, %vm3087_vm8  ;;  %vm3020_vm8 = vcmp.ge.s32.totalorder %v9390_v33, %v2970_v27 }
 0x9a7   :  { %vm3155_vm1 = vmand %vm3011_vm6, %vm3091_vm15  ;;  %vm3018_vm15 = vcmp.ge.s32.totalorder %v7038_v30, %v2969_v11 }
 0x9a8   :  { %vm5375_vm5 = vmpackc.low %vm3155_vm1, %vm3151_vm4  ;;  %vm3098_vm4 = vcmp.lt.s32.totalorder %v7038_v30, %v3049_v34 }
 0x9a9   :  { %5376 = vmatpush1.bf16.msk.msra.mxu1 %vm5375_vm5, %v9089_v35  ;;  %vm3153_vm9 = vmand %vm3009_vm11, %vm3089_vm3  ;;  %vm3022_vm11 = vcmp.ge.s32.totalorder %v7038_v30, %v2970_v27  ;;  %vm3102_vm3 = vcmp.lt.s32.totalorder %v7038_v30, %v3050_v16 }
 0x9aa   :  { %vm3157_vm12 = vmand %vm3013_vm10, %vm3093_vm13  ;;  %vm3015_vm13 = vcmp.ge.s32.totalorder %v6218_v10, %v2969_v11 }
 0x9ab   :  { %vm5407_vm0 = vmpackc.low %vm3157_vm12, %vm3153_vm9  ;;  %vm3095_vm9 = vcmp.lt.s32.totalorder %v6218_v10, %v3049_v34 }
 0x9ac   :  { %5408 = vmatpush1.bf16.msk.msra.mxu0 %vm5407_vm0, %v9089_v35  ;;  %vm3160_vm6 = vmand %vm3016_vm14, %vm3096_vm2  ;;  %vm3019_vm14 = vcmp.ge.s32.totalorder %v6218_v10, %v2970_v27  ;;  %vm3099_vm2 = vcmp.lt.s32.totalorder %v6218_v10, %v3050_v16 }
 0x9ad   :  { %vm3164_vm1 = vmand %vm3020_vm8, %vm3100_vm7  ;;  %vm3017_vm7 = vcmp.ge.s32.totalorder %v7082_v39, %v2969_v11 }
 0x9ae   :  { %vm5377_vm5 = vmpackc.low %vm3164_vm1, %vm3160_vm6  ;;  %vm3097_vm6 = vcmp.lt.s32.totalorder %v7082_v39, %v3049_v34  ;;  %vm3101_vm1 = vcmp.lt.s32.totalorder %v7082_v39, %v3050_v16  ;;  %v3248_v34 = vand.u32 15, %v9298_v12  ;;  %v3265_v16 = vand.u32 15, %v7640_v60 }
 0x9af   :  { %5378 = vmatprep.subr.msk.bf16.mxu1 %vm5377_vm5, %v9089_v35  ;;  %vm3162_vm10 = vmand %vm3018_vm15, %vm3098_vm4  ;;  %vm3021_vm4 = vcmp.ge.s32.totalorder %v7082_v39, %v2970_v27  ;;  %vm3024_vm5 = vcmp.ge.s32.totalorder %v9390_v33, %v2971_v2  ;;  %v3279_v27 = vand.u32 15, %v7826_v21  ;;  %v3249_v12 = vand.u32 15, %v9299_v51  ;;  %v9482_v51 = vld [vmem:[#allocation49_spill] sm:$0xff] }
 0x9b0   :  { %vm3166_vm12 = vmand %vm3022_vm11, %vm3102_vm3  ;;  %v3250_v60 = vand.u32 15, %v9300_v0  ;;  %v3267_v0 = vand.u32 15, %v7653_v54  ;;  %v3300_v54 = vand.u32 15, %v7859_v40  ;;  %v9471_v21 = vmov 0 }
 0x9b1   :  { %vm5409_vm0 = vmpackc.low %vm3166_vm12, %vm3162_vm10  ;;  %vm3104_vm10 = vcmp.lt.s32.totalorder %v9390_v33, %v3051_v31  ;;  %vm3108_vm12 = vcmp.lt.s32.totalorder %v9390_v33, %v3052_v28  ;;  %v9493_v40 = vmov 0 }
 0x9b2   :  { %5410 = vmatprep.subr.msk.bf16.mxu0 %vm5409_vm0, %v9089_v35  ;;  %vm3159_vm8 = vmand %vm3015_vm13, %vm3095_vm9  ;;  %vm3028_vm9 = vcmp.ge.s32.totalorder %v9390_v33, %v2972_v56 }
 0x9b3   :  { %vm3163_vm15 = vmand %vm3019_vm14, %vm3099_vm2  ;;  %vm3026_vm2 = vcmp.ge.s32.totalorder %v7038_v30, %v2971_v2 }
 0x9b4   :  { %vm5379_vm11 = vmpackc.low %vm3163_vm15, %vm3159_vm8  ;;  %vm3106_vm8 = vcmp.lt.s32.totalorder %v7038_v30, %v3051_v31 }
 0x9b5   :  { %5380 = vmatpush1.bf16.msk.msra.mxu1 %vm5379_vm11, %v9089_v35  ;;  %vm3161_vm3 = vmand %vm3017_vm7, %vm3097_vm6  ;;  %vm3030_vm7 = vcmp.ge.s32.totalorder %v7038_v30, %v2972_v56  ;;  %vm3110_vm6 = vcmp.lt.s32.totalorder %v7038_v30, %v3052_v28 }
 0x9b6   :  { %vm3165_vm13 = vmand %vm3021_vm4, %vm3101_vm1  ;;  %vm3023_vm1 = vcmp.ge.s32.totalorder %v6218_v10, %v2971_v2 }
 0x9b7   :  { %vm5411_vm0 = vmpackc.low %vm3165_vm13, %vm3161_vm3  ;;  %vm3103_vm3 = vcmp.lt.s32.totalorder %v6218_v10, %v3051_v31 }
 0x9b8   :  { %5412 = vmatpush1.bf16.msk.msra.mxu0 %vm5411_vm0, %v9089_v35  ;;  %vm3168_vm14 = vmand %vm3024_vm5, %vm3104_vm10  ;;  %vm3027_vm5 = vcmp.ge.s32.totalorder %v6218_v10, %v2972_v56  ;;  %vm3107_vm10 = vcmp.lt.s32.totalorder %v6218_v10, %v3052_v28 }
 0x9b9   :  { %vm3172_vm15 = vmand %vm3028_vm9, %vm3108_vm12  ;;  %vm3025_vm12 = vcmp.ge.s32.totalorder %v7082_v39, %v2971_v2  ;;  %v3266_v2 = vand.u32 15, %v7643_v46 }
 0x9ba   :  { %vm5381_vm11 = vmpackc.low %vm3172_vm15, %vm3168_vm14  ;;  %vm3105_vm14 = vcmp.lt.s32.totalorder %v7082_v39, %v3051_v31  ;;  %vm3109_vm15 = vcmp.lt.s32.totalorder %v7082_v39, %v3052_v28  ;;  %v3298_v31 = vand.u32 15, %v7844_v53  ;;  %v3256_v53 = vand.u32 15, %v9321_v15  ;;  %v9490_v28 = vld [vmem:[#allocation26_spill] sm:$0xff]  ;;  %v9561_v15 = vld [vmem:[#allocation60_spill] sm:$0xff] }
 0x9bb   :  { %5382 = vmatprep.subr.msk.bf16.mxu1 %vm5381_vm11, %v9089_v35  ;;  %vm3170_vm4 = vmand %vm3026_vm2, %vm3106_vm8  ;;  %vm3029_vm8 = vcmp.ge.s32.totalorder %v7082_v39, %v2972_v56  ;;  %vm3032_vm11 = vcmp.ge.s32.totalorder %v9390_v33, %v2973_v47  ;;  %v3268_v56 = vand.u32 15, %v7656_v3  ;;  %v9421_v3 = vmov 0 }
 0x9bc   :  { %vm3174_vm13 = vmand %vm3030_vm7, %vm3110_vm6 }
 0x9bd   :  { %vm5413_vm0 = vmpackc.low %vm3174_vm13, %vm3170_vm4  ;;  %vm3112_vm4 = vcmp.lt.s32.totalorder %v9390_v33, %v3053_v38  ;;  %vm3116_vm13 = vcmp.lt.s32.totalorder %v9390_v33, %v3054_v45 }
 0x9be   :  { %5414 = vmatprep.subr.msk.bf16.mxu0 %vm5413_vm0, %v9089_v35  ;;  %vm3167_vm9 = vmand %vm3023_vm1, %vm3103_vm3  ;;  %vm3036_vm3 = vcmp.ge.s32.totalorder %v9390_v33, %v2974_v43  ;;  %v3263_v33 = vand.u32 15, %v7628_v62 }
 0x9bf   :  { %vm3171_vm2 = vmand %vm3027_vm5, %vm3107_vm10  ;;  %vm3034_vm10 = vcmp.ge.s32.totalorder %v7038_v30, %v2973_v47 }
 0x9c0   :  { %vm5383_vm7 = vmpackc.low %vm3171_vm2, %vm3167_vm9  ;;  %vm3114_vm9 = vcmp.lt.s32.totalorder %v7038_v30, %v3053_v38 }
 0x9c1   :  { %5384 = vmatpush1.bf16.msk.msra.mxu1 %vm5383_vm7, %v9089_v35  ;;  %vm3169_vm6 = vmand %vm3025_vm12, %vm3105_vm14  ;;  %vm3038_vm12 = vcmp.ge.s32.totalorder %v7038_v30, %v2974_v43  ;;  %vm3118_vm14 = vcmp.lt.s32.totalorder %v7038_v30, %v3054_v45  ;;  %v3295_v30 = vand.u32 15, %v7818_v29 }
 0x9c2   :  { %vm3173_vm1 = vmand %vm3029_vm8, %vm3109_vm15  ;;  %vm3031_vm15 = vcmp.ge.s32.totalorder %v6218_v10, %v2973_v47 }
 0x9c3   :  { %vm5415_vm0 = vmpackc.low %vm3173_vm1, %vm3169_vm6  ;;  %vm3111_vm6 = vcmp.lt.s32.totalorder %v6218_v10, %v3053_v38 }
 0x9c4   :  { %5416 = vmatpush1.bf16.msk.msra.mxu0 %vm5415_vm0, %v9089_v35  ;;  %vm3176_vm5 = vmand %vm3032_vm11, %vm3112_vm4  ;;  %vm3035_vm11 = vcmp.ge.s32.totalorder %v6218_v10, %v2974_v43  ;;  %vm3115_vm4 = vcmp.lt.s32.totalorder %v6218_v10, %v3054_v45 }
 0x9c5   :  { %vm3180_vm2 = vmand %vm3036_vm3, %vm3116_vm13  ;;  %vm3033_vm13 = vcmp.ge.s32.totalorder %v7082_v39, %v2973_v47  ;;  %v3251_v47 = vand.u32 15, %v9305_v9  ;;  %v3284_v9 = vand.u32 15, %v7872_v14 }
 0x9c6   :  { %vm5385_vm7 = vmpackc.low %vm3180_vm2, %vm3176_vm5  ;;  %vm3113_vm5 = vcmp.lt.s32.totalorder %v7082_v39, %v3053_v38  ;;  %vm3117_vm2 = vcmp.lt.s32.totalorder %v7082_v39, %v3054_v45  ;;  %v3283_v38 = vand.u32 15, %v7865_v50  ;;  %v3269_v50 = vand.u32 15, %v7690_v20  ;;  %v9433_v45 = vld [vmem:[#allocation17_spill] sm:$0xff]  ;;  %v9438_v20 = vld [vmem:[#allocation36_spill] sm:$0xff] }
 0x9c7   :  { %5386 = vmatprep.subr.msk.bf16.mxu1 %vm5385_vm7, %v9089_v35  ;;  %vm3178_vm8 = vmand %vm3034_vm10, %vm3114_vm9  ;;  %vm3037_vm9 = vcmp.ge.s32.totalorder %v7082_v39, %v2974_v43  ;;  %vm3327_vm7 = vcmp.eq.s32.totalorder %v3263_v33, %v6218_v10  ;;  %v9429_v43 = vmov 0  ;;  %v3270_v14 = vand.u32 15, %v9433_v45 }
 0x9c8   :  { %vm3182_vm1 = vmand %vm3038_vm12, %vm3118_vm14  ;;  %v3258_v45 = vand.u32 15, %v9335_v37 }
 0x9c9   :  { %vm5417_vm0 = vmpackc.low %vm3182_vm1, %vm3178_vm8  ;;  %vm3328_vm8 = vcmp.eq.s32.totalorder %v3264_v44, %v6218_v10  ;;  %vm3360_vm1 = vcmp.eq.s32.totalorder %v3296_v6, %v6218_v10  ;;  %v9436_v44 = vmov 0  ;;  %v9439_v6 = vld [vmem:[#allocation38_spill] sm:$0xff] }
 0x9ca   :  { %5418 = vmatprep.subr.msk.bf16.mxu0 %vm5417_vm0, %v9089_v35  ;;  %vm3175_vm3 = vmand %vm3031_vm15, %vm3111_vm6  ;;  %vm3359_vm6 = vcmp.eq.s32.totalorder %v3295_v30, %v6218_v10  ;;  %v3301_v30 = vand.u32 15, %v9438_v20 }
 0x9cb   :  { %vm3179_vm10 = vmand %vm3035_vm11, %vm3115_vm4 }
 0x9cc   :  { %vm5387_vm12 = vmpackc.low %vm3179_vm10, %vm3175_vm3  ;;  %vm8294_vm3 = vcmp.eq.s32.totalorder %v3247_v19, %v6218_v10  ;;  %vm8311_vm10 = vcmp.eq.s32.totalorder %v3280_v42, %v6218_v10  ;;  %v9460_v42 = vld [vmem:[#allocation20_spill] sm:$0xff] }
 0x9cd   :  { %5388 = vmatpush1.bf16.msk.msra.mxu1 %vm5387_vm12, %v9089_v35  ;;  %vm3177_vm14 = vmand %vm3033_vm13, %vm3113_vm5  ;;  %vm8299_vm13 = vcmp.eq.s32.totalorder %v3248_v34, %v6218_v10  ;;  %vm8306_vm5 = vcmp.eq.s32.totalorder %v3279_v27, %v6218_v10  ;;  %vm8398_vm12 = vcmp.eq.s32.totalorder %v3299_v13, %v6218_v10  ;;  %v9458_v27 = vmov 0 }
 0x9ce   :  { %vm3181_vm15 = vmand %vm3037_vm9, %vm3117_vm2  ;;  %vm8318_vm9 = vcmp.eq.s32.totalorder %v3265_v16, %v6218_v10  ;;  %vm8323_vm2 = vcmp.eq.s32.totalorder %v3266_v2, %v6218_v10  ;;  %v3271_v16 = vand.u32 15, %v9460_v42  ;;  %v9461_v2 = vld [vmem:[#allocation22_spill] sm:$0xff]  ;;  %v9487_v13 = vmov 0 }
 0x9cf   :  { %vm5419_vm0 = vmpackc.low %vm3181_vm15, %vm3177_vm14  ;;  %vm8334_vm14 = vcmp.eq.s32.totalorder %v3297_v36, %v6218_v10  ;;  %vm8350_vm15 = vcmp.eq.s32.totalorder %v3249_v12, %v6218_v10  ;;  %v3272_v36 = vand.u32 15, %v9461_v2  ;;  %v3303_v12 = vand.u32 15, %v9466_v32 }
 0x9d0   :  { %5420 = vmatpush1.bf16.msk.msra.mxu0 %vm5419_vm0, %v9089_v35  ;;  %vm5421_vm11 = vmpackc.low %vm3328_vm8, %vm3327_vm7  ;;  %vm8339_vm7 = vcmp.eq.s32.totalorder %v3298_v31, %v6218_v10  ;;  %v9422_v3 = vsel %vm8350_vm15, 4294967295, %v9421_v3  ;;  %vm8366_vm0 = vcmp.eq.s32.totalorder %v3281_v49, %v6218_v10  ;;  %vm8387_vm8 = vcmp.eq.s32.totalorder %v3268_v56, %v6218_v10  ;;  %v9483_v56 = vld [vmem:[#allocation50_spill] sm:$0xff] }
 0x9d1   :  { %5422 = vmatprep.subr.msk.bf16.mxu1 %vm5421_vm11, %v9089_v35  ;;  %vm5453_vm4 = vmpackc.low %vm3360_vm1, %vm3359_vm6  ;;  %vm8355_vm6 = vcmp.eq.s32.totalorder %v3250_v60, %v6218_v10  ;;  %vm8371_vm11 = vcmp.eq.s32.totalorder %v3282_v63, %v6218_v10  ;;  %vm8382_vm1 = vcmp.eq.s32.totalorder %v3267_v0, %v6218_v10  ;;  %v9467_v60 = vld [vmem:[#allocation48_spill] sm:$0xff]  ;;  %v3255_v63 = vand.u32 15, %v9320_v55  ;;  %v9559_v49 = vld [vmem:[#allocation34_spill] sm:$0xff] }
 0x9d2   :  { %5454 = vmatprep.subr.msk.bf16.mxu0 %vm5453_vm4, %v9089_v35  ;;  %v9430_v43 = vsel %vm8382_vm1, 4294967295, %v9429_v43  ;;  %vm8403_vm1 = vcmp.eq.s32.totalorder %v3300_v54, %v6218_v10  ;;  %vm9440_vm4 = vmpackc.low %vm8299_vm13, %vm8294_vm3  ;;  %vm8431_vm3 = vcmp.eq.s32.totalorder %v3252_v7, %v6218_v10  ;;  %v3304_v46 = vand.u32 15, %v9467_v60  ;;  %v9489_v54 = vld [vmem:[#allocation24_spill] sm:$0xff] }
 0x9d3   :  { %v9437_v44 = vsel %vm8403_vm1, 4294967295, %v9436_v44  ;;  %vm9441_vm15 = vmpackc.low %vm8311_vm10, %vm8306_vm5  ;;  %vm8426_vm1 = vcmp.eq.s32.totalorder %v3251_v47, %v6218_v10  ;;  %vm9448_vm10 = vnez %v9430_v43  ;;  %v3287_v0 = vand.u32 15, %v9482_v51 }
 0x9d4   :  { %vm9446_vm13 = vmpackc.low %vm8323_vm2, %vm8318_vm9  ;;  %vm8459_vm9 = vcmp.eq.s32.totalorder %v3284_v9, %v6218_v10  ;;  %vm9455_vm2 = vnez %v9437_v44  ;;  %v3288_v17 = vand.u32 15, %v9483_v56  ;;  %v3274_v47 = vand.u32 15, %v9490_v28  ;;  %v9496_v9 = vld [vmem:[#allocation52_spill] sm:$0xff]  ;;  %v9512_v44 = vld [vmem:[#allocation54_spill] sm:$0xff] }
 0x9d5   :  { %vm9447_vm5 = vmpackc.low %vm8339_vm7, %vm8334_vm14  ;;  %vm8470_vm7 = vcmp.eq.s32.totalorder %v3269_v50, %v6218_v10  ;;  %vm8486_vm14 = vcmp.eq.s32.totalorder %v3301_v30, %v6218_v10  ;;  %v9500_v43 = vmov 0  ;;  %v3257_v50 = vand.u32 15, %v9334_v41  ;;  %v5565_v41 = vld [vmem:[#allocation10 + $0x48] sm:$0xff] }
 0x9d6   :  { %v3290_v20 = vand.u32 15, %v9512_v44  ;;  %v3260_v2 = vand.u32 15, %v9338_v48  ;;  %v9543_v31 = vmov 0  ;;  %v9549_v60 = vmov 0 }
 0x9d7   :  { %v3310_v51 = vand.u32 15, %v9561_v15  ;;  %v3262_v56 = vand.u32 15, %v9342_v57 }
 0xa27   :  { %v4192_v39 = vpop.f32.mrb[26].mxu1 }
 0xa28   :  { %v4193_v62 = vpop.f32.mrb[27].mxu1 }
 0xa29   :  { %v4194_v5 = vadd.f32 %v4193_v62, %v4192_v39  ;;  %v3302_v39 = vand.u32 15, %v9439_v6  ;;  %v9442_v62 = vmov 0  ;;  %v9516_v6 = vmov 0 }
 0xa2a   :  { %v9443_v62 = vsel %vm8426_vm1, 4294967295, %v9442_v62  ;;  %vm9470_vm1 = vmpackc.low %vm8371_vm11, %vm8366_vm0 }
 0xa2b   :  { %v2885_v26 = vadd.f32 %v4194_v5, %v8072_v23  ;;  %v9464_v23 = vmov 0  ;;  %vm9476_vm0 = vmpackc.low %vm9455_vm2, %vm8398_vm12  ;;  %vm8558_vm2 = vcmp.eq.s32.totalorder %v3271_v16, %v6218_v10  ;;  %v9519_v5 = vld [vmem:[#allocation30_spill] sm:$0xff]  ;;  %v3259_v16 = vand.u32 15, %v6653_v58 }
 0xa2c   :  { %v9546_v58 = vld [vmem:[#allocation58_spill] sm:$0xff] }
 0xa4d   :  { %v4227_v29 = vpop.f32.mrb[22].mxu0 }
 0xa4e   :  { %v4228_v4 = vpop.f32.mrb[23].mxu0 }
 0xa4f   :  { %v4229_v61 = vadd.f32 %v4228_v4, %v4227_v29  ;;  %v3253_v29 = vand.u32 15, %v9312_v25  ;;  %v3254_v4 = vand.u32 15, %v9313_v24  ;;  %v9522_v25 = vmov 0  ;;  %v9524_v24 = vld [vmem:[#allocation55_spill] sm:$0xff] }
 0xa51   :  { %v2955_v11 = vadd.f32 %v4229_v61, %v2885_v26  ;;  %v9453_v26 = vld [vmem:[#allocation41_spill] sm:$0xff] }
 0xa52   :  { %v3285_v61 = vand.u32 15, %v9453_v26  ;;  %v3307_v26 = vand.u32 15, %v9524_v24 }
 0xa53   :  { %5560 = vtanh.f32 %v2955_v11  ;;  %v9454_v11 = vld [vmem:[#allocation43_spill] sm:$0xff] }
 0xa54   :  { %v3286_v19 = vand.u32 15, %v9454_v11 }
 0xa5d   :  { %v5561_v52 = vpop.eup %5560 }
 0xa5e   :  { %3504 = vmatmul.mubr.f32.vlgmr.msra.gmra.mrb[28].mxu1 %v5561_v52  ;;  %3575 = vmatmul.mubr.f32.vlgmr.msra.gmra.mrb[24].mxu0 %v5561_v52  ;;  %v3306_v52 = vand.u32 15, %v9496_v9 }
 0xa5f   :  { %5424 = vmatpush3.bf16.msk.msra.mxu1 %vm9440_vm4, %v9089_v35  ;;  %5456 = vmatpush3.bf16.msk.msra.mxu0 %vm9441_vm15, %v9089_v35  ;;  %vm8454_vm4 = vcmp.eq.s32.totalorder %v3283_v38, %v6218_v10  ;;  %vm8491_vm15 = vcmp.eq.s32.totalorder %v3302_v39, %v6218_v10  ;;  %v3305_v38 = vand.u32 15, %v9495_v1  ;;  %v9518_v39 = vld [vmem:[#allocation28_spill] sm:$0xff] }
 0xa60   :  { %5426 = vmatprep.subr.msk.bf16.mxu1 %vm9446_vm13, %v9089_v35  ;;  %5458 = vmatprep.subr.msk.bf16.mxu0 %vm9447_vm5, %v9089_v35  ;;  %vm8475_vm13 = vcmp.eq.s32.totalorder %v3270_v14, %v6218_v10  ;;  %v9465_v23 = vsel %vm8491_vm15, 4294967295, %v9464_v23  ;;  %vm8514_vm15 = vcmp.eq.s32.totalorder %v3253_v29, %v6218_v10  ;;  %v9511_v14 = vld [vmem:[#allocation53_spill] sm:$0xff]  ;;  %v3276_v29 = vand.u32 15, %v9519_v5 }
 0xa61   :  { %v9459_v27 = vsel %vm8475_vm13, 4294967295, %v9458_v27  ;;  %vm9468_vm13 = vnez %v9422_v3  ;;  %v9472_v21 = vsel %vm8514_vm15, 4294967295, %v9471_v21  ;;  %vm9484_vm12 = vnez %v9465_v23  ;;  %vm9499_vm15 = vmpackc.low %vm8459_vm9, %vm8454_vm4  ;;  %v9545_v23 = vld [vmem:[#allocation57_spill] sm:$0xff] }
 0xa62   :  { %vm9469_vm5 = vmpackc.low %vm8355_vm6, %vm9468_vm13  ;;  %vm8519_vm6 = vcmp.eq.s32.totalorder %v3254_v4, %v6218_v10  ;;  %vm9477_vm11 = vnez %v9459_v27  ;;  %v3273_v3 = vand.u32 15, %v9489_v54  ;;  %vm8579_vm13 = vcmp.eq.s32.totalorder %v3304_v46, %v6218_v10  ;;  %v9558_v46 = vld [vmem:[#allocation32_spill] sm:$0xff] }
 0xa63   :  { %5428 = vmatpush3.bf16.msk.msra.mxu1 %vm9469_vm5, %v9089_v35  ;;  %5460 = vmatpush3.bf16.msk.msra.mxu0 %vm9470_vm1, %v9089_v35  ;;  %vm9475_vm1 = vmpackc.low %vm8387_vm8, %vm9448_vm10  ;;  %vm8542_vm5 = vcmp.eq.s32.totalorder %v3285_v61, %v6218_v10  ;;  %vm8547_vm8 = vcmp.eq.s32.totalorder %v3286_v19, %v6218_v10  ;;  %vm8574_vm10 = vcmp.eq.s32.totalorder %v3303_v12, %v6218_v10  ;;  %v9494_v40 = vsel %vm8579_vm13, 4294967295, %v9493_v40  ;;  %v9525_v61 = vld [vmem:[#allocation56_spill] sm:$0xff] }
 0xa64   :  { %5430 = vmatprep.subr.msk.bf16.mxu1 %vm9475_vm1, %v9089_v35  ;;  %5462 = vmatprep.subr.msk.bf16.mxu0 %vm9476_vm0, %v9089_v35  ;;  %vm8563_vm1 = vcmp.eq.s32.totalorder %v3272_v36, %v6218_v10  ;;  %vm8602_vm13 = vcmp.eq.s32.totalorder %v3255_v63, %v6218_v10  ;;  %vm9505_vm4 = vmpackc.low %vm9484_vm12, %vm8486_vm14  ;;  %v3289_v33 = vand.u32 15, %v9511_v14  ;;  %vm9513_vm14 = vnez %v9494_v40 }
 0xa65   :  { %v9488_v13 = vsel %vm8563_vm1, 4294967295, %v9487_v13  ;;  %vm9497_vm1 = vnez %v9443_v62  ;;  %v9501_v43 = vsel %vm8602_vm13, 4294967295, %v9500_v43  ;;  %vm8646_vm12 = vcmp.eq.s32.totalorder %v3273_v3, %v6218_v10  ;;  %vm9528_vm13 = vmpackc.low %vm8547_vm8, %vm8542_vm5 }
 0xa66   :  { %vm9498_vm0 = vmpackc.low %vm8431_vm3, %vm9497_vm1  ;;  %vm8607_vm3 = vcmp.eq.s32.totalorder %v3256_v53, %v6218_v10  ;;  %vm9506_vm9 = vnez %v9488_v13  ;;  %v3275_v62 = vand.u32 15, %v9518_v39  ;;  %vm8667_vm1 = vcmp.eq.s32.totalorder %v3306_v52, %v6218_v10  ;;  %v9560_v53 = vld [vmem:[#allocation59_spill] sm:$0xff]  ;;  %v9563_v13 = vld [vmem:[#allocation62_spill] sm:$0xff] }
 0xa67   :  { %5432 = vmatpush3.bf16.msk.msra.mxu1 %vm9498_vm0, %v9089_v35  ;;  %5464 = vmatpush3.bf16.msk.msra.mxu0 %vm9499_vm15, %v9089_v35  ;;  %vm9504_vm15 = vmpackc.low %vm9477_vm11, %vm8470_vm7  ;;  %vm8630_vm0 = vcmp.eq.s32.totalorder %v3287_v0, %v6218_v10  ;;  %vm8635_vm7 = vcmp.eq.s32.totalorder %v3288_v17, %v6218_v10  ;;  %vm8662_vm11 = vcmp.eq.s32.totalorder %v3305_v38, %v6218_v10  ;;  %v9523_v25 = vsel %vm8667_vm1, 4294967295, %v9522_v25  ;;  %v9562_v17 = vld [vmem:[#allocation61_spill] sm:$0xff]  ;;  %v5564_v38 = vld [vmem:[#allocation10 + $0x38] sm:$0xff] }
 0xa68   :  { %5434 = vmatprep.subr.msk.bf16.mxu1 %vm9504_vm15, %v9089_v35  ;;  %5466 = vmatprep.subr.msk.bf16.mxu0 %vm9505_vm4, %v9089_v35  ;;  %vm8651_vm15 = vcmp.eq.s32.totalorder %v3274_v47, %v6218_v10  ;;  %v3308_v11 = vand.u32 15, %v9525_v61  ;;  %vm8690_vm1 = vcmp.eq.s32.totalorder %v3257_v50, %v6218_v10  ;;  %vm9534_vm5 = vmpackc.low %vm9513_vm14, %vm8574_vm10  ;;  %vm9540_vm10 = vnez %v9523_v25  ;;  %v5562_v47 = vld [vmem:[#allocation10 + $0x30] sm:$0xff] }
 0xa69   :  { %v9517_v6 = vsel %vm8651_vm15, 4294967295, %v9516_v6  ;;  %vm9526_vm15 = vnez %v9472_v21  ;;  %vm8732_vm14 = vcmp.eq.s32.totalorder %v3275_v62, %v6218_v10  ;;  %v3291_v32 = vand.u32 15, %v9545_v23 }
 0xa6a   :  { %vm9527_vm4 = vmpackc.low %vm8519_vm6, %vm9526_vm15  ;;  %vm8695_vm6 = vcmp.eq.s32.totalorder %v3258_v45, %v6218_v10  ;;  %vm9535_vm8 = vnez %v9517_v6  ;;  %v3292_v12 = vand.u32 15, %v9546_v58  ;;  %v3277_v21 = vand.u32 15, %v9558_v46 }
 0xa6b   :  { %5436 = vmatpush3.bf16.msk.msra.mxu1 %vm9527_vm4, %v9089_v35  ;;  %5468 = vmatpush3.bf16.msk.msra.mxu0 %vm9528_vm13, %v9089_v35  ;;  %vm9533_vm13 = vmpackc.low %vm9506_vm9, %vm8558_vm2  ;;  %vm8716_vm4 = vcmp.eq.s32.totalorder %v3289_v33, %v6218_v10  ;;  %vm8721_vm2 = vcmp.eq.s32.totalorder %v3290_v20, %v6218_v10  ;;  %v3278_v63 = vand.u32 15, %v9559_v49  ;;  %v3309_v55 = vand.u32 15, %v9560_v53 }
 0xa6c   :  { %5438 = vmatprep.subr.msk.bf16.mxu1 %vm9533_vm13, %v9089_v35  ;;  %5470 = vmatprep.subr.msk.bf16.mxu0 %vm9534_vm5, %v9089_v35  ;;  %vm5473_vm9 = vmpackc.low %vm9540_vm10, %vm8662_vm11  ;;  %vm8737_vm13 = vcmp.eq.s32.totalorder %v3276_v29, %v6218_v10  ;;  %vm8748_vm11 = vcmp.eq.s32.totalorder %v3307_v26, %v6218_v10  ;;  %vm8753_vm10 = vcmp.eq.s32.totalorder %v3308_v11, %v6218_v10  ;;  %v3261_v0 = vand.u32 15, %v9341_v59 }
 0xa6d   :  { %v9544_v31 = vsel %vm8737_vm13, 4294967295, %v9543_v31  ;;  %vm5443_vm5 = vmpackc.low %vm8695_vm6, %vm8690_vm1  ;;  %v9550_v60 = vsel %vm8753_vm10, 4294967295, %v9549_v60  ;;  %v3293_v22 = vand.u32 15, %v9562_v17  ;;  %v3294_v54 = vand.u32 15, %v9563_v13 }
 0xa6e   :  { %vm9551_vm15 = vmmov %vm8607_vm3  ;;  %vm9552_vm3 = vnez %v9501_v43 }
 0xa6f   :  { %vm9553_vm13 = vmpackc.low %vm9551_vm15, %vm9552_vm3  ;;  %vm9556_vm3 = vnez %v9544_v31  ;;  %vm3324_vm15 = vcmp.eq.s32.totalorder %v3260_v2, %v6218_v10 }
 0xa70   :  { %5440 = vmatpush3.bf16.msk.msra.mxu1 %vm9553_vm13, %v9089_v35  ;;  %vm9554_vm1 = vmpackc.low %vm8635_vm7, %vm8630_vm0  ;;  %vm3323_vm7 = vcmp.eq.s32.totalorder %v3259_v16, %v6218_v10  ;;  %vm3355_vm13 = vcmp.eq.s32.totalorder %v3291_v32, %v6218_v10 }
 0xa71   :  { %5472 = vmatpush3.bf16.msk.msra.mxu0 %vm9554_vm1, %v9089_v35  ;;  %vm5475_vm6 = vmpackc.low %vm8721_vm2, %vm8716_vm4  ;;  %vm9557_vm4 = vnez %v9550_v60 }
 0xa72   :  { %vm9555_vm10 = vmpackc.low %vm9535_vm8, %vm8646_vm12  ;;  %5474 = vmatprep.subr.msk.bf16.mxu0 %vm5473_vm9, %v9089_v35  ;;  %vm3356_vm12 = vcmp.eq.s32.totalorder %v3292_v12, %v6218_v10 }
 0xa73   :  { %5442 = vmatprep.subr.msk.bf16.mxu1 %vm9555_vm10, %v9089_v35  ;;  %vm5445_vm0 = vmpackc.low %vm9556_vm3, %vm8732_vm14  ;;  %vm3341_vm14 = vcmp.eq.s32.totalorder %v3277_v21, %v6218_v10  ;;  %vm3374_vm10 = vcmp.eq.s32.totalorder %v3310_v51, %v6218_v10  ;;  %vm3326_vm3 = vcmp.eq.s32.totalorder %v3262_v56, %v6218_v10 }
 0xa74   :  { %vm5477_vm2 = vmpackc.low %vm9557_vm4, %vm8748_vm11  ;;  %5444 = vmatpush3.bf16.msk.msra.mxu1 %vm5443_vm5, %v9089_v35  ;;  %vm3342_vm5 = vcmp.eq.s32.totalorder %v3278_v63, %v6218_v10  ;;  %vm3373_vm11 = vcmp.eq.s32.totalorder %v3309_v55, %v6218_v10 }
 0xa75   :  { %5476 = vmatpush3.bf16.msk.msra.mxu0 %vm5475_vm6, %v9089_v35  ;;  %vm5447_vm8 = vmpackc.low %vm3324_vm15, %vm3323_vm7  ;;  %5446 = vmatprep.subr.msk.bf16.mxu1 %vm5445_vm0, %v9089_v35  ;;  %vm3325_vm6 = vcmp.eq.s32.totalorder %v3261_v0, %v6218_v10  ;;  %vm3357_vm0 = vcmp.eq.s32.totalorder %v3293_v22, %v6218_v10  ;;  %vm3358_vm7 = vcmp.eq.s32.totalorder %v3294_v54, %v6218_v10  ;;  %v5563_v10 = vld [vmem:[#allocation10 + $0x28] sm:$0xff] }
 0xa76   :  { %5478 = vmatprep.subr.msk.bf16.mxu0 %vm5477_vm2, %v9089_v35  ;;  %vm5479_vm9 = vmpackc.low %vm3356_vm12, %vm3355_vm13 }
 0xa77   :  { %vm5449_vm1 = vmpackc.low %vm3342_vm5, %vm3341_vm14 }
 0xa78   :  { %5448 = vmatpush3.bf16.msk.msra.mxu1 %vm5447_vm8, %v9089_v35  ;;  %vm5481_vm15 = vmpackc.low %vm3374_vm10, %vm3373_vm11 }
 0xa79   :  { %5480 = vmatpush3.bf16.msk.msra.mxu0 %vm5479_vm9, %v9089_v35  ;;  %5450 = vmatprep.subr.msk.bf16.mxu1 %vm5449_vm1, %v9089_v35  ;;  %vm5451_vm4 = vmpackc.low %vm3326_vm3, %vm3325_vm6 }
 0xa7a   :  { %5482 = vmatprep.subr.msk.bf16.mxu0 %vm5481_vm15, %v9089_v35  ;;  %vm5483_vm2 = vmpackc.low %vm3358_vm7, %vm3357_vm0 }
 0xa7c   :  { %5452 = vmatpush3.bf16.msk.msra.mxu1 %vm5451_vm4, %v9089_v35 }
 0xa7d   :  { %5484 = vmatpush3.bf16.msk.msra.mxu0 %vm5483_vm2, %v9089_v35 }
 0xb31   :  { %v3505_v59 = vpop.f32.mrb[28].mxu1  ;;  %v3576_v57 = vpop.f32.mrb[24].mxu0 }
 0xb32   :  { %v3507_v3 = vpop.f32.mrb[29].mxu1  ;;  %v3578_v28 = vpop.f32.mrb[25].mxu0  ;;  %v3581_v1 = vmul.f32 %v5563_v10, %v3505_v59  ;;  %v3583_v9 = vmul.f32 %v5564_v38, %v3576_v57 }
 0xb33   :  { %v3582_v7 = vmul.f32 %v5562_v47, %v3507_v3  ;;  %v3584_v40 = vmul.f32 %v3578_v28, %v8077_v8 }
 0xb35   :  { %3649 = vmatprep.mubr.f32.mxu1 %v3582_v7  ;;  %3719 = vmatprep.mubr.f32.mxu0 %v3584_v40 }
 0xb36   :  { %3650 = vmatmul.mubr.f32.vlgmr.msra.gmra.mrb[30].mxu1 %v3581_v1  ;;  %3720 = vmatmul.mubr.f32.vlgmr.msra.gmra.mrb[26].mxu0 %v3583_v9 }
 0xc09   :  { %v4262_v52 = vpop.f32.mrb[30].mxu1  ;;  %v4297_v43 = vpop.f32.mrb[26].mxu0 }
 0xc0a   :  { %v4263_v18 = vpop.f32.mrb[31].mxu1  ;;  %v4298_v35 = vpop.f32.mrb[27].mxu0 }
 0xc0b   :  { %v4264_v50 = vadd.f32 %v4263_v18, %v4262_v52  ;;  %v4299_v45 = vadd.f32 %v4298_v35, %v4297_v43 }
 0xc0d   :  { %v3652_v37 = vadd.f32 %v5565_v41, %v4264_v50 }
 0xc0f   :  { %v3722_v14 = vadd.f32 %v4299_v45, %v3652_v37 }
 0xc11   :  { %3725 = vst [vmem:[#allocation10 + $0x50] sm:$0xff] %v3722_v14 }
 0xc12   :  { %5665 = shalt.err (!%p5662_p8)
}
 0xc13   :  { %s5666_s15 = scalar_lea.hbm %s8835_s4, 1408 }
 0xc14   :  { %p5667_p9 = scmp.ne.s32.totalorder %s8835_s4, %s5666_s15  ;;  %p5670_p10 = scmp.lt.u32.totalorder %s5666_s15, %s8835_s4 }
 0xc16   :  { %p5672_p11 = pnand %p5670_p10, %p5667_p9 }
 0xc18   :  { %5675 = shalt.err (!%p5672_p11)
}
 0xc19   :  { %3735 = dma.vmem_to_hbm [thread:$0]  %s3733_s11, 1408, %s8835_s4, [#allocation4]  }
 0xc1a   :  { %5682 = dma.done.wait [#allocation4], 1408  }
 0xc1b   :  { %5683 = vsyncadd [#allocation4], 4294965888 }
 0xc1c   :  { %3739 = vsyncpa [#allocation3], 1 }
 0xc1d   :  { %3740 = vsyncpa [#allocation6], 1 }
 0xc1e   :  { %3741 = vsyncpa [#allocation9], 1 }
 0xc1f   :  { %3742 = vsyncpa [#allocation4], 1 }

</bundles_post_ra>
